<compile_context>
chip_gen: v6e
topology: v6e:2x2x1
jax: 0.10.0
libtpu: 0.0.40
codegen_flags: <defaults>
</compile_context>

<pallas_src>
import jax
import jax.numpy as jnp
from jax.experimental import pallas as pl
from jax.experimental.pallas import tpu as pltpu


# ----------------------------------------------------------------------------- utils

def _round_up(x, m):
    return ((x + m - 1) // m) * m


def _pad2(a, rows, cols, dtype):
    a = a.astype(dtype)
    pr, pc = rows - a.shape[0], cols - a.shape[1]
    if pr or pc:
        a = jnp.pad(a, ((0, pr), (0, pc)))
    return a


def _device_kind():
    try:
        return jax.devices()[0].device_kind.lower()
    except Exception:
        return ""


def _is_v7x():
    k = _device_kind()
    return ("v7" in k) or ("tpu7" in k)


def _vmem_capacity_bytes():
    try:
        return int(pltpu.get_tpu_info().vmem_capacity_bytes)
    except Exception:
        return (64 << 20) if _is_v7x() else (128 << 20)


def _default_vmem_limit():
    cap = _vmem_capacity_bytes()
    return max(24 << 20, min(cap * 3 // 4, 96 << 20))


def _probe_buffered():
    # Capability probe only (construction, no compile); harmless if unsupported.
    try:
        pl.BlockSpec((8, 128), lambda i: (i, 0), pipeline_mode=pl.Buffered(1))
        return True
    except Exception:
        return False


_HAS_BUFFERED = _probe_buffered()


def _resident_spec(shape, single_buffer):
    index_map = lambda *_: (0,) * len(shape)
    if single_buffer and _HAS_BUFFERED:
        # Block index never changes across the grid -> one buffer is enough.
        return pl.BlockSpec(shape, index_map, pipeline_mode=pl.Buffered(1))
    return pl.BlockSpec(shape, index_map)


# --------------------------------------------------------------------------- kernels

def _projection_kernel(x_ref, w1_ref, b1_ref, w2_ref, b2_ref, o_ref):
    # x arrives in its original dtype; cast to the MXU dtype in-kernel (VPU work
    # hidden under the DMA/MXU), accumulate in f32.
    x = x_ref[...].astype(w1_ref.dtype)
    h = jnp.dot(x, w1_ref[...], preferred_element_type=jnp.float32)
    h = jnp.maximum(h + b1_ref[...], 0.0)
    # TODO(synk): Dropout is identity in eval mode; training-mode dropout would need
    # pltpu.prng_seed + pltpu.stateful_bernoulli.
    y = jnp.dot(h.astype(w2_ref.dtype), w2_ref[...],
                preferred_element_type=jnp.float32)
    y = y + b2_ref[...]
    # F.normalize(p=2, dim=1): y / max(||y||, eps) == y * rsqrt(max(ss, eps^2))
    ss = jnp.sum(y * y, axis=-1, keepdims=True)
    o_ref[...] = (y * jax.lax.rsqrt(jnp.maximum(ss, 1e-24))).astype(o_ref.dtype)


def _projection_kernel_hid_tiled(x_ref, w1_ref, b1_ref, w2_ref, b2_ref, o_ref,
                                 acc_ref):
    # Reduction-tiled variant: grid axis 1 walks the hidden dim (N of linear1 /
    # K of linear2) so only a slab of each weight is resident at a time.
    k = pl.program_id(1)

    @pl.when(k == 0)
    def _():
        acc_ref[...] = jnp.zeros_like(acc_ref)

    x = x_ref[...].astype(w1_ref.dtype)
    h = jnp.dot(x, w1_ref[...], preferred_element_type=jnp.float32)
    h = jnp.maximum(h + b1_ref[...], 0.0)        # bias/ReLU are per-hidden-column
    acc_ref[...] += jnp.dot(h.astype(w2_ref.dtype), w2_ref[...],
                            preferred_element_type=jnp.float32)

    @pl.when(k == pl.num_programs(1) - 1)
    def _():
        y = acc_ref[...] + b2_ref[...]
        ss = jnp.sum(y * y, axis=-1, keepdims=True)
        o_ref[...] = (y * jax.lax.rsqrt(jnp.maximum(ss, 1e-24))).astype(o_ref.dtype)


# ------------------------------------------------------------------------ params prep

def prepare_projection_params(w1, b1, w2, b2, *, mxu_dtype=jnp.bfloat16):
    """Pad feature axes to multiples of 128 and cast weights ONCE (hoisted out of
    the per-forward path). Weights are stored pre-transposed: w1 (in, hid), w2
    (hid, out). Pass mxu_dtype=jnp.float32 for a full-precision parity path."""
    in_dim, hid = w1.shape
    assert w2.shape[0] == hid
    out = w2.shape[1]
    in_p, hid_p, out_p = (_round_up(d, 128) for d in (in_dim, hid, out))
    wdt = w1.dtype if mxu_dtype is None else mxu_dtype
    return dict(
        w1=_pad2(w1, in_p, hid_p, wdt),
        w2=_pad2(w2, hid_p, out_p, wdt),
        b1=_pad2(b1.reshape(1, hid), 1, hid_p, jnp.float32),
        b2=_pad2(b2.reshape(1, out), 1, out_p, jnp.float32),
        dims=(in_dim, hid, out),
    )


# ------------------------------------------------------------------------ block sizing

def _choose_block_m(B, x_itemsize, in_p, hid_p, out_p, w_itemsize, budget,
                    two_cores, resident_mult):
    resident = (resident_mult * w_itemsize * (in_p * hid_p + hid_p * out_p)
                + 4 * (hid_p + out_p))
    bm = 2048 if two_cores else 1024          # v7x HBM ~3.2 TB/s -> bigger tiles pay
    while bm > 16:
        tile = (2 * bm * in_p * x_itemsize    # x tile (double-buffered, real dtype)
                + 2 * bm * out_p * 4          # out tile (double-buffered, f32)
                + bm * in_p * w_itemsize      # in-kernel cast of x
                + bm * hid_p * 4              # h intermediate
                + bm * out_p * 4)             # y intermediate
        if resident + tile <= budget:
            break
        bm //= 2
    bm = max(16, bm)
    bm = min(bm, _round_up(B, 16))
    if two_cores and B > 16 and _round_up(B, 16) <= bm:
        # 2 TensorCores (v7x): at least two grid steps so both cores get work.
        bm = max(16, _round_up(-(-B // 2), 16))
    return bm, resident


def _hid_tiling_fits(bm, bh, x_itemsize, in_p, out_p, w_itemsize, budget):
    need = (2 * bm * in_p * x_itemsize                   # x tile (double-buffered)
            + 2 * (in_p * bh + bh * out_p) * w_itemsize  # w1/w2 slabs (double-buffered)
            + 2 * bh * 4 + out_p * 4                     # b1 slabs + b2
            + 2 * bm * out_p * 4                         # out tile
            + bm * out_p * 4                             # accumulator scratch
            + bm * in_p * w_itemsize                     # x cast
            + bm * bh * 4)                               # h intermediate
    return need <= budget


def _choose_hid_block(bm, x_itemsize, in_p, hid_p, out_p, w_itemsize, budget):
    for bh in range(hid_p, 0, -128):
        if hid_p % bh:
            continue
        if _hid_tiling_fits(bm, bh, x_itemsize, in_p, out_p, w_itemsize, budget):
            return bh
    return 128


# ----------------------------------------------------------------------------- apply

def projection_head_apply(x, params, *, block_m=None, hid_block=None,
                          vmem_limit_bytes=None, out_dtype=None):
    """x: (B, input_dim) in its natural dtype (e.g. f32). params from
    prepare_projection_params."""
    B, in_dim = x.shape
    p_in, hid, out = params["dims"]
    assert in_dim == p_in, "input_dim mismatch with prepared params"
    w1p, b1p, w2p, b2p = params["w1"], params["b1"], params["w2"], params["b2"]
    in_p, hid_p = w1p.shape
    out_p = w2p.shape[1]

    out_dtype = x.dtype if out_dtype is None else out_dtype
    x_itemsize = jnp.dtype(x.dtype).itemsize
    w_itemsize = jnp.dtype(w1p.dtype).itemsize

    if vmem_limit_bytes is None:
        vmem_limit_bytes = _default_vmem_limit()
    budget = int(vmem_limit_bytes * 0.85)
    two_cores = _is_v7x()

    def run(single_buffer, allow_core_parallel):
        resident_mult = 1 if (single_buffer and _HAS_BUFFERED) else 2

        if block_m is None:
            bm, resident = _choose_block_m(
                B, x_itemsize, in_p, hid_p, out_p, w_itemsize, budget,
                two_cores, resident_mult)
        else:
            bm = max(16, (block_m // 16) * 16)
            resident = (resident_mult * w_itemsize * (in_p * hid_p + hid_p * out_p)
                        + 4 * (hid_p + out_p))

        hb = hid_block
        if hb is None and resident > int(budget * 0.7):
            # Resident weights don't comfortably fit VMEM (e.g. large heads on
            # v7x's 64 MiB): switch to the hidden-dim-tiled reduction kernel.
            hb = _choose_hid_block(bm, x_itemsize, in_p, hid_p, out_p,
                                   w_itemsize, budget)
        if hb is not None:
            assert hid_p % hb == 0, "hid_block must divide the padded hidden dim"

        B_p = _round_up(B, bm)
        grid_m = B_p // bm

        if allow_core_parallel and grid_m >= 2 and grid_m % 2 == 0:
            batch_sem = pltpu.CORE_PARALLEL      # actually splits across v7x TCs
        else:
            batch_sem = pltpu.PARALLEL

        # Only pad x when padding is actually required (no extra HBM pass otherwise).
        xp = x
        if B_p != B or in_p != in_dim:
            xp = jnp.pad(x, ((0, B_p - B), (0, in_p - in_dim)))

        flops = 2 * B * (in_dim * hid + hid * out)
        bytes_accessed = (B * in_dim * x_itemsize
                          + (in_p * hid_p + hid_p * out_p) * w_itemsize
                          + (hid_p + out_p) * 4
                          + B * out_p * jnp.dtype(out_dtype).itemsize)
        cost = pl.CostEstimate(flops=flops, transcendentals=B,
                               bytes_accessed=bytes_accessed)

        if hb is None:
            grid = (grid_m,)
            in_specs = [
                pl.BlockSpec((bm, in_p), lambda i: (i, 0)),       # x tiled over batch
                _resident_spec((in_p, hid_p), single_buffer),     # w1 resident
                _resident_spec((1, hid_p), single_buffer),        # b1
                _resident_spec((hid_p, out_p), single_buffer),    # w2 resident
                _resident_spec((1, out_p), single_buffer),        # b2
            ]
            out_specs = pl.BlockSpec((bm, out_p), lambda i: (i, 0))
            scratch = []
            kernel = _projection_kernel
            dims_sem = (batch_sem,)
        else:
            grid = (grid_m, hid_p // hb)                          # reduction axis last
            in_specs = [
                pl.BlockSpec((bm, in_p), lambda i, k: (i, 0)),
                pl.BlockSpec((in_p, hb), lambda i, k: (0, k)),
                pl.BlockSpec((1, hb), lambda i, k: (0, k)),
                pl.BlockSpec((hb, out_p), lambda i, k: (k, 0)),
                _resident_spec((1, out_p), single_buffer),
            ]
            out_specs = pl.BlockSpec((bm, out_p), lambda i, k: (i, 0))
            scratch = [pltpu.VMEM((bm, out_p), jnp.float32)]
            kernel = _projection_kernel_hid_tiled
            dims_sem = (batch_sem, pltpu.ARBITRARY)

        call = pl.pallas_call(
            kernel,
            out_shape=jax.ShapeDtypeStruct((B_p, out_p), out_dtype),
            grid_spec=pltpu.PrefetchScalarGridSpec(
                num_scalar_prefetch=0,
                grid=grid,
                in_specs=in_specs,
                out_specs=out_specs,
                scratch_shapes=scratch,
            ),
            compiler_params=pltpu.CompilerParams(
                dimension_semantics=dims_sem,
                vmem_limit_bytes=int(vmem_limit_bytes),
            ),
            cost_estimate=cost,
        )
        y = call(xp, w1p, b1p, w2p, b2p)
        # Slice only the axes that were actually padded.
        if B_p != B or out_p != out:
            y = y[:B, :out]
        return y

    try:
        return run(single_buffer=True, allow_core_parallel=two_cores)
    except Exception as first_err:
        # Conservative retry: double-buffered weights with block_m re-derived for the
        # doubled footprint and plain PARALLEL semantics. Never uses more VMEM than
        # the first attempt; genuine errors are re-raised if this also fails.
        try:
            return run(single_buffer=False, allow_core_parallel=False)
        except Exception:
            raise first_err


def projection_head_ref(x, w1, b1, w2, b2):
    h = jnp.maximum(x @ w1 + b1, 0.0)
    y = h @ w2 + b2
    norm = jnp.sqrt(jnp.sum(y * y, axis=1, keepdims=True))
    return y / jnp.maximum(norm, 1e-12)


if __name__ == "__main__":
    # Module-default feature dims (already lane-aligned -> no padding, no output
    # slice); batch kept small.
    batch, input_dim, hidden_dim, output_dim = 256, 768, 256, 128

    key = jax.random.PRNGKey(0)
    kx, kw1, kb1, kw2, kb2 = jax.random.split(key, 5)

    x = jax.random.normal(kx, (batch, input_dim), dtype=jnp.float32)
    # Parameters stored pre-transposed: (in_features, out_features).
    w1 = jax.random.normal(kw1, (input_dim, hidden_dim), dtype=jnp.float32) * 0.05
    b1 = jax.random.normal(kb1, (hidden_dim,), dtype=jnp.float32) * 0.05
    w2 = jax.random.normal(kw2, (hidden_dim, output_dim), dtype=jnp.float32) * 0.05
    b2 = jax.random.normal(kb2, (output_dim,), dtype=jnp.float32) * 0.05

    # One-time weight prep (padding + bf16 cast hoisted out of the forward pass).
    params = prepare_projection_params(w1, b1, w2, b2)

    ref = projection_head_ref(x, w1, b1, w2, b2)

    # Main fused path (resident weights).
    out = jax.block_until_ready(projection_head_apply(x, params))
    assert out.shape == (batch, output_dim)
    # bf16 MXU operands -> looser tolerance vs the f32 reference.
    assert jnp.allclose(out, ref, atol=2e-2, rtol=2e-2), "mismatch vs JAX reference"
    # L2 normalization done in f32: row norms should be ~1.
    assert jnp.allclose(jnp.linalg.norm(out, axis=1), 1.0, atol=1e-3)

    # Also exercise the hidden-dim reduction-tiled fallback (the path large heads
    # take on small-VMEM parts such as v7x).
    out2 = jax.block_until_ready(projection_head_apply(x, params, hid_block=128))
    assert out2.shape == (batch, output_dim)
    assert jnp.allclose(out2, ref, atol=2e-2, rtol=2e-2), "hid-tiled mismatch"
    assert jnp.allclose(jnp.linalg.norm(out2, axis=1), 1.0, atol=1e-3)

    print("KERNEL_OK")
</pallas_src>

<mosaic_0001>
module attributes {stable_mosaic.version = 11 : i64} {
  func.func @_projection_kernel(%arg0: i32, %arg1: memref<256x768xf32, #tpu.memory_space<vmem>>, %arg2: memref<768x256xbf16, #tpu.memory_space<vmem>>, %arg3: memref<1x256xf32, #tpu.memory_space<vmem>>, %arg4: memref<256x128xbf16, #tpu.memory_space<vmem>>, %arg5: memref<1x128xf32, #tpu.memory_space<vmem>>, %arg6: memref<256x128xf32, #tpu.memory_space<vmem>>) attributes {dimension_semantics = [#tpu.dimension_semantics<parallel>], iteration_bounds = array<i64: 1>, scalar_prefetch = 0 : i64, scratch_operands = 0 : i64, tpu.core_type = #tpu.core_type<tc>, window_params = [{transform_indices = @transform_0, window_bounds = array<i64: 256, 768>}, {pipeline_mode = #tpu.pipeline_mode<synchronous>, transform_indices = @transform_1, window_bounds = array<i64: 768, 256>}, {pipeline_mode = #tpu.pipeline_mode<synchronous>, transform_indices = @transform_2, window_bounds = array<i64: 1, 256>}, {pipeline_mode = #tpu.pipeline_mode<synchronous>, transform_indices = @transform_3, window_bounds = array<i64: 256, 128>}, {pipeline_mode = #tpu.pipeline_mode<synchronous>, transform_indices = @transform_4, window_bounds = array<i64: 1, 128>}, {transform_indices = @transform_5, window_bounds = array<i64: 256, 128>}]} {
    %c0 = arith.constant 0 : index
    %c0_0 = arith.constant 0 : index
    %0 = vector.load %arg1[%c0, %c0_0] : memref<256x768xf32, #tpu.memory_space<vmem>>, vector<256x768xf32>
    %1 = arith.truncf %0 : vector<256x768xf32> to vector<256x768xbf16>
    %c0_1 = arith.constant 0 : index
    %c0_2 = arith.constant 0 : index
    %2 = vector.load %arg2[%c0_1, %c0_2] : memref<768x256xbf16, #tpu.memory_space<vmem>>, vector<768x256xbf16>
    %cst = arith.constant dense<0.000000e+00> : vector<256x256xf32>
    %3 = tpu.matmul %1, %2, %cst {dimension_numbers = #tpu.dot_dimension_numbers<[1], [0], [0], [1], [0, 0, 1, 1], [], []>} : vector<256x768xbf16>, vector<768x256xbf16>, vector<256x256xf32> -> vector<256x256xf32>
    %c0_3 = arith.constant 0 : index
    %c0_4 = arith.constant 0 : index
    %4 = vector.load %arg3[%c0_3, %c0_4] : memref<1x256xf32, #tpu.memory_space<vmem>>, vector<1x256xf32>
    %5 = vector.broadcast %4 : vector<1x256xf32> to vector<256x256xf32>
    %6 = arith.addf %3, %5 : vector<256x256xf32>
    %cst_5 = arith.constant 0.000000e+00 : f32
    %7 = vector.broadcast %cst_5 : f32 to vector<256x256xf32>
    %8 = arith.maximumf %6, %7 : vector<256x256xf32>
    %9 = arith.truncf %8 : vector<256x256xf32> to vector<256x256xbf16>
    %c0_6 = arith.constant 0 : index
    %c0_7 = arith.constant 0 : index
    %10 = vector.load %arg4[%c0_6, %c0_7] : memref<256x128xbf16, #tpu.memory_space<vmem>>, vector<256x128xbf16>
    %cst_8 = arith.constant dense<0.000000e+00> : vector<256x128xf32>
    %11 = tpu.matmul %9, %10, %cst_8 {dimension_numbers = #tpu.dot_dimension_numbers<[1], [0], [0], [1], [0, 0, 1, 1], [], []>} : vector<256x256xbf16>, vector<256x128xbf16>, vector<256x128xf32> -> vector<256x128xf32>
    %c0_9 = arith.constant 0 : index
    %c0_10 = arith.constant 0 : index
    %12 = vector.load %arg5[%c0_9, %c0_10] : memref<1x128xf32, #tpu.memory_space<vmem>>, vector<1x128xf32>
    %13 = vector.broadcast %12 : vector<1x128xf32> to vector<256x128xf32>
    %14 = arith.addf %11, %13 : vector<256x128xf32>
    %15 = arith.mulf %14, %14 : vector<256x128xf32>
    %cst_11 = arith.constant dense<0.000000e+00> : vector<256xf32>
    %16 = vector.multi_reduction <add>, %15, %cst_11 [1] : vector<256x128xf32> to vector<256xf32>
    %17 = vector.shape_cast %16 : vector<256xf32> to vector<256x1xf32>
    %cst_12 = arith.constant 1.000000e-24 : f32
    %18 = vector.broadcast %cst_12 : f32 to vector<256x1xf32>
    %19 = arith.maximumf %17, %18 : vector<256x1xf32>
    %20 = math.rsqrt %19 : vector<256x1xf32>
    %21 = vector.broadcast %20 : vector<256x1xf32> to vector<256x128xf32>
    %22 = arith.mulf %14, %21 : vector<256x128xf32>
    %c0_13 = arith.constant 0 : index
    %c0_14 = arith.constant 0 : index
    %23 = vector.load %arg6[%c0_13, %c0_14] : memref<256x128xf32, #tpu.memory_space<vmem>>, vector<256x128xf32>
    tpu.vector_store %arg6[%c0_13, %c0_14], %22 {strides = array<i32>} : memref<256x128xf32, #tpu.memory_space<vmem>>, vector<256x128xf32>,
    return
  }
  func.func @transform_0(%arg0: i32) -> (i32, i32) {
    %c0_i32 = arith.constant 0 : i32
    %c0_i32_0 = arith.constant 0 : i32
    return %arg0, %c0_i32 : i32, i32
  }
  func.func @transform_1(%arg0: i32) -> (i32, i32) {
    %c0_i32 = arith.constant 0 : i32
    %c0_i32_0 = arith.constant 0 : i32
    %c0_i32_1 = arith.constant 0 : i32
    return %c0_i32, %c0_i32_0 : i32, i32
  }
  func.func @transform_2(%arg0: i32) -> (i32, i32) {
    %c0_i32 = arith.constant 0 : i32
    %c0_i32_0 = arith.constant 0 : i32
    %c0_i32_1 = arith.constant 0 : i32
    return %c0_i32, %c0_i32_0 : i32, i32
  }
  func.func @transform_3(%arg0: i32) -> (i32, i32) {
    %c0_i32 = arith.constant 0 : i32
    %c0_i32_0 = arith.constant 0 : i32
    %c0_i32_1 = arith.constant 0 : i32
    return %c0_i32, %c0_i32_0 : i32, i32
  }
  func.func @transform_4(%arg0: i32) -> (i32, i32) {
    %c0_i32 = arith.constant 0 : i32
    %c0_i32_0 = arith.constant 0 : i32
    %c0_i32_1 = arith.constant 0 : i32
    return %c0_i32, %c0_i32_0 : i32, i32
  }
  func.func @transform_5(%arg0: i32) -> (i32, i32) {
    %c0_i32 = arith.constant 0 : i32
    %c0_i32_0 = arith.constant 0 : i32
    return %arg0, %c0_i32 : i32, i32
  }
}

module attributes {stable_mosaic.version = 11 : i64} {
  func.func @_projection_kernel(%arg0: i32, %arg1: memref<256x768xf32, #tpu.memory_space<vmem>>, %arg2: memref<768x256xbf16, #tpu.memory_space<vmem>>, %arg3: memref<1x256xf32, #tpu.memory_space<vmem>>, %arg4: memref<256x128xbf16, #tpu.memory_space<vmem>>, %arg5: memref<1x128xf32, #tpu.memory_space<vmem>>, %arg6: memref<256x128xf32, #tpu.memory_space<vmem>>) attributes {dimension_semantics = [#tpu.dimension_semantics<parallel>], iteration_bounds = array<i64: 1>, scalar_prefetch = 0 : i64, scratch_operands = 0 : i64, tpu.core_type = #tpu.core_type<tc>, window_params = [{transform_indices = @transform_0, window_bounds = array<i64: 256, 768>}, {pipeline_mode = #tpu.pipeline_mode<synchronous>, transform_indices = @transform_1, window_bounds = array<i64: 768, 256>}, {pipeline_mode = #tpu.pipeline_mode<synchronous>, transform_indices = @transform_2, window_bounds = array<i64: 1, 256>}, {pipeline_mode = #tpu.pipeline_mode<synchronous>, transform_indices = @transform_3, window_bounds = array<i64: 256, 128>}, {pipeline_mode = #tpu.pipeline_mode<synchronous>, transform_indices = @transform_4, window_bounds = array<i64: 1, 128>}, {transform_indices = @transform_5, window_bounds = array<i64: 256, 128>}]} {
    %c0 = arith.constant 0 : index
    %c0_0 = arith.constant 0 : index
    %0 = vector.load %arg1[%c0, %c0_0] : memref<256x768xf32, #tpu.memory_space<vmem>>, vector<256x768xf32>
    %1 = arith.truncf %0 : vector<256x768xf32> to vector<256x768xbf16>
    %c0_1 = arith.constant 0 : index
    %c0_2 = arith.constant 0 : index
    %2 = vector.load %arg2[%c0_1, %c0_2] : memref<768x256xbf16, #tpu.memory_space<vmem>>, vector<768x256xbf16>
    %cst = arith.constant dense<0.000000e+00> : vector<256x256xf32>
    %3 = tpu.matmul %1, %2, %cst {dimension_numbers = #tpu.dot_dimension_numbers<[1], [0], [0], [1], [0, 0, 1, 1], [], []>} : vector<256x768xbf16>, vector<768x256xbf16>, vector<256x256xf32> -> vector<256x256xf32>
    %c0_3 = arith.constant 0 : index
    %c0_4 = arith.constant 0 : index
    %4 = vector.load %arg3[%c0_3, %c0_4] : memref<1x256xf32, #tpu.memory_space<vmem>>, vector<1x256xf32>
    %5 = vector.broadcast %4 : vector<1x256xf32> to vector<256x256xf32>
    %6 = arith.addf %3, %5 : vector<256x256xf32>
    %cst_5 = arith.constant 0.000000e+00 : f32
    %7 = vector.broadcast %cst_5 : f32 to vector<256x256xf32>
    %8 = arith.maximumf %6, %7 : vector<256x256xf32>
    %9 = arith.truncf %8 : vector<256x256xf32> to vector<256x256xbf16>
    %c0_6 = arith.constant 0 : index
    %c0_7 = arith.constant 0 : index
    %10 = vector.load %arg4[%c0_6, %c0_7] : memref<256x128xbf16, #tpu.memory_space<vmem>>, vector<256x128xbf16>
    %cst_8 = arith.constant dense<0.000000e+00> : vector<256x128xf32>
    %11 = tpu.matmul %9, %10, %cst_8 {dimension_numbers = #tpu.dot_dimension_numbers<[1], [0], [0], [1], [0, 0, 1, 1], [], []>} : vector<256x256xbf16>, vector<256x128xbf16>, vector<256x128xf32> -> vector<256x128xf32>
    %c0_9 = arith.constant 0 : index
    %c0_10 = arith.constant 0 : index
    %12 = vector.load %arg5[%c0_9, %c0_10] : memref<1x128xf32, #tpu.memory_space<vmem>>, vector<1x128xf32>
    %13 = vector.broadcast %12 : vector<1x128xf32> to vector<256x128xf32>
    %14 = arith.addf %11, %13 : vector<256x128xf32>
    %15 = arith.mulf %14, %14 : vector<256x128xf32>
    %cst_11 = arith.constant dense<0.000000e+00> : vector<256xf32>
    %16 = vector.multi_reduction <add>, %15, %cst_11 [1] : vector<256x128xf32> to vector<256xf32>
    %17 = vector.shape_cast %16 : vector<256xf32> to vector<256x1xf32>
    %cst_12 = arith.constant 1.000000e-24 : f32
    %18 = vector.broadcast %cst_12 : f32 to vector<256x1xf32>
    %19 = arith.maximumf %17, %18 : vector<256x1xf32>
    %20 = math.rsqrt %19 : vector<256x1xf32>
    %21 = vector.broadcast %20 : vector<256x1xf32> to vector<256x128xf32>
    %22 = arith.mulf %14, %21 : vector<256x128xf32>
    %c0_13 = arith.constant 0 : index
    %c0_14 = arith.constant 0 : index
    %23 = vector.load %arg6[%c0_13, %c0_14] : memref<256x128xf32, #tpu.memory_space<vmem>>, vector<256x128xf32>
    tpu.vector_store %arg6[%c0_13, %c0_14], %22 {strides = array<i32>} : memref<256x128xf32, #tpu.memory_space<vmem>>, vector<256x128xf32>,
    return
  }
  func.func @transform_0(%arg0: i32) -> (i32, i32) {
    %c0_i32 = arith.constant 0 : i32
    %c0_i32_0 = arith.constant 0 : i32
    return %arg0, %c0_i32 : i32, i32
  }
  func.func @transform_1(%arg0: i32) -> (i32, i32) {
    %c0_i32 = arith.constant 0 : i32
    %c0_i32_0 = arith.constant 0 : i32
    %c0_i32_1 = arith.constant 0 : i32
    return %c0_i32, %c0_i32_0 : i32, i32
  }
  func.func @transform_2(%arg0: i32) -> (i32, i32) {
    %c0_i32 = arith.constant 0 : i32
    %c0_i32_0 = arith.constant 0 : i32
    %c0_i32_1 = arith.constant 0 : i32
    return %c0_i32, %c0_i32_0 : i32, i32
  }
  func.func @transform_3(%arg0: i32) -> (i32, i32) {
    %c0_i32 = arith.constant 0 : i32
    %c0_i32_0 = arith.constant 0 : i32
    %c0_i32_1 = arith.constant 0 : i32
    return %c0_i32, %c0_i32_0 : i32, i32
  }
  func.func @transform_4(%arg0: i32) -> (i32, i32) {
    %c0_i32 = arith.constant 0 : i32
    %c0_i32_0 = arith.constant 0 : i32
    %c0_i32_1 = arith.constant 0 : i32
    return %c0_i32, %c0_i32_0 : i32, i32
  }
  func.func @transform_5(%arg0: i32) -> (i32, i32) {
    %c0_i32 = arith.constant 0 : i32
    %c0_i32_0 = arith.constant 0 : i32
    return %arg0, %c0_i32 : i32, i32
  }
}

</mosaic_0001>

<bundles_post_ra>
// kernel: tpu_custom_call.1
= control target key start
LH: loop header
LB: loop body
LE: loop exit
PB: predicated region body
PF: predicated region fallthrough
CT: control target
= control target key end

     0   :  { %10 = vsyncpa [#allocation3], 0  ;;  %s3380_s0 = inlined_call_operand.hbm [shape: f32[256,768], index: 0, kind: input, shape index: {}]   ;;  %s3381_s1 = inlined_call_operand.hbm [shape: bf16[768,256], index: 1, kind: input, shape index: {}]   ;;  %s3382_s2 = inlined_call_operand.vmem [shape: f32[1,256], index: 2, kind: input, shape index: {}]   ;;  %s3383_s3 = inlined_call_operand.hbm [shape: bf16[256,128], index: 3, kind: input, shape index: {}]   ;;  %s3384_s4 = inlined_call_operand.vmem [shape: f32[1,128], index: 4, kind: input, shape index: {}]   ;;  %s3385_s5 = inlined_call_operand.hbm [shape: f32[256,128], index: 5, kind: output, shape index: {}]  }
   0x1   :  { %11 = vsyncpa [#allocation6], 0 }
   0x2   :  { %12 = vsyncpa [#allocation4], 0  ;;  %s2697_s18 = smov [#allocation5]  }
   0x3   :  { %s30_s19 = sshll.u32 %s2697_s18, 4  ;;  %s31_s19 = int_to_ptr.vmem [resolvable:$true] %s30_s19 }
   0x4   :  { %s2619_s20 = scalar_lea.vmem %s31_s19, 12288  ;;  %p2624_p1 = scmp.lt.s32.totalorder %s31_s19, %s31_s19 }
   0x5   :  { %p2620_p0 = scmp.ne.s32.totalorder %s31_s19, %s2619_s20  ;;  %p2625_p2 = scmp.lt.s32.totalorder %s2619_s20, %s2619_s20 }
   0x7   :  { %p2626_p3 = por %p2625_p2, %p2624_p1 }
   0x9   :  { %p2627_p4 = pnand %p2626_p3, %p2620_p0 }
   0xb   :  { %2630 = shalt.err (!%p2627_p4)
}
   0xc   :  { %s2698_s21 = smov 128   ;;  %s2699_s22 = smov 8  }
   0xd   :  { %36 = dma.hbm_to_vmem [thread:$0]  %s3381_s1, 12288, %s31_s19, [#allocation6], %s2698_s21, %s2698_s21, %s2699_s22  }
   0xe   :  { %s2700_s25 = smov [#allocation2]  }
   0xf   :  { %s18_s26 = sshll.u32 %s2700_s25, 4  ;;  %s19_s26 = int_to_ptr.vmem [resolvable:$true] %s18_s26 }
  0x10   :  { %s2639_s27 = scalar_lea.vmem %s19_s26, 24576  ;;  %p2644_p6 = scmp.lt.s32.totalorder %s19_s26, %s19_s26 }
  0x11   :  { %p2640_p5 = scmp.ne.s32.totalorder %s19_s26, %s2639_s27  ;;  %p2645_p7 = scmp.lt.s32.totalorder %s2639_s27, %s2639_s27 }
  0x13   :  { %p2646_p8 = por %p2645_p7, %p2644_p6 }
  0x15   :  { %p2647_p9 = pnand %p2646_p8, %p2640_p5 }
  0x17   :  { %2650 = shalt.err (!%p2647_p9)
}
  0x18   :  { %s2701_s28 = smov 768   ;;  %s2702_s29 = smov 48  }
  0x19   :  { %24 = dma.hbm_to_vmem [thread:$0]  %s3380_s0, 24576, %s19_s26, [#allocation3], %s2701_s28, %s2701_s28, %s2702_s29  }
  0x1a   :  { %s2703_s7 = smov [#allocation7]  }
  0x1b   :  { %s44_s8 = sshll.u32 %s2703_s7, 4  ;;  %s45_s8 = int_to_ptr.vmem [resolvable:$true] %s44_s8 }
  0x1c   :  { %s2659_s1 = scalar_lea.vmem %s45_s8, 2048  ;;  %p2664_p11 = scmp.lt.s32.totalorder %s45_s8, %s45_s8 }
  0x1d   :  { %p2660_p10 = scmp.ne.s32.totalorder %s45_s8, %s2659_s1  ;;  %p2665_p12 = scmp.lt.s32.totalorder %s2659_s1, %s2659_s1 }
  0x1f   :  { %p2666_p13 = por %p2665_p12, %p2664_p11 }
  0x21   :  { %p2667_p0 = pnand %p2666_p13, %p2660_p10 }
  0x23   :  { %2670 = shalt.err (!%p2667_p0)
}
  0x24   :  { %s2704_s9 = smov 64   ;;  %s2705_s10 = smov 4  }
  0x25   :  { %50 = dma.hbm_to_vmem [thread:$0]  %s3383_s3, 2048, %s45_s8, [#allocation6], %s2704_s9, %s2704_s9, %s2705_s10  }
  0x26   :  { %2691 = dma.done.wait [#allocation3], 24576  }
  0x27   :  { %2692 = vsyncadd [#allocation3], 4294942720 }
  0x28   :  { %2693 = dma.done.wait [#allocation6], 14336  }
  0x29   :  { %2694 = vsyncadd [#allocation6], 4294952960  ;;  %v2387_v0 = vld [vmem:[#allocation5 + $0x74] ss:$8 sps:$4 sm:$0xff]   ;;  %v2389_v1 = vld [vmem:[#allocation5 + $0x70] ss:$8 sps:$4 sm:$0xff]  }
  0x2a   :  { %939 = vmatprep.subr.bf16.mxu0 %v2387_v0  ;;  %v2390_v2 = vld [vmem:[#allocation5 + $0x174] ss:$8 sps:$4 sm:$0xff]   ;;  %v2392_v3 = vld [vmem:[#allocation5 + $0x170] ss:$8 sps:$4 sm:$0xff]   ;;  %v2393_v4 = vld [vmem:[#allocation5 + $0x64] ss:$8 sps:$4 sm:$0xff]  }
  0x2b   :  { %940 = vmatpush1.bf16.msra.mxu0 %v2389_v1  ;;  %v2395_v5 = vld [vmem:[#allocation5 + $0x60] ss:$8 sps:$4 sm:$0xff]   ;;  %1132 = vmatprep.subr.bf16.mxu1 %v2390_v2  ;;  %v2396_v6 = vld [vmem:[#allocation5 + $0x164] ss:$8 sps:$4 sm:$0xff]   ;;  %v2399_v8 = vld [vmem:[#allocation5 + $0x54] ss:$8 sps:$4 sm:$0xff]  }
  0x2c   :  { %1133 = vmatpush1.bf16.msra.mxu1 %v2392_v3  ;;  %941 = vmatprep.subr.bf16.mxu0 %v2393_v4  ;;  %v2398_v7 = vld [vmem:[#allocation5 + $0x160] ss:$8 sps:$4 sm:$0xff]   ;;  %v2401_v9 = vld [vmem:[#allocation5 + $0x50] ss:$8 sps:$4 sm:$0xff]   ;;  %v2402_v10 = vld [vmem:[#allocation5 + $0x154] ss:$8 sps:$4 sm:$0xff]  }
  0x2d   :  { %1134 = vmatprep.subr.bf16.mxu1 %v2396_v6  ;;  %v2405_v11 = vld [vmem:[#allocation5 + $0x44] ss:$8 sps:$4 sm:$0xff]   ;;  %v2404_v12 = vld [vmem:[#allocation5 + $0x150] ss:$8 sps:$4 sm:$0xff]   ;;  %v2407_v14 = vld [vmem:[#allocation5 + $0x40] ss:$8 sps:$4 sm:$0xff]  }
  0x2e   :  { %v2408_v13 = vld [vmem:[#allocation5 + $0x144] ss:$8 sps:$4 sm:$0xff]   ;;  %v2411_v15 = vld [vmem:[#allocation5 + $0x34] ss:$8 sps:$4 sm:$0xff]   ;;  %v2410_v16 = vld [vmem:[#allocation5 + $0x140] ss:$8 sps:$4 sm:$0xff]  }
  0x2f   :  { %942 = vmatpush1.bf16.msra.mxu0 %v2395_v5  ;;  %v2414_v17 = vld [vmem:[#allocation5 + $0x134] ss:$8 sps:$4 sm:$0xff]   ;;  %v2413_v18 = vld [vmem:[#allocation5 + $0x30] ss:$8 sps:$4 sm:$0xff]   ;;  %v2417_v19 = vld [vmem:[#allocation5 + $0x24] ss:$8 sps:$4 sm:$0xff]  }
  0x30   :  { %943 = vmatprep.subr.bf16.mxu0 %v2399_v8  ;;  %1135 = vmatpush1.bf16.msra.mxu1 %v2398_v7  ;;  %v2416_v20 = vld [vmem:[#allocation5 + $0x130] ss:$8 sps:$4 sm:$0xff]   ;;  %v2420_v21 = vld [vmem:[#allocation5 + $0x124] ss:$8 sps:$4 sm:$0xff]   ;;  %v2419_v22 = vld [vmem:[#allocation5 + $0x20] ss:$8 sps:$4 sm:$0xff]  }
  0x31   :  { %1136 = vmatprep.subr.bf16.mxu1 %v2402_v10  ;;  %v2423_v23 = vld [vmem:[#allocation5 + $0x14] ss:$8 sps:$4 sm:$0xff]   ;;  %v2422_v24 = vld [vmem:[#allocation5 + $0x120] ss:$8 sps:$4 sm:$0xff]   ;;  %v2425_v26 = vld [vmem:[#allocation5 + $0x10] ss:$8 sps:$4 sm:$0xff]  }
  0x32   :  { %v2426_v25 = vld [vmem:[#allocation5 + $0x114] ss:$8 sps:$4 sm:$0xff]   ;;  %v2429_v27 = vld [vmem:[#allocation5 + $0x4] ss:$8 sps:$4 sm:$0xff]   ;;  %v2428_v28 = vld [vmem:[#allocation5 + $0x110] ss:$8 sps:$4 sm:$0xff]  }
  0x33   :  { %944 = vmatpush1.bf16.msra.mxu0 %v2401_v9  ;;  %v2432_v29 = vld [vmem:[#allocation5 + $0x104] ss:$8 sps:$4 sm:$0xff]   ;;  %v2431_v30 = vld [vmem:[#allocation5] ss:$8 sps:$4 sm:$0xff]   ;;  %v2435_v31 = vld [vmem:[#allocation5 + $0xf4] ss:$8 sps:$4 sm:$0xff]  }
  0x34   :  { %945 = vmatprep.subr.bf16.mxu0 %v2405_v11  ;;  %1137 = vmatpush1.bf16.msra.mxu1 %v2404_v12  ;;  %v2434_v32 = vld [vmem:[#allocation5 + $0x100] ss:$8 sps:$4 sm:$0xff]   ;;  %v2438_v33 = vld [vmem:[#allocation5 + $0x1f4] ss:$8 sps:$4 sm:$0xff]   ;;  %v2437_v34 = vld [vmem:[#allocation5 + $0xf0] ss:$8 sps:$4 sm:$0xff]  }
  0x35   :  { %1138 = vmatprep.subr.bf16.mxu1 %v2408_v13  ;;  %v2441_v35 = vld [vmem:[#allocation5 + $0xe4] ss:$8 sps:$4 sm:$0xff]   ;;  %v2440_v36 = vld [vmem:[#allocation5 + $0x1f0] ss:$8 sps:$4 sm:$0xff]   ;;  %v2443_v38 = vld [vmem:[#allocation5 + $0xe0] ss:$8 sps:$4 sm:$0xff]  }
  0x36   :  { %v2444_v37 = vld [vmem:[#allocation5 + $0x1e4] ss:$8 sps:$4 sm:$0xff]   ;;  %v2447_v39 = vld [vmem:[#allocation5 + $0xd4] ss:$8 sps:$4 sm:$0xff]   ;;  %v2446_v40 = vld [vmem:[#allocation5 + $0x1e0] ss:$8 sps:$4 sm:$0xff]  }
  0x37   :  { %946 = vmatpush1.bf16.msra.mxu0 %v2407_v14  ;;  %v2450_v41 = vld [vmem:[#allocation5 + $0x1d4] ss:$8 sps:$4 sm:$0xff]   ;;  %v2449_v42 = vld [vmem:[#allocation5 + $0xd0] ss:$8 sps:$4 sm:$0xff]   ;;  %v2453_v43 = vld [vmem:[#allocation5 + $0xc4] ss:$8 sps:$4 sm:$0xff]  }
  0x38   :  { %947 = vmatprep.subr.bf16.mxu0 %v2411_v15  ;;  %1139 = vmatpush1.bf16.msra.mxu1 %v2410_v16  ;;  %v2452_v44 = vld [vmem:[#allocation5 + $0x1d0] ss:$8 sps:$4 sm:$0xff]   ;;  %v2456_v45 = vld [vmem:[#allocation5 + $0x1c4] ss:$8 sps:$4 sm:$0xff]   ;;  %v2455_v48 = vld [vmem:[#allocation5 + $0xc0] ss:$8 sps:$4 sm:$0xff]  }
  0x39   :  { %1140 = vmatprep.subr.bf16.mxu1 %v2414_v17  ;;  %v64_v46 = vld [vmem:[#allocation2 + $0x8] sm:$0xff]  ;;  %v70_v47 = vld [vmem:[#allocation2 + $0x38] sm:$0xff]  ;;  %v63_v5 = vld [vmem:[#allocation2] sm:$0xff] }
  0x3a   :  { %v256_v49 = vpack.c.bf16 %v70_v47, %v64_v46  ;;  %v2459_v50 = vld [vmem:[#allocation5 + $0xb4] ss:$8 sps:$4 sm:$0xff]   ;;  %v2458_v51 = vld [vmem:[#allocation5 + $0x1c0] ss:$8 sps:$4 sm:$0xff]   ;;  %v2461_v56 = vld [vmem:[#allocation5 + $0xb0] ss:$8 sps:$4 sm:$0xff]  }
  0x3b   :  { %948 = vmatpush1.bf16.msra.mxu0 %v2413_v18  ;;  %v66_v52 = vld [vmem:[#allocation2 + $0x18] sm:$0xff]  ;;  %v72_v53 = vld [vmem:[#allocation2 + $0x48] sm:$0xff]  ;;  %v69_v6 = vld [vmem:[#allocation2 + $0x30] sm:$0xff] }
  0x3c   :  { %949 = vmatprep.subr.bf16.mxu0 %v2417_v19  ;;  %1141 = vmatpush1.bf16.msra.mxu1 %v2416_v20  ;;  %v2462_v54 = vld [vmem:[#allocation5 + $0x1b4] ss:$8 sps:$4 sm:$0xff]   ;;  %v258_v55 = vpack.c.bf16 %v72_v53, %v66_v52  ;;  %v2465_v57 = vld [vmem:[#allocation5 + $0xa4] ss:$8 sps:$4 sm:$0xff]   ;;  %v2464_v58 = vld [vmem:[#allocation5 + $0x1b0] ss:$8 sps:$4 sm:$0xff]   ;;  %v255_v13 = vpack.c.bf16 %v69_v6, %v63_v5 }
  0x3d   :  { %1142 = vmatprep.subr.bf16.mxu1 %v2420_v21  ;;  %971 = vmatprep.mubr.bf16.mxu0 %v256_v49  ;;  %v2468_v59 = vld [vmem:[#allocation5 + $0x1a4] ss:$8 sps:$4 sm:$0xff]   ;;  %v2467_v60 = vld [vmem:[#allocation5 + $0xa0] ss:$8 sps:$4 sm:$0xff]   ;;  %v2471_v61 = vld [vmem:[#allocation5 + $0x94] ss:$8 sps:$4 sm:$0xff]  }
  0x3e   :  { %1164 = vmatprep.mubr.bf16.mxu1 %v258_v55  ;;  %v2470_v62 = vld [vmem:[#allocation5 + $0x1a0] ss:$8 sps:$4 sm:$0xff]   ;;  %v2474_v63 = vld [vmem:[#allocation5 + $0x194] ss:$8 sps:$4 sm:$0xff]   ;;  %v2473_v0 = vld [vmem:[#allocation5 + $0x90] ss:$8 sps:$4 sm:$0xff]  }
  0x3f   :  { %950 = vmatpush1.bf16.msra.mxu0 %v2419_v22  ;;  %v2477_v1 = vld [vmem:[#allocation5 + $0x84] ss:$8 sps:$4 sm:$0xff]   ;;  %v2476_v2 = vld [vmem:[#allocation5 + $0x190] ss:$8 sps:$4 sm:$0xff]   ;;  %v2479_v3 = vld [vmem:[#allocation5 + $0x80] ss:$8 sps:$4 sm:$0xff]  }
  0x40   :  { %951 = vmatprep.subr.bf16.mxu0 %v2423_v23  ;;  %1143 = vmatpush1.bf16.msra.mxu1 %v2422_v24  ;;  %v2480_v4 = vld [vmem:[#allocation5 + $0x184] ss:$8 sps:$4 sm:$0xff]   ;;  %v2485_v7 = vld [vmem:[#allocation5 + $0x274] ss:$8 sps:$4 sm:$0xff]   ;;  %v2482_v10 = vld [vmem:[#allocation5 + $0x180] ss:$8 sps:$4 sm:$0xff]  }
  0x41   :  { %1144 = vmatprep.subr.bf16.mxu1 %v2426_v25  ;;  %v76_v8 = vld [vmem:[#allocation2 + $0x68] sm:$0xff]  ;;  %v82_v9 = vld [vmem:[#allocation2 + $0x98] sm:$0xff]  ;;  %v65_v11 = vld [vmem:[#allocation2 + $0x10] sm:$0xff] }
  0x42   :  { %v71_v12 = vld [vmem:[#allocation2 + $0x40] sm:$0xff]  ;;  %v78_v14 = vld [vmem:[#allocation2 + $0x78] sm:$0xff]  ;;  %v84_v15 = vld [vmem:[#allocation2 + $0xa8] sm:$0xff]  ;;  %v262_v17 = vpack.c.bf16 %v82_v9, %v76_v8 }
  0x43   :  { %952 = vmatpush1.bf16.msra.mxu0 %v2425_v26  ;;  %v2483_v16 = vld [vmem:[#allocation5 + $0x270] ss:$8 sps:$4 sm:$0xff]   ;;  %v257_v18 = vpack.c.bf16 %v71_v12, %v65_v11  ;;  %v2488_v19 = vld [vmem:[#allocation5 + $0x264] ss:$8 sps:$4 sm:$0xff]   ;;  %v264_v20 = vpack.c.bf16 %v84_v15, %v78_v14  ;;  %v2486_v23 = vld [vmem:[#allocation5 + $0x260] ss:$8 sps:$4 sm:$0xff]  }
  0x44   :  { %953 = vmatprep.subr.bf16.mxu0 %v2429_v27  ;;  %1145 = vmatpush1.bf16.msra.mxu1 %v2428_v28  ;;  %v75_v21 = vld [vmem:[#allocation2 + $0x60] sm:$0xff]  ;;  %v81_v22 = vld [vmem:[#allocation2 + $0x90] sm:$0xff]  ;;  %v88_v24 = vld [vmem:[#allocation2 + $0xc8] sm:$0xff] }
  0x45   :  { %1146 = vmatprep.subr.bf16.mxu1 %v2432_v29  ;;  %v94_v25 = vld [vmem:[#allocation2 + $0xf8] sm:$0xff]  ;;  %v77_v27 = vld [vmem:[#allocation2 + $0x70] sm:$0xff]  ;;  %v83_v28 = vld [vmem:[#allocation2 + $0xa0] sm:$0xff]  ;;  %v261_v29 = vpack.c.bf16 %v81_v22, %v75_v21 }
  0x46   :  { %v2491_v26 = vld [vmem:[#allocation5 + $0x254] ss:$8 sps:$4 sm:$0xff]   ;;  %v108_v47 = vld [vmem:[#allocation2 + $0x168] sm:$0xff]  ;;  %v2495_v49 = vld [vmem:[#allocation5 + $0x230] ss:$8 sps:$4 sm:$0xff]  }
  0x47   :  { %954 = vmatpush1.bf16.msra.mxu0 %v2431_v30  ;;  %v90_v30 = vld [vmem:[#allocation2 + $0xd8] sm:$0xff]  ;;  %v99_v53 = vld [vmem:[#allocation2 + $0x120] sm:$0xff]  ;;  %v112_v55 = vld [vmem:[#allocation2 + $0x188] sm:$0xff] }
  0x48   :  { %955 = vmatprep.subr.bf16.mxu0 %v2435_v31  ;;  %1147 = vmatpush1.bf16.msra.mxu1 %v2434_v32  ;;  %v96_v31 = vld [vmem:[#allocation2 + $0x108] sm:$0xff]  ;;  %v268_v32 = vpack.c.bf16 %v94_v25, %v88_v24  ;;  %v102_v46 = vld [vmem:[#allocation2 + $0x138] sm:$0xff]  ;;  %v111_v5 = vld [vmem:[#allocation2 + $0x180] sm:$0xff] }
  0x49   :  { %1148 = vmatprep.subr.bf16.mxu1 %v2438_v33  ;;  %v2489_v33 = vld [vmem:[#allocation5 + $0x250] ss:$8 sps:$4 sm:$0xff]   ;;  %v276_v52 = vpack.c.bf16 %v108_v47, %v102_v46  ;;  %v2504_v9 = vld [vmem:[#allocation5 + $0x200] ss:$8 sps:$4 sm:$0xff]  }
  0x4a   :  { %v117_v6 = vld [vmem:[#allocation2 + $0x1b0] sm:$0xff]  ;;  %v130_v8 = vld [vmem:[#allocation2 + $0x218] sm:$0xff]  ;;  %v119_v12 = vld [vmem:[#allocation2 + $0x1c0] sm:$0xff] }
  0x4b   :  { %956 = vmatpush2.bf16.msra.mxu0 %v2437_v34  ;;  %v263_v34 = vpack.c.bf16 %v83_v28, %v77_v27  ;;  %v113_v11 = vld [vmem:[#allocation2 + $0x190] sm:$0xff]  ;;  %v126_v14 = vld [vmem:[#allocation2 + $0x1f8] sm:$0xff]  ;;  %v132_v15 = vld [vmem:[#allocation2 + $0x228] sm:$0xff] }
  0x4c   :  { %957 = vmatprep.subr.bf16.mxu0 %v2441_v35  ;;  %1149 = vmatpush2.bf16.msra.mxu1 %v2440_v36  ;;  %v2494_v35 = vld [vmem:[#allocation5 + $0x244] ss:$8 sps:$4 sm:$0xff]   ;;  %v270_v36 = vpack.c.bf16 %v96_v31, %v90_v30  ;;  %v129_v22 = vld [vmem:[#allocation2 + $0x210] sm:$0xff]  ;;  %v142_v24 = vld [vmem:[#allocation2 + $0x278] sm:$0xff] }
  0x4d   :  { %1150 = vmatprep.subr.bf16.mxu1 %v2444_v37  ;;  %v87_v37 = vld [vmem:[#allocation2 + $0xc0] sm:$0xff]  ;;  %v125_v27 = vld [vmem:[#allocation2 + $0x1f0] sm:$0xff]  ;;  %v138_v30 = vld [vmem:[#allocation2 + $0x258] sm:$0xff] }
  0x4e   :  { %v123_v21 = vld [vmem:[#allocation2 + $0x1e0] sm:$0xff]  ;;  %v144_v31 = vld [vmem:[#allocation2 + $0x288] sm:$0xff]  ;;  %v150_v46 = vld [vmem:[#allocation2 + $0x2b8] sm:$0xff] }
  0x4f   :  { %958 = vmatpush2.bf16.msra.mxu0 %v2443_v38  ;;  %v93_v38 = vld [vmem:[#allocation2 + $0xf0] sm:$0xff]  ;;  %v2510_v25 = vld [vmem:[#allocation5 + $0x2e0] ss:$8 sps:$4 sm:$0xff]  }
  0x50   :  { %959 = vmatprep.subr.bf16.mxu0 %v2447_v39  ;;  %1151 = vmatpush2.bf16.msra.mxu1 %v2446_v40  ;;  %v100_v39 = vld [vmem:[#allocation2 + $0x128] sm:$0xff]  ;;  %v106_v40 = vld [vmem:[#allocation2 + $0x158] sm:$0xff]  ;;  %v131_v28 = vld [vmem:[#allocation2 + $0x220] sm:$0xff] }
  0x51   :  { %1152 = vmatprep.subr.bf16.mxu1 %v2450_v41  ;;  %v2492_v41 = vld [vmem:[#allocation5 + $0x240] ss:$8 sps:$4 sm:$0xff]  }
  0x52   :  { %v156_v47 = vld [vmem:[#allocation2 + $0x2e8] sm:$0xff] }
  0x53   :  { %960 = vmatpush2.bf16.msra.mxu0 %v2449_v42  ;;  %v2497_v42 = vld [vmem:[#allocation5 + $0x234] ss:$8 sps:$4 sm:$0xff]  }
  0x54   :  { %961 = vmatprep.subr.bf16.mxu0 %v2453_v43  ;;  %1153 = vmatpush2.bf16.msra.mxu1 %v2452_v44  ;;  %v89_v43 = vld [vmem:[#allocation2 + $0xd0] sm:$0xff]  ;;  %v95_v44 = vld [vmem:[#allocation2 + $0x100] sm:$0xff] }
  0x55   :  { %1154 = vmatprep.subr.bf16.mxu1 %v2456_v45  ;;  %v267_v45 = vpack.c.bf16 %v93_v38, %v87_v37  ;;  %v135_v37 = vld [vmem:[#allocation2 + $0x240] sm:$0xff]  ;;  %v141_v38 = vld [vmem:[#allocation2 + $0x270] sm:$0xff] }
  0x57   :  { %962 = vmatpush2.bf16.msra.mxu0 %v2455_v48  ;;  %v274_v48 = vpack.c.bf16 %v106_v40, %v100_v39  ;;  %v2516_v39 = vld [vmem:[#allocation5 + $0x2c0] ss:$8 sps:$4 sm:$0xff]  }
  0x58   :  { %963 = vmatprep.subr.bf16.mxu0 %v2459_v50  ;;  %1155 = vmatpush2.bf16.msra.mxu1 %v2458_v51  ;;  %v269_v50 = vpack.c.bf16 %v95_v44, %v89_v43  ;;  %v2500_v51 = vld [vmem:[#allocation5 + $0x224] ss:$8 sps:$4 sm:$0xff]   ;;  %v137_v43 = vld [vmem:[#allocation2 + $0x250] sm:$0xff] }
  0x59   :  { %1156 = vmatprep.subr.bf16.mxu1 %v2462_v54  ;;  %v105_v54 = vld [vmem:[#allocation2 + $0x150] sm:$0xff]  ;;  %v148_v40 = vld [vmem:[#allocation2 + $0x2a8] sm:$0xff]  ;;  %v143_v44 = vld [vmem:[#allocation2 + $0x280] sm:$0xff] }
  0x5b   :  { %964 = vmatpush2.bf16.msra.mxu0 %v2461_v56  ;;  %v118_v56 = vld [vmem:[#allocation2 + $0x1b8] sm:$0xff] }
  0x5c   :  { %965 = vmatprep.subr.bf16.mxu0 %v2465_v57  ;;  %1157 = vmatpush2.bf16.msra.mxu1 %v2464_v58  ;;  %v2498_v57 = vld [vmem:[#allocation5 + $0x220] ss:$8 sps:$4 sm:$0xff]   ;;  %v2503_v58 = vld [vmem:[#allocation5 + $0x214] ss:$8 sps:$4 sm:$0xff]  }
  0x5d   :  { %1158 = vmatprep.subr.bf16.mxu1 %v2468_v59  ;;  %v101_v59 = vld [vmem:[#allocation2 + $0x130] sm:$0xff] }
  0x5f   :  { %966 = vmatpush2.bf16.msra.mxu0 %v2467_v60  ;;  %v107_v60 = vld [vmem:[#allocation2 + $0x160] sm:$0xff] }
  0x60   :  { %967 = vmatprep.subr.bf16.mxu0 %v2471_v61  ;;  %1159 = vmatpush2.bf16.msra.mxu1 %v2470_v62  ;;  %v273_v61 = vpack.c.bf16 %v105_v54, %v99_v53  ;;  %v114_v62 = vld [vmem:[#allocation2 + $0x198] sm:$0xff]  ;;  %v147_v53 = vld [vmem:[#allocation2 + $0x2a0] sm:$0xff]  ;;  %v153_v54 = vld [vmem:[#allocation2 + $0x2d0] sm:$0xff] }
  0x61   :  { %1160 = vmatprep.subr.bf16.mxu1 %v2474_v63  ;;  %v120_v63 = vld [vmem:[#allocation2 + $0x1c8] sm:$0xff] }
  0x63   :  { %968 = vmatpush2.bf16.msra.mxu0 %v2473_v0  ;;  %v280_v0 = vpack.c.bf16 %v118_v56, %v112_v55  ;;  %v149_v55 = vld [vmem:[#allocation2 + $0x2b0] sm:$0xff]  ;;  %v155_v56 = vld [vmem:[#allocation2 + $0x2e0] sm:$0xff] }
  0x64   :  { %969 = vmatprep.subr.bf16.mxu0 %v2477_v1  ;;  %1161 = vmatpush2.bf16.msra.mxu1 %v2476_v2  ;;  %v2501_v1 = vld [vmem:[#allocation5 + $0x210] ss:$8 sps:$4 sm:$0xff]   ;;  %v275_v2 = vpack.c.bf16 %v107_v60, %v101_v59  ;;  %v2522_v59 = vld [vmem:[#allocation5 + $0x2a0] ss:$8 sps:$4 sm:$0xff]  }
  0x65   :  { %1162 = vmatprep.subr.bf16.mxu1 %v2480_v4  ;;  %v282_v4 = vpack.c.bf16 %v120_v63, %v114_v62  ;;  %v162_v60 = vld [vmem:[#allocation2 + $0x318] sm:$0xff] }
  0x66   :  { %v2527_v62 = vld [vmem:[#allocation5 + $0x294] ss:$8 sps:$4 sm:$0xff]   ;;  %v2525_v63 = vld [vmem:[#allocation5 + $0x290] ss:$8 sps:$4 sm:$0xff]  }
  0x67   :  { %970 = vmatpush2.bf16.msra.mxu0 %v2479_v3  ;;  %v2506_v3 = vld [vmem:[#allocation5 + $0x204] ss:$8 sps:$4 sm:$0xff]  }
  0x68   :  { %1325 = vmatprep.subr.bf16.mxu0 %v2485_v7  ;;  %1163 = vmatpush2.bf16.msra.mxu1 %v2482_v10  ;;  %v124_v7 = vld [vmem:[#allocation2 + $0x1e8] sm:$0xff]  ;;  %v2509_v10 = vld [vmem:[#allocation5 + $0x2f4] ss:$8 sps:$4 sm:$0xff]  }
  0x6a   :  { %972 = vmatmul.mubr.bf16.vlgmr.msra.gmra.mxu0 %v255_v13  ;;  %v279_v13 = vpack.c.bf16 %v117_v6, %v111_v5  ;;  %v165_v5 = vld [vmem:[#allocation2 + $0x330] sm:$0xff] }
  0x6b   :  { %1326 = vmatpush1.bf16.msra.mxu0 %v2483_v16  ;;  %981 = vmatprep.mubr.bf16.mxu0 %v262_v17  ;;  %v286_v16 = vpack.c.bf16 %v130_v8, %v124_v7  ;;  %v2507_v17 = vld [vmem:[#allocation5 + $0x2f0] ss:$8 sps:$4 sm:$0xff]   ;;  %v172_v7 = vld [vmem:[#allocation2 + $0x368] sm:$0xff] }
  0x6c   :  { %1165 = vmatmul.mubr.bf16.vlgmr.msra.gmra.mxu1 %v257_v18  ;;  %1327 = vmatprep.subr.bf16.mxu0 %v2488_v19  ;;  %v281_v18 = vpack.c.bf16 %v119_v12, %v113_v11  ;;  %v2512_v19 = vld [vmem:[#allocation5 + $0x2e4] ss:$8 sps:$4 sm:$0xff]   ;;  %v178_v8 = vld [vmem:[#allocation2 + $0x398] sm:$0xff]  ;;  %v2528_v11 = vld [vmem:[#allocation5 + $0x280] ss:$8 sps:$4 sm:$0xff]  }
  0x6d   :  { %1174 = vmatprep.mubr.bf16.mxu1 %v264_v20  ;;  %v288_v20 = vpack.c.bf16 %v132_v15, %v126_v14  ;;  %v174_v12 = vld [vmem:[#allocation2 + $0x378] sm:$0xff]  ;;  %v310_v15 = vpack.c.bf16 %v178_v8, %v172_v7  ;;  %v225_v7 = vld [vmem:[#allocation2 + $0x510] sm:$0xff]  ;;  %v232_v8 = vld [vmem:[#allocation2 + $0x548] sm:$0xff] }
  0x6f   :  { %1328 = vmatpush1.bf16.msra.mxu0 %v2486_v23  ;;  %v136_v23 = vld [vmem:[#allocation2 + $0x248] sm:$0xff] }
  0x70   :  { %1329 = vmatprep.subr.bf16.mxu0 %v2491_v26  ;;  %v2515_v26 = vld [vmem:[#allocation5 + $0x2d4] ss:$8 sps:$4 sm:$0xff]  }
  0x72   :  { %982 = vmatmul.mubr.bf16.gmra.mxu0 %v261_v29  ;;  %v285_v29 = vpack.c.bf16 %v129_v22, %v123_v21  ;;  %v190_v21 = vld [vmem:[#allocation2 + $0x3f8] sm:$0xff]  ;;  %v173_v22 = vld [vmem:[#allocation2 + $0x370] sm:$0xff] }
  0x73   :  { %991 = vmatprep.mubr.bf16.mxu0 %v268_v32  ;;  %1330 = vmatpush1.bf16.msra.mxu0 %v2489_v33  ;;  %v292_v32 = vpack.c.bf16 %v142_v24, %v136_v23  ;;  %v2513_v33 = vld [vmem:[#allocation5 + $0x2d0] ss:$8 sps:$4 sm:$0xff]   ;;  %v179_v23 = vld [vmem:[#allocation2 + $0x3a0] sm:$0xff] }
  0x74   :  { %1175 = vmatmul.mubr.bf16.gmra.mxu1 %v263_v34  ;;  %1331 = vmatprep.subr.bf16.mxu0 %v2494_v35  ;;  %v287_v34 = vpack.c.bf16 %v131_v28, %v125_v27  ;;  %v2518_v35 = vld [vmem:[#allocation5 + $0x2c4] ss:$8 sps:$4 sm:$0xff]   ;;  %v311_v28 = vpack.c.bf16 %v179_v23, %v173_v22  ;;  %v233_v22 = vld [vmem:[#allocation2 + $0x550] sm:$0xff] }
  0x75   :  { %1184 = vmatprep.mubr.bf16.mxu1 %v270_v36  ;;  %v294_v36 = vpack.c.bf16 %v144_v31, %v138_v30  ;;  %v183_v30 = vld [vmem:[#allocation2 + $0x3c0] sm:$0xff]  ;;  %v189_v31 = vld [vmem:[#allocation2 + $0x3f0] sm:$0xff] }
  0x76   :  { %v239_v23 = vld [vmem:[#allocation2 + $0x580] sm:$0xff] }
  0x77   :  { %1332 = vmatpush1.bf16.msra.mxu0 %v2492_v41  ;;  %v154_v41 = vld [vmem:[#allocation2 + $0x2d8] sm:$0xff] }
  0x78   :  { %1333 = vmatprep.subr.bf16.mxu0 %v2497_v42  ;;  %v2521_v42 = vld [vmem:[#allocation5 + $0x2b4] ss:$8 sps:$4 sm:$0xff]  }
  0x7a   :  { %992 = vmatmul.mubr.bf16.gmra.mxu0 %v267_v45  ;;  %v291_v45 = vpack.c.bf16 %v141_v38, %v135_v37  ;;  %v198_v37 = vld [vmem:[#allocation2 + $0x438] sm:$0xff]  ;;  %v204_v38 = vld [vmem:[#allocation2 + $0x468] sm:$0xff] }
  0x7b   :  { %1001 = vmatprep.mubr.bf16.mxu0 %v274_v48  ;;  %1334 = vmatpush1.bf16.msra.mxu0 %v2495_v49  ;;  %v298_v48 = vpack.c.bf16 %v154_v41, %v148_v40  ;;  %v2519_v49 = vld [vmem:[#allocation5 + $0x2b0] ss:$8 sps:$4 sm:$0xff]   ;;  %v324_v41 = vpack.c.bf16 %v204_v38, %v198_v37  ;;  %v251_v37 = vld [vmem:[#allocation2 + $0x5e0] sm:$0xff] }
  0x7c   :  { %1185 = vmatmul.mubr.bf16.gmra.mxu1 %v269_v50  ;;  %1335 = vmatprep.subr.bf16.mxu0 %v2500_v51  ;;  %v293_v50 = vpack.c.bf16 %v143_v44, %v137_v43  ;;  %v2524_v51 = vld [vmem:[#allocation5 + $0x2a4] ss:$8 sps:$4 sm:$0xff]   ;;  %v2532_v43 = vld [vmem:[#allocation7 + $0x38] sm:$0xff]  }
  0x7d   :  { %1194 = vmatprep.mubr.bf16.mxu1 %v276_v52  ;;  %v300_v52 = vpack.c.bf16 %v156_v47, %v150_v46  ;;  %v195_v44 = vld [vmem:[#allocation2 + $0x420] sm:$0xff]  ;;  %v208_v46 = vld [vmem:[#allocation2 + $0x488] sm:$0xff]  ;;  %v214_v47 = vld [vmem:[#allocation2 + $0x4b8] sm:$0xff] }
  0x7f   :  { %1336 = vmatpush1.bf16.msra.mxu0 %v2498_v57  ;;  %v160_v57 = vld [vmem:[#allocation2 + $0x308] sm:$0xff] }
  0x80   :  { %1337 = vmatprep.subr.bf16.mxu0 %v2503_v58  ;;  %v166_v58 = vld [vmem:[#allocation2 + $0x338] sm:$0xff] }
  0x82   :  { %1002 = vmatmul.mubr.bf16.gmra.mxu0 %v273_v61  ;;  %v168_v61 = vld [vmem:[#allocation2 + $0x348] sm:$0xff] }
  0x83   :  { %1011 = vmatprep.mubr.bf16.mxu0 %v280_v0  ;;  %1338 = vmatpush1.bf16.msra.mxu0 %v2501_v1  ;;  %v297_v0 = vpack.c.bf16 %v153_v54, %v147_v53  ;;  %v2530_v1 = vld [vmem:[#allocation5 + $0x284] ss:$8 sps:$4 sm:$0xff]   ;;  %v306_v6 = vpack.c.bf16 %v168_v61, %v162_v60  ;;  %v328_v53 = vpack.c.bf16 %v214_v47, %v208_v46  ;;  %v209_v60 = vld [vmem:[#allocation2 + $0x490] sm:$0xff] }
  0x84   :  { %1195 = vmatmul.mubr.bf16.gmra.mxu1 %v275_v2  ;;  %1339 = vmatprep.subr.bf16.mxu0 %v2506_v3  ;;  %v304_v2 = vpack.c.bf16 %v166_v58, %v160_v57  ;;  %v299_v3 = vpack.c.bf16 %v155_v56, %v149_v55  ;;  %v207_v56 = vld [vmem:[#allocation2 + $0x480] sm:$0xff]  ;;  %v213_v57 = vld [vmem:[#allocation2 + $0x4b0] sm:$0xff]  ;;  %v220_v58 = vld [vmem:[#allocation2 + $0x4e8] sm:$0xff] }
  0x85   :  { %1204 = vmatprep.mubr.bf16.mxu1 %v282_v4  ;;  %v159_v4 = vld [vmem:[#allocation2 + $0x300] sm:$0xff] }
  0x86   :  { %v303_v14 = vpack.c.bf16 %v165_v5, %v159_v4  ;;  %v215_v61 = vld [vmem:[#allocation2 + $0x4c0] sm:$0xff]  ;;  %v2533_v4 = vld [vmem:[#allocation7 + $0x70] sm:$0xff]  }
  0x87   :  { %1340 = vmatpush1.bf16.msra.mxu0 %v2504_v9  ;;  %v161_v9 = vld [vmem:[#allocation2 + $0x310] sm:$0xff]  ;;  %v2537_v47 = vld [vmem:[#allocation7 + $0x60] sm:$0xff]  }
  0x88   :  { %1341 = vmatprep.subr.bf16.mxu0 %v2509_v10  ;;  %v167_v10 = vld [vmem:[#allocation2 + $0x340] sm:$0xff]  ;;  %v2534_v5 = vld [vmem:[#allocation7 + $0x30] sm:$0xff]  }
  0x8a   :  { %1012 = vmatmul.mubr.bf16.gmra.mxu0 %v279_v13  ;;  %v180_v13 = vld [vmem:[#allocation2 + $0x3a8] sm:$0xff] }
  0x8b   :  { %1021 = vmatprep.mubr.bf16.mxu0 %v286_v16  ;;  %1342 = vmatpush2.bf16.msra.mxu0 %v2507_v17  ;;  %v305_v16 = vpack.c.bf16 %v167_v10, %v161_v9  ;;  %v312_v17 = vpack.c.bf16 %v180_v13, %v174_v12  ;;  %v238_v9 = vld [vmem:[#allocation2 + $0x578] sm:$0xff]  ;;  %v221_v10 = vld [vmem:[#allocation2 + $0x4f0] sm:$0xff] }
  0x8c   :  { %1205 = vmatmul.mubr.bf16.gmra.mxu1 %v281_v18  ;;  %1343 = vmatprep.subr.bf16.mxu0 %v2512_v19  ;;  %v171_v18 = vld [vmem:[#allocation2 + $0x360] sm:$0xff]  ;;  %v177_v19 = vld [vmem:[#allocation2 + $0x390] sm:$0xff]  ;;  %v234_v13 = vld [vmem:[#allocation2 + $0x558] sm:$0xff] }
  0x8d   :  { %1214 = vmatprep.mubr.bf16.mxu1 %v288_v20  ;;  %v184_v20 = vld [vmem:[#allocation2 + $0x3c8] sm:$0xff]  ;;  %v309_v24 = vpack.c.bf16 %v177_v19, %v171_v18  ;;  %v231_v18 = vld [vmem:[#allocation2 + $0x540] sm:$0xff]  ;;  %v237_v19 = vld [vmem:[#allocation2 + $0x570] sm:$0xff] }
  0x8e   :  { %v316_v27 = vpack.c.bf16 %v190_v21, %v184_v20  ;;  %v244_v20 = vld [vmem:[#allocation2 + $0x5a8] sm:$0xff]  ;;  %v250_v21 = vld [vmem:[#allocation2 + $0x5d8] sm:$0xff] }
  0x8f   :  { %1344 = vmatpush2.bf16.msra.mxu0 %v2510_v25  ;;  %v186_v25 = vld [vmem:[#allocation2 + $0x3d8] sm:$0xff] }
  0x90   :  { %1345 = vmatprep.subr.bf16.mxu0 %v2515_v26  ;;  %v192_v26 = vld [vmem:[#allocation2 + $0x408] sm:$0xff] }
  0x92   :  { %1022 = vmatmul.mubr.bf16.gmra.mxu0 %v285_v29  ;;  %v318_v29 = vpack.c.bf16 %v192_v26, %v186_v25  ;;  %v246_v25 = vld [vmem:[#allocation2 + $0x5b8] sm:$0xff]  ;;  %v252_v26 = vld [vmem:[#allocation2 + $0x5e8] sm:$0xff] }
  0x93   :  { %1031 = vmatprep.mubr.bf16.mxu0 %v292_v32  ;;  %1346 = vmatpush2.bf16.msra.mxu0 %v2513_v33  ;;  %v196_v32 = vld [vmem:[#allocation2 + $0x428] sm:$0xff]  ;;  %v202_v33 = vld [vmem:[#allocation2 + $0x458] sm:$0xff] }
  0x94   :  { %1215 = vmatmul.mubr.bf16.gmra.mxu1 %v287_v34  ;;  %1347 = vmatprep.subr.bf16.mxu0 %v2518_v35  ;;  %v185_v34 = vld [vmem:[#allocation2 + $0x3d0] sm:$0xff]  ;;  %v191_v35 = vld [vmem:[#allocation2 + $0x400] sm:$0xff] }
  0x95   :  { %1224 = vmatprep.mubr.bf16.mxu1 %v294_v36  ;;  %v315_v36 = vpack.c.bf16 %v189_v31, %v183_v30  ;;  %v317_v40 = vpack.c.bf16 %v191_v35, %v185_v34  ;;  %v2535_v30 = vld [vmem:[#allocation7 + $0x68] sm:$0xff]   ;;  %v74_v35 = vld [vmem:[#allocation2 + $0x58] sm:$0xff] }
  0x96   :  { %v2536_v31 = vld [vmem:[#allocation7 + $0x28] sm:$0xff]  }
  0x97   :  { %1348 = vmatpush2.bf16.msra.mxu0 %v2516_v39  ;;  %v322_v39 = vpack.c.bf16 %v202_v33, %v196_v32  ;;  %v243_v32 = vld [vmem:[#allocation2 + $0x5a0] sm:$0xff]  ;;  %v249_v33 = vld [vmem:[#allocation2 + $0x5d0] sm:$0xff]  ;;  %v68_v34 = vld [vmem:[#allocation2 + $0x28] sm:$0xff] }
  0x98   :  { %1349 = vmatprep.subr.bf16.mxu0 %v2521_v42  ;;  %v2531_v42 = vld [vmem:[#allocation7 + $0x78] sm:$0xff]   ;;  %v345_v38 = vpack.c.bf16 %v249_v33, %v243_v32  ;;  %v163_v33 = vld [vmem:[#allocation2 + $0x320] sm:$0xff] }
  0x99   :  { %2265 = vmatprep.subr.bf16.mxu1 %v2531_v42  ;;  %v73_v42 = vld [vmem:[#allocation2 + $0x50] sm:$0xff] }
  0x9a   :  { %1032 = vmatmul.mubr.bf16.gmra.mxu0 %v291_v45  ;;  %v201_v45 = vld [vmem:[#allocation2 + $0x450] sm:$0xff]  ;;  %2266 = vmatpush3.bf16.msra.mxu1 %v2532_v43  ;;  %v80_v43 = vld [vmem:[#allocation2 + $0x88] sm:$0xff] }
  0x9b   :  { %1041 = vmatprep.mubr.bf16.mxu0 %v298_v48  ;;  %1350 = vmatpush2.bf16.msra.mxu0 %v2519_v49  ;;  %v197_v48 = vld [vmem:[#allocation2 + $0x430] sm:$0xff]  ;;  %v203_v49 = vld [vmem:[#allocation2 + $0x460] sm:$0xff] }
  0x9c   :  { %1225 = vmatmul.mubr.bf16.gmra.mxu1 %v293_v50  ;;  %1351 = vmatprep.subr.bf16.mxu0 %v2524_v51  ;;  %v321_v50 = vpack.c.bf16 %v201_v45, %v195_v44  ;;  %v210_v51 = vld [vmem:[#allocation2 + $0x498] sm:$0xff]  ;;  %v323_v54 = vpack.c.bf16 %v203_v49, %v197_v48  ;;  %v2538_v48 = vld [vmem:[#allocation7 + $0x20] sm:$0xff]  }
  0x9d   :  { %1234 = vmatprep.mubr.bf16.mxu1 %v300_v52  ;;  %v216_v52 = vld [vmem:[#allocation2 + $0x4c8] sm:$0xff]  ;;  %2267 = vmatprep.subr.bf16.mxu1 %v2533_v4  ;;  %v86_v44 = vld [vmem:[#allocation2 + $0xb8] sm:$0xff]  ;;  %v79_v49 = vld [vmem:[#allocation2 + $0x80] sm:$0xff] }
  0x9e   :  { %v330_v55 = vpack.c.bf16 %v216_v52, %v210_v51  ;;  %2268 = vmatpush3.bf16.msra.mxu1 %v2534_v5  ;;  %v266_v46 = vpack.c.bf16 %v86_v44, %v80_v43  ;;  %v92_v51 = vld [vmem:[#allocation2 + $0xe8] sm:$0xff]  ;;  %v98_v52 = vld [vmem:[#allocation2 + $0x118] sm:$0xff]  ;;  %v115_v5 = vld [vmem:[#allocation2 + $0x1a0] sm:$0xff] }
  0x9f   :  { %1352 = vmatpush2.bf16.msra.mxu0 %v2522_v59  ;;  %v226_v59 = vld [vmem:[#allocation2 + $0x518] sm:$0xff]  ;;  %2269 = vmatprep.subr.bf16.mxu1 %v2535_v30  ;;  %v181_v43 = vld [vmem:[#allocation2 + $0x3b0] sm:$0xff] }
  0xa0   :  { %1353 = vmatprep.subr.bf16.mxu0 %v2527_v62  ;;  %v327_v62 = vpack.c.bf16 %v213_v57, %v207_v56  ;;  %v97_v56 = vld [vmem:[#allocation2 + $0x110] sm:$0xff]  ;;  %v104_v57 = vld [vmem:[#allocation2 + $0x148] sm:$0xff]  ;;  %v170_v30 = vld [vmem:[#allocation2 + $0x358] sm:$0xff] }
  0xa2   :  { %1042 = vmatmul.mubr.bf16.gmra.mxu0 %v297_v0  ;;  %v228_v0 = vld [vmem:[#allocation2 + $0x528] sm:$0xff]  ;;  %2270 = vmatpush3.bf16.msra.mxu1 %v2536_v31 }
  0xa3   :  { %1051 = vmatprep.mubr.bf16.mxu0 %v304_v2  ;;  %1354 = vmatpush2.bf16.msra.mxu0 %v2525_v63  ;;  %v222_v63 = vld [vmem:[#allocation2 + $0x4f8] sm:$0xff]  ;;  %v329_v2 = vpack.c.bf16 %v215_v61, %v209_v60 }
  0xa4   :  { %1235 = vmatmul.mubr.bf16.gmra.mxu1 %v299_v3  ;;  %1355 = vmatprep.subr.bf16.mxu0 %v2530_v1  ;;  %v334_v1 = vpack.c.bf16 %v226_v59, %v220_v58  ;;  %v336_v3 = vpack.c.bf16 %v228_v0, %v222_v63  ;;  %v110_v58 = vld [vmem:[#allocation2 + $0x178] sm:$0xff]  ;;  %v103_v63 = vld [vmem:[#allocation2 + $0x140] sm:$0xff]  ;;  %v109_v0 = vld [vmem:[#allocation2 + $0x170] sm:$0xff] }
  0xa5   :  { %1244 = vmatprep.mubr.bf16.mxu1 %v306_v6  ;;  %v219_v6 = vld [vmem:[#allocation2 + $0x4e0] sm:$0xff]  ;;  %2271 = vmatprep.subr.bf16.mxu1 %v2537_v47  ;;  %v278_v60 = vpack.c.bf16 %v110_v58, %v104_v57  ;;  %v2539_v61 = vld [vmem:[#allocation7 + $0x58] sm:$0xff]  }
  0xa6   :  { %v333_v12 = vpack.c.bf16 %v225_v7, %v219_v6  ;;  %2272 = vmatpush3.bf16.msra.mxu1 %v2538_v48  ;;  %v121_v6 = vld [vmem:[#allocation2 + $0x1d0] sm:$0xff]  ;;  %v128_v7 = vld [vmem:[#allocation2 + $0x208] sm:$0xff]  ;;  %v194_v47 = vld [vmem:[#allocation2 + $0x418] sm:$0xff] }
  0xa7   :  { %1356 = vmatpush2.bf16.msra.mxu0 %v2528_v11  ;;  %v227_v11 = vld [vmem:[#allocation2 + $0x520] sm:$0xff]  ;;  %2273 = vmatprep.subr.bf16.mxu1 %v2539_v61 }
  0xaa   :  { %1052 = vmatmul.mubr.bf16.gmra.mxu0 %v303_v14  ;;  %v240_v14 = vld [vmem:[#allocation2 + $0x588] sm:$0xff] }
  0xab   :  { %1061 = vmatprep.mubr.bf16.mxu0 %v310_v15  ;;  %v340_v15 = vpack.c.bf16 %v238_v9, %v232_v8  ;;  %v134_v8 = vld [vmem:[#allocation2 + $0x238] sm:$0xff]  ;;  %v283_v9 = vpack.c.bf16 %v121_v6, %v115_v5 }
  0xac   :  { %1245 = vmatmul.mubr.bf16.gmra.mxu1 %v305_v16  ;;  %v335_v16 = vpack.c.bf16 %v227_v11, %v221_v10  ;;  %v290_v10 = vpack.c.bf16 %v134_v8, %v128_v7  ;;  %v2541_v11 = vld [vmem:[#allocation7 + $0x50] sm:$0xff]   ;;  %v212_v7 = vld [vmem:[#allocation2 + $0x4a8] sm:$0xff]  ;;  %v218_v8 = vld [vmem:[#allocation2 + $0x4d8] sm:$0xff] }
  0xad   :  { %1254 = vmatprep.mubr.bf16.mxu1 %v312_v17  ;;  %v342_v17 = vpack.c.bf16 %v240_v14, %v234_v13  ;;  %v127_v13 = vld [vmem:[#allocation2 + $0x200] sm:$0xff]  ;;  %v133_v14 = vld [vmem:[#allocation2 + $0x230] sm:$0xff] }
  0xb2   :  { %1062 = vmatmul.mubr.bf16.gmra.mxu0 %v309_v24  ;;  %v339_v24 = vpack.c.bf16 %v237_v19, %v231_v18  ;;  %v139_v19 = vld [vmem:[#allocation2 + $0x260] sm:$0xff] }
  0xb3   :  { %1071 = vmatprep.mubr.bf16.mxu0 %v316_v27  ;;  %v346_v27 = vpack.c.bf16 %v250_v21, %v244_v20  ;;  %v145_v20 = vld [vmem:[#allocation2 + $0x290] sm:$0xff]  ;;  %v152_v21 = vld [vmem:[#allocation2 + $0x2c8] sm:$0xff] }
  0xb4   :  { %1255 = vmatmul.mubr.bf16.gmra.mxu1 %v311_v28  ;;  %v341_v28 = vpack.c.bf16 %v239_v23, %v233_v22  ;;  %v158_v22 = vld [vmem:[#allocation2 + $0x2f8] sm:$0xff]  ;;  %v295_v23 = vpack.c.bf16 %v145_v20, %v139_v19  ;;  %v224_v19 = vld [vmem:[#allocation2 + $0x508] sm:$0xff] }
  0xb5   :  { %1264 = vmatprep.mubr.bf16.mxu1 %v318_v29  ;;  %v348_v29 = vpack.c.bf16 %v252_v26, %v246_v25  ;;  %v2543_v25 = vld [vmem:[#allocation7 + $0x48] sm:$0xff]   ;;  %v230_v20 = vld [vmem:[#allocation2 + $0x538] sm:$0xff] }
  0xb6   :  { %v2544_v26 = vld [vmem:[#allocation7 + $0x8] sm:$0xff]  }
  0xba   :  { %1072 = vmatmul.mubr.bf16.gmra.mxu0 %v315_v36  ;;  %v245_v36 = vld [vmem:[#allocation2 + $0x5b0] sm:$0xff] }
  0xbb   :  { %1081 = vmatprep.mubr.bf16.mxu0 %v322_v39  ;;  %v260_v39 = vpack.c.bf16 %v74_v35, %v68_v34  ;;  %v169_v34 = vld [vmem:[#allocation2 + $0x350] sm:$0xff]  ;;  %v176_v35 = vld [vmem:[#allocation2 + $0x388] sm:$0xff] }
  0xbc   :  { %1265 = vmatmul.mubr.bf16.gmra.mxu1 %v317_v40  ;;  %v347_v40 = vpack.c.bf16 %v251_v37, %v245_v36  ;;  %v182_v36 = vld [vmem:[#allocation2 + $0x3b8] sm:$0xff]  ;;  %v307_v37 = vpack.c.bf16 %v169_v34, %v163_v33 }
  0xbd   :  { %1274 = vmatprep.mubr.bf16.mxu1 %v324_v41  ;;  %v67_v41 = vld [vmem:[#allocation2 + $0x20] sm:$0xff] }
  0xbe   :  { %v259_v45 = vpack.c.bf16 %v73_v42, %v67_v41  ;;  %v175_v42 = vld [vmem:[#allocation2 + $0x380] sm:$0xff] }
  0xc2   :  { %1082 = vmatmul.mubr.bf16.gmra.mxu0 %v321_v50  ;;  %v85_v50 = vld [vmem:[#allocation2 + $0xb0] sm:$0xff] }
  0xc3   :  { %1091 = vmatprep.mubr.bf16.mxu0 %v328_v53  ;;  %v265_v53 = vpack.c.bf16 %v85_v50, %v79_v49  ;;  %v313_v50 = vpack.c.bf16 %v181_v43, %v175_v42 }
  0xc4   :  { %1275 = vmatmul.mubr.bf16.gmra.mxu1 %v323_v54  ;;  %v272_v54 = vpack.c.bf16 %v98_v52, %v92_v51 }
  0xc5   :  { %1284 = vmatprep.mubr.bf16.mxu1 %v330_v55  ;;  %v91_v55 = vld [vmem:[#allocation2 + $0xe0] sm:$0xff] }
  0xc6   :  { %v271_v59 = vpack.c.bf16 %v97_v56, %v91_v55  ;;  %v187_v55 = vld [vmem:[#allocation2 + $0x3e0] sm:$0xff]  ;;  %v193_v56 = vld [vmem:[#allocation2 + $0x410] sm:$0xff] }
  0xca   :  { %1092 = vmatmul.mubr.bf16.gmra.mxu0 %v327_v62  ;;  %v2540_v62 = vld [vmem:[#allocation7 + $0x18] sm:$0xff]  }
  0xcb   :  { %1101 = vmatprep.mubr.bf16.mxu0 %v334_v1  ;;  %v116_v1 = vld [vmem:[#allocation2 + $0x1a8] sm:$0xff]  ;;  %2274 = vmatpush3.bf16.msra.mxu1 %v2540_v62  ;;  %v319_v62 = vpack.c.bf16 %v193_v56, %v187_v55 }
  0xcc   :  { %1285 = vmatmul.mubr.bf16.gmra.mxu1 %v329_v2  ;;  %v122_v2 = vld [vmem:[#allocation2 + $0x1d8] sm:$0xff]  ;;  %2275 = vmatprep.subr.bf16.mxu1 %v2541_v11  ;;  %v332_v11 = vpack.c.bf16 %v218_v8, %v212_v7 }
  0xcd   :  { %1294 = vmatprep.mubr.bf16.mxu1 %v336_v3  ;;  %v277_v3 = vpack.c.bf16 %v109_v0, %v103_v63  ;;  %v284_v4 = vpack.c.bf16 %v122_v2, %v116_v1 }
  0xd2   :  { %1102 = vmatmul.mubr.bf16.gmra.mxu0 %v333_v12  ;;  %v2542_v12 = vld [vmem:[#allocation7 + $0x10] sm:$0xff]  }
  0xd3   :  { %1111 = vmatprep.mubr.bf16.mxu0 %v340_v15  ;;  %v140_v15 = vld [vmem:[#allocation2 + $0x268] sm:$0xff]  ;;  %2276 = vmatpush3.bf16.msra.mxu1 %v2542_v12 }
  0xd4   :  { %1295 = vmatmul.mubr.bf16.gmra.mxu1 %v335_v16  ;;  %v146_v16 = vld [vmem:[#allocation2 + $0x298] sm:$0xff]  ;;  %2277 = vmatprep.subr.bf16.mxu1 %v2543_v25 }
  0xd5   :  { %1304 = vmatprep.mubr.bf16.mxu1 %v342_v17  ;;  %v289_v17 = vpack.c.bf16 %v133_v14, %v127_v13  ;;  %v296_v18 = vpack.c.bf16 %v146_v16, %v140_v15  ;;  %v211_v15 = vld [vmem:[#allocation2 + $0x4a0] sm:$0xff]  ;;  %v217_v16 = vld [vmem:[#allocation2 + $0x4d0] sm:$0xff] }
  0xd7   :  { %2278 = vmatpush3.bf16.msra.mxu1 %v2544_v26 }
  0xda   :  { %1112 = vmatmul.mubr.bf16.gmra.mxu0 %v339_v24  ;;  %v302_v24 = vpack.c.bf16 %v158_v22, %v152_v21  ;;  %v331_v22 = vpack.c.bf16 %v217_v16, %v211_v15 }
  0xdb   :  { %1121 = vmatprep.mubr.bf16.mxu0 %v346_v27  ;;  %v151_v27 = vld [vmem:[#allocation2 + $0x2c0] sm:$0xff] }
  0xdc   :  { %1305 = vmatmul.mubr.bf16.gmra.mxu1 %v341_v28  ;;  %v157_v28 = vld [vmem:[#allocation2 + $0x2f0] sm:$0xff] }
  0xdd   :  { %1314 = vmatprep.mubr.bf16.mxu1 %v348_v29  ;;  %v164_v29 = vld [vmem:[#allocation2 + $0x328] sm:$0xff]  ;;  %v301_v31 = vpack.c.bf16 %v157_v28, %v151_v27  ;;  %v223_v27 = vld [vmem:[#allocation2 + $0x500] sm:$0xff]  ;;  %v229_v28 = vld [vmem:[#allocation2 + $0x530] sm:$0xff] }
  0xde   :  { %v308_v32 = vpack.c.bf16 %v170_v30, %v164_v29  ;;  %v337_v34 = vpack.c.bf16 %v229_v28, %v223_v27 }
  0xe2   :  { %1122 = vmatmul.mubr.bf16.gmra.mxu0 %v345_v38  ;;  %v314_v38 = vpack.c.bf16 %v182_v36, %v176_v35 }
  0xe3   :  { %1357 = vmatprep.mubr.bf16.mxu0 %v260_v39  ;;  %v2545_v39 = vld [vmem:[#allocation7 + $0x40] sm:$0xff]  }
  0xe4   :  { %1315 = vmatmul.mubr.bf16.gmra.mxu1 %v347_v40  ;;  %v2546_v40 = vld [vmem:[#allocation7] sm:$0xff]   ;;  %2279 = vmatprep.subr.bf16.mxu1 %v2545_v39 }
  0xe5   :  { %2280 = vmatpush3.bf16.msra.mxu1 %v2546_v40  ;;  %v235_v39 = vld [vmem:[#allocation2 + $0x560] sm:$0xff]  ;;  %v241_v40 = vld [vmem:[#allocation2 + $0x590] sm:$0xff] }
  0xea   :  { %1358 = vmatmul.mubr.bf16.vlgmr.msra.gmra.mxu0 %v259_v45 }
  0xeb   :  { %1367 = vmatprep.mubr.bf16.mxu0 %v266_v46  ;;  %v188_v46 = vld [vmem:[#allocation2 + $0x3e8] sm:$0xff] }
  0xec   :  { %v320_v51 = vpack.c.bf16 %v194_v47, %v188_v46  ;;  %v248_v46 = vld [vmem:[#allocation2 + $0x5c8] sm:$0xff]  ;;  %v254_v47 = vld [vmem:[#allocation2 + $0x5f8] sm:$0xff] }
  0xed   :  { %v350_v55 = vpack.c.bf16 %v254_v47, %v248_v46 }
  0xf2   :  { %1368 = vmatmul.mubr.bf16.gmra.mxu0 %v265_v53 }
  0xf3   :  { %1377 = vmatprep.mubr.bf16.mxu0 %v272_v54 }
  0xfa   :  { %1378 = vmatmul.mubr.bf16.gmra.mxu0 %v271_v59  ;;  %v200_v59 = vld [vmem:[#allocation2 + $0x448] sm:$0xff] }
  0xfb   :  { %1387 = vmatprep.mubr.bf16.mxu0 %v278_v60  ;;  %v206_v60 = vld [vmem:[#allocation2 + $0x478] sm:$0xff] }
  0xfc   :  { %v326_v63 = vpack.c.bf16 %v206_v60, %v200_v59 }
 0x102   :  { %1388 = vmatmul.mubr.bf16.gmra.mxu0 %v277_v3  ;;  %v199_v3 = vld [vmem:[#allocation2 + $0x440] sm:$0xff] }
 0x103   :  { %1397 = vmatprep.mubr.bf16.mxu0 %v284_v4  ;;  %v205_v4 = vld [vmem:[#allocation2 + $0x470] sm:$0xff] }
 0x10a   :  { %1398 = vmatmul.mubr.bf16.gmra.mxu0 %v283_v9 }
 0x10b   :  { %1407 = vmatprep.mubr.bf16.mxu0 %v290_v10  ;;  %v325_v10 = vpack.c.bf16 %v205_v4, %v199_v3 }
 0x112   :  { %1408 = vmatmul.mubr.bf16.gmra.mxu0 %v289_v17 }
 0x113   :  { %1417 = vmatprep.mubr.bf16.mxu0 %v296_v18 }
 0x11a   :  { %1418 = vmatmul.mubr.bf16.gmra.mxu0 %v295_v23  ;;  %v338_v23 = vpack.c.bf16 %v230_v20, %v224_v19 }
 0x11b   :  { %1427 = vmatprep.mubr.bf16.mxu0 %v302_v24 }
 0x122   :  { %1428 = vmatmul.mubr.bf16.gmra.mxu0 %v301_v31  ;;  %v236_v31 = vld [vmem:[#allocation2 + $0x568] sm:$0xff] }
 0x123   :  { %1437 = vmatprep.mubr.bf16.mxu0 %v308_v32  ;;  %v242_v32 = vld [vmem:[#allocation2 + $0x598] sm:$0xff] }
 0x124   :  { %v344_v35 = vpack.c.bf16 %v242_v32, %v236_v31 }
 0x12a   :  { %v2749_v41 = vpop.f32.mrf.mxu0  ;;  %1438 = vmatmul.mubr.bf16.gmra.mxu0 %v307_v37 }
 0x12b   :  { %1447 = vmatprep.mubr.bf16.mxu0 %v314_v38 }
 0x12c   :  { %v2751_v44 = vpop.f32.mrf.mxu0  ;;  %v2753_v45 = vpop.f32.mrf.mxu1 }
 0x12e   :  { %v2755_v48 = vpop.f32.mrf.mxu0  ;;  %v2757_v49 = vpop.f32.mrf.mxu1 }
 0x130   :  { %v2759_v52 = vpop.f32.mrf.mxu0  ;;  %v2761_v53 = vpop.f32.mrf.mxu1 }
 0x132   :  { %v2763_v54 = vpop.f32.mrf.mxu0  ;;  %1448 = vmatmul.mubr.bf16.gmra.mxu0 %v313_v50  ;;  %v2765_v57 = vpop.f32.mrf.mxu1 }
 0x133   :  { %1457 = vmatprep.mubr.bf16.mxu0 %v320_v51  ;;  %v343_v51 = vpack.c.bf16 %v241_v40, %v235_v39 }
 0x134   :  { %v2767_v58 = vpop.f32.mrf.mxu0  ;;  %v2771_v0 = vpop.f32.mrf.mxu1 }
 0x136   :  { %v2769_v61 = vpop.f32.mrf.mxu0  ;;  %v2777_v5 = vpop.f32.mrf.mxu1 }
 0x138   :  { %v2773_v1 = vpop.f32.mrf.mxu0  ;;  %v2783_v12 = vpop.f32.mrf.mxu1 }
 0x13a   :  { %v2775_v2 = vpop.f32.mrf.mxu0  ;;  %1458 = vmatmul.mubr.bf16.gmra.mxu0 %v319_v62  ;;  %v2789_v17 = vpop.f32.mrf.mxu1  ;;  %v247_v62 = vld [vmem:[#allocation2 + $0x5c0] sm:$0xff] }
 0x13b   :  { %1467 = vmatprep.mubr.bf16.mxu0 %v326_v63  ;;  %v253_v63 = vld [vmem:[#allocation2 + $0x5f0] sm:$0xff] }
 0x13c   :  { %v2779_v6 = vpop.f32.mrf.mxu0  ;;  %v2795_v24 = vpop.f32.mrf.mxu1  ;;  %v349_v8 = vpack.c.bf16 %v253_v63, %v247_v62 }
 0x13e   :  { %v2781_v9 = vpop.f32.mrf.mxu0  ;;  %v2801_v29 = vpop.f32.mrf.mxu1 }
 0x140   :  { %v2785_v13 = vpop.f32.mrf.mxu0  ;;  %v2807_v36 = vpop.f32.mrf.mxu1 }
 0x142   :  { %v2787_v14 = vpop.f32.mrf.mxu0  ;;  %1468 = vmatmul.mubr.bf16.gmra.mxu0 %v325_v10  ;;  %v2813_v42 = vpop.f32.mrf.mxu1 }
 0x143   :  { %1477 = vmatprep.mubr.bf16.mxu0 %v332_v11 }
 0x144   :  { %v2791_v18 = vpop.f32.mrf.mxu0  ;;  %v2819_v56 = vpop.f32.mrf.mxu1 }
 0x146   :  { %v2793_v21 = vpop.f32.mrf.mxu0  ;;  %v2825_v3 = vpop.f32.mrf.mxu1 }
 0x148   :  { %v2797_v25 = vpop.f32.mrf.mxu0  ;;  %v2831_v10 = vpop.f32.mrf.mxu1 }
 0x14a   :  { %v2799_v26 = vpop.f32.mrf.mxu0  ;;  %1478 = vmatmul.mubr.bf16.gmra.mxu0 %v331_v22  ;;  %v2837_v16 = vpop.f32.mrf.mxu1 }
 0x14b   :  { %1487 = vmatprep.mubr.bf16.mxu0 %v338_v23 }
 0x14c   :  { %v2803_v30 = vpop.f32.mrf.mxu0  ;;  %v2843_v22 = vpop.f32.mrf.mxu1 }
 0x14e   :  { %v2805_v33 = vpop.f32.mrf.mxu0  ;;  %v2849_v28 = vpop.f32.mrf.mxu1 }
 0x150   :  { %v2809_v37 = vpop.f32.mrf.mxu0 }
 0x152   :  { %v2811_v38 = vpop.f32.mrf.mxu0  ;;  %1488 = vmatmul.mubr.bf16.gmra.mxu0 %v337_v34  ;;  %v2855_v34 = vpop.f32.mrf.mxu1 }
 0x153   :  { %1497 = vmatprep.mubr.bf16.mxu0 %v344_v35 }
 0x154   :  { %v2815_v43 = vpop.f32.mrf.mxu0  ;;  %v2861_v40 = vpop.f32.mrf.mxu1 }
 0x156   :  { %v2817_v50 = vpop.f32.mrf.mxu0 }
 0x158   :  { %v2821_v59 = vpop.f32.mrf.mxu0 }
 0x15a   :  { %v2823_v60 = vpop.f32.mrf.mxu0  ;;  %1498 = vmatmul.mubr.bf16.gmra.mxu0 %v343_v51  ;;  %v2867_v51 = vpop.f32.mrf.mxu1 }
 0x15b   :  { %1507 = vmatprep.mubr.bf16.mxu0 %v350_v55 }
 0x15c   :  { %v2827_v4 = vpop.f32.mrf.mxu0  ;;  %v2873_v63 = vpop.f32.mrf.mxu1 }
 0x15d   :  { %3386 = vst [vmem:[#allocation12_spill] sm:$0xff] %v2827_v4 }
 0x15e   :  { %v2829_v7 = vpop.f32.mrf.mxu0 }
 0x15f   :  { %3387 = vst [vmem:[#allocation13_spill] sm:$0xff] %v2829_v7 }
 0x160   :  { %v2833_v11 = vpop.f32.mrf.mxu0 }
 0x161   :  { %3388 = vst [vmem:[#allocation14_spill] sm:$0xff] %v2833_v11 }
 0x162   :  { %v2835_v15 = vpop.f32.mrf.mxu0  ;;  %1508 = vmatmul.mubr.bf16.gmra.mxu0 %v349_v8 }
 0x163   :  { %3389 = vst [vmem:[#allocation15_spill] sm:$0xff] %v2835_v15 }
 0x164   :  { %v2839_v19 = vpop.f32.mrf.mxu0 }
 0x165   :  { %3390 = vst [vmem:[#allocation16_spill] sm:$0xff] %v2839_v19 }
 0x166   :  { %v2841_v20 = vpop.f32.mrf.mxu0 }
 0x167   :  { %3391 = vst [vmem:[#allocation17_spill] sm:$0xff] %v2841_v20 }
 0x168   :  { %v2845_v23 = vpop.f32.mrf.mxu0 }
 0x169   :  { %3392 = vst [vmem:[#allocation18_spill] sm:$0xff] %v2845_v23 }
 0x16a   :  { %v2847_v27 = vpop.f32.mrf.mxu0 }
 0x16b   :  { %3393 = vst [vmem:[#allocation19_spill] sm:$0xff] %v2847_v27 }
 0x16c   :  { %v2851_v31 = vpop.f32.mrf.mxu0 }
 0x16d   :  { %3394 = vst [vmem:[#allocation20_spill] sm:$0xff] %v2851_v31 }
 0x16e   :  { %v2853_v32 = vpop.f32.mrf.mxu0 }
 0x16f   :  { %3395 = vst [vmem:[#allocation21_spill] sm:$0xff] %v2853_v32 }
 0x170   :  { %v2857_v35 = vpop.f32.mrf.mxu0 }
 0x171   :  { %3396 = vst [vmem:[#allocation22_spill] sm:$0xff] %v2857_v35  ;;  %v2879_v35 = vpop.f32.mrf.mxu1 }
 0x172   :  { %v2859_v39 = vpop.f32.mrf.mxu0 }
 0x173   :  { %3397 = vst [vmem:[#allocation23_spill] sm:$0xff] %v2859_v39 }
 0x174   :  { %v2863_v46 = vpop.f32.mrf.mxu0 }
 0x175   :  { %3398 = vst [vmem:[#allocation24_spill] sm:$0xff] %v2863_v46  ;;  %v2885_v46 = vpop.f32.mrf.mxu1 }
 0x176   :  { %v2865_v47 = vpop.f32.mrf.mxu0 }
 0x177   :  { %3399 = vst [vmem:[#allocation25_spill] sm:$0xff] %v2865_v47 }
 0x178   :  { %v2869_v55 = vpop.f32.mrf.mxu0 }
 0x179   :  { %3400 = vst [vmem:[#allocation26_spill] sm:$0xff] %v2869_v55  ;;  %v2891_v55 = vpop.f32.mrf.mxu1 }
 0x17a   :  { %v2871_v62 = vpop.f32.mrf.mxu0  ;;  %3408 = vst [vmem:[#allocation34_spill] sm:$0xff] %v2891_v55 }
 0x17b   :  { %3401 = vst [vmem:[#allocation27_spill] sm:$0xff] %v2871_v62 }
 0x17c   :  { %v2875_v8 = vpop.f32.mrf.mxu0 }
 0x17d   :  { %3402 = vst [vmem:[#allocation28_spill] sm:$0xff] %v2875_v8  ;;  %v2897_v8 = vpop.f32.mrf.mxu1 }
 0x17e   :  { %v2877_v32 = vpop.f32.mrf.mxu0  ;;  %3411 = vst [vmem:[#allocation37_spill] sm:$0xff] %v2897_v8 }
 0x17f   :  { %3403 = vst [vmem:[#allocation29_spill] sm:$0xff] %v2877_v32 }
 0x180   :  { %v2881_v39 = vpop.f32.mrf.mxu0 }
 0x181   :  { %3404 = vst [vmem:[#allocation30_spill] sm:$0xff] %v2881_v39  ;;  %v2903_v39 = vpop.f32.mrf.mxu1 }
 0x182   :  { %v2883_v31 = vpop.f32.mrf.mxu0  ;;  %3414 = vst [vmem:[#allocation40_spill] sm:$0xff] %v2903_v39 }
 0x183   :  { %3405 = vst [vmem:[#allocation31_spill] sm:$0xff] %v2883_v31 }
 0x184   :  { %v2887_v47 = vpop.f32.mrf.mxu0 }
 0x185   :  { %3406 = vst [vmem:[#allocation32_spill] sm:$0xff] %v2887_v47  ;;  %v2909_v47 = vpop.f32.mrf.mxu1 }
 0x186   :  { %v2889_v27 = vpop.f32.mrf.mxu0  ;;  %3417 = vst [vmem:[#allocation43_spill] sm:$0xff] %v2909_v47 }
 0x187   :  { %3407 = vst [vmem:[#allocation33_spill] sm:$0xff] %v2889_v27 }
 0x188   :  { %v2893_v62 = vpop.f32.mrf.mxu0 }
 0x189   :  { %3409 = vst [vmem:[#allocation35_spill] sm:$0xff] %v2893_v62  ;;  %v449_v62 = vlaneseq }
 0x18a   :  { %v2895_v23 = vpop.f32.mrf.mxu0 }
 0x18b   :  { %3410 = vst [vmem:[#allocation36_spill] sm:$0xff] %v2895_v23  ;;  %v2915_v23 = vpop.f32.mrf.mxu1 }
 0x18c   :  { %v2899_v32 = vpop.f32.mrf.mxu0  ;;  %3420 = vst [vmem:[#allocation46_spill] sm:$0xff] %v2915_v23 }
 0x18d   :  { %3412 = vst [vmem:[#allocation38_spill] sm:$0xff] %v2899_v32  ;;  %v2921_v11 = vpop.f32.mrf.mxu1 }
 0x18e   :  { %v2901_v20 = vpop.f32.mrf.mxu0  ;;  %3423 = vst [vmem:[#allocation49_spill] sm:$0xff] %v2921_v11 }
 0x18f   :  { %3413 = vst [vmem:[#allocation39_spill] sm:$0xff] %v2901_v20  ;;  %v450_v20 = vshrl.u32 %v449_v62, 7 }
 0x190   :  { %v2905_v31 = vpop.f32.mrf.mxu0 }
 0x191   :  { %3415 = vst [vmem:[#allocation41_spill] sm:$0xff] %v2905_v31  ;;  %v455_v23 = vsub.s32 1, %v450_v20 }
 0x192   :  { %v2907_v19 = vpop.f32.mrf.mxu0 }
 0x193   :  { %3416 = vst [vmem:[#allocation42_spill] sm:$0xff] %v2907_v19  ;;  %v451_v19 = vsub.s32 0, %v450_v20 }
 0x194   :  { %v2911_v27 = vpop.f32.mrf.mxu0 }
 0x195   :  { %3418 = vst [vmem:[#allocation44_spill] sm:$0xff] %v2911_v27  ;;  %v447_v27 = vld [vmem:[%s3382_s2] sm:$0x3] }
 0x196   :  { %v2913_v15 = vpop.f32.mrf.mxu0 }
 0x197   :  { %3419 = vst [vmem:[#allocation45_spill] sm:$0xff] %v2913_v15  ;;  %v2930_v15 = vpop.f32.mrf.mxu1 }
 0x198   :  { %v2917_v8 = vpop.f32.mrf.mxu0  ;;  %3426 = vst [vmem:[#allocation52_spill] sm:$0xff] %v2930_v15 }
 0x199   :  { %3421 = vst [vmem:[#allocation47_spill] sm:$0xff] %v2917_v8  ;;  %v2938_v62 = vpop.f32.mrf.mxu1 }
 0x19a   :  { %v2919_v32 = vpop.f32.mrf.mxu0  ;;  %3429 = vst [vmem:[#allocation55_spill] sm:$0xff] %v2938_v62 }
 0x19b   :  { %3422 = vst [vmem:[#allocation48_spill] sm:$0xff] %v2919_v32  ;;  %v2936_v32 = vrot.slane %v447_v27, %v451_v19  ;;  %v2948_v7 = vpop.f32.mrf.mxu1 }
 0x19c   :  { %v2923_v39 = vpop.f32.mrf.mxu0  ;;  %3432 = vst [vmem:[#allocation58_spill] sm:$0xff] %v2948_v7 }
 0x19d   :  { %3424 = vst [vmem:[#allocation50_spill] sm:$0xff] %v2923_v39  ;;  %v2942_v39 = vrot.slane %v447_v27, %v455_v23  ;;  %v974_v55 = vadd.f32 %v2749_v41, %v2936_v32  ;;  %v978_v19 = vadd.f32 %v2755_v48, %v2936_v32  ;;  %v2959_v27 = vpop.f32.mrf.mxu1 }
 0x19e   :  { %v2925_v31 = vpop.f32.mrf.mxu0 }
 0x19f   :  { %3425 = vst [vmem:[#allocation51_spill] sm:$0xff] %v2925_v31  ;;  %v976_v20 = vadd.f32 %v2751_v44, %v2942_v39  ;;  %v980_v23 = vadd.f32 %v2759_v52, %v2942_v39  ;;  %v984_v44 = vadd.f32 %v2763_v54, %v2936_v32  ;;  %v2968_v52 = vpop.f32.mrf.mxu1 }
 0x1a0   :  { %v2932_v47 = vpop.f32.mrf.mxu0 }
 0x1a1   :  { %3427 = vst [vmem:[#allocation53_spill] sm:$0xff] %v2932_v47  ;;  %v1169_v41 = vadd.f32 %v2757_v49, %v976_v20  ;;  %v1171_v47 = vadd.f32 %v2761_v53, %v978_v19  ;;  %v1173_v48 = vadd.f32 %v2765_v57, %v980_v23  ;;  %v988_v49 = vadd.f32 %v2769_v61, %v2936_v32  ;;  %v2975_v19 = vpop.f32.mrf.mxu1 }
 0x1a2   :  { %v2934_v8 = vpop.f32.mrf.mxu0  ;;  %v990_v57 = vadd.f32 %v2773_v1, %v2942_v39 }
 0x1a3   :  { %3428 = vst [vmem:[#allocation54_spill] sm:$0xff] %v2934_v8 }
 0x1a4   :  { %v2940_v11 = vpop.f32.mrf.mxu0 }
 0x1a5   :  { %3430 = vst [vmem:[#allocation56_spill] sm:$0xff] %v2940_v11  ;;  %v1167_v11 = vadd.f32 %v2753_v45, %v974_v55  ;;  %v986_v45 = vadd.f32 %v2767_v58, %v2942_v39 }
 0x1a6   :  { %v2944_v31 = vpop.f32.mrf.mxu0 }
 0x1a7   :  { %3431 = vst [vmem:[#allocation57_spill] sm:$0xff] %v2944_v31  ;;  %v1179_v23 = vadd.f32 %v2777_v5, %v986_v45  ;;  %v998_v5 = vadd.f32 %v2781_v9, %v2936_v32 }
 0x1a8   :  { %v2950_v15 = vpop.f32.mrf.mxu0 }
 0x1a9   :  { %3433 = vst [vmem:[#allocation59_spill] sm:$0xff] %v2950_v15 }
 0x1aa   :  { %v1359_v8 = vpop.f32.mrf.mxu0 }
 0x1ab   :  { %v1360_v15 = vadd.f32 %v1359_v8, %v1167_v11  ;;  %v1177_v8 = vadd.f32 %v2771_v0, %v984_v44  ;;  %v1183_v44 = vadd.f32 %v2789_v17, %v990_v57  ;;  %v1000_v17 = vadd.f32 %v2785_v13, %v2942_v39 }
 0x1ac   :  { %v1361_v31 = vpop.f32.mrf.mxu0 }
 0x1ad   :  { %v1362_v62 = vadd.f32 %v1361_v31, %v1169_v41  ;;  %v1518_v20 = vmax.f32 %v1360_v15, 0.0  ;;  %v1181_v41 = vadd.f32 %v2783_v12, %v988_v49 }
 0x1ae   :  { %v1363_v7 = vpop.f32.mrf.mxu0 }
 0x1af   :  { %v1364_v4 = vadd.f32 %v1363_v7, %v1171_v47  ;;  %v1519_v31 = vmax.f32 %v1362_v62, 0.0  ;;  %v996_v62 = vadd.f32 %v2779_v6, %v2942_v39 }
 0x1b0   :  { %v1365_v55 = vpop.f32.mrf.mxu0 }
 0x1b1   :  { %v1520_v53 = vmax.f32 %v1364_v4, 0.0  ;;  %v1366_v11 = vadd.f32 %v1365_v55, %v1173_v48  ;;  %v994_v4 = vadd.f32 %v2775_v2, %v2936_v32  ;;  %v2984_v55 = vpop.f32.mrf.mxu1 }
 0x1b2   :  { %v1369_v54 = vpop.f32.mrf.mxu0 }
 0x1b3   :  { %v1582_v7 = vpack.c.bf16 %v1520_v53, %v1518_v20  ;;  %v1521_v47 = vmax.f32 %v1366_v11, 0.0  ;;  %v1370_v15 = vadd.f32 %v1369_v54, %v1177_v8  ;;  %v1187_v2 = vadd.f32 %v2795_v24, %v994_v4  ;;  %v2991_v6 = vpop.f32.mrf.mxu1 }
 0x1b4   :  { %v1371_v58 = vpop.f32.mrf.mxu0 }
 0x1b5   :  { %v1583_v61 = vpack.c.bf16 %v1521_v47, %v1519_v31  ;;  %v1372_v48 = vadd.f32 %v1371_v58, %v1179_v23  ;;  %v1522_v12 = vmax.f32 %v1370_v15, 0.0  ;;  %v1189_v31 = vadd.f32 %v2801_v29, %v996_v62  ;;  %v3000_v15 = vpop.f32.mrf.mxu1 }
 0x1b6   :  { %v1373_v0 = vpop.f32.mrf.mxu0  ;;  %v1004_v58 = vadd.f32 %v2787_v14, %v2936_v32  ;;  %v1193_v23 = vadd.f32 %v2813_v42, %v1000_v17  ;;  %v1008_v29 = vadd.f32 %v2793_v21, %v2936_v32  ;;  %v1010_v42 = vadd.f32 %v2797_v25, %v2942_v39 }
 0x1b7   :  { %v1374_v1 = vadd.f32 %v1373_v0, %v1181_v41  ;;  %1781 = vmatprep.mubr.bf16.mxu1 %v1583_v61  ;;  %v1523_v11 = vmax.f32 %v1372_v48, 0.0  ;;  %v1006_v61 = vadd.f32 %v2791_v18, %v2942_v39  ;;  %v3007_v18 = vpop.f32.mrf.mxu1 }
 0x1b8   :  { %v1375_v20 = vpop.f32.mrf.mxu0  ;;  %1782 = vmatmul.mubr.bf16.vlgmr.msra.gmra.mxu1 %v1582_v7  ;;  %v1191_v7 = vadd.f32 %v2807_v36, %v998_v5  ;;  %v1197_v14 = vadd.f32 %v2819_v56, %v1004_v58 }
 0x1b9   :  { %v1524_v45 = vmax.f32 %v1374_v1, 0.0  ;;  %v1376_v49 = vadd.f32 %v1375_v20, %v1183_v44 }
 0x1ba   :  { %v1379_v53 = vpop.f32.mrf.mxu0 }
 0x1bb   :  { %v1584_v8 = vpack.c.bf16 %v1524_v45, %v1522_v12  ;;  %v1525_v54 = vmax.f32 %v1376_v49, 0.0  ;;  %v1380_v47 = vadd.f32 %v1379_v53, %v1187_v2  ;;  %v1199_v12 = vadd.f32 %v2825_v3, %v1006_v61 }
 0x1bc   :  { %v1381_v57 = vpop.f32.mrf.mxu0  ;;  %v1201_v45 = vadd.f32 %v2831_v10, %v1008_v29  ;;  %v1014_v2 = vadd.f32 %v2799_v26, %v2936_v32  ;;  %v1203_v53 = vadd.f32 %v2837_v16, %v1010_v42  ;;  %v1018_v3 = vadd.f32 %v2805_v33, %v2936_v32 }
 0x1bd   :  { %v1585_v9 = vpack.c.bf16 %v1525_v54, %v1523_v11  ;;  %v1382_v41 = vadd.f32 %v1381_v57, %v1189_v31  ;;  %v1526_v36 = vmax.f32 %v1380_v47, 0.0  ;;  %v1016_v11 = vadd.f32 %v2803_v30, %v2942_v39 }
 0x1be   :  { %v1383_v24 = vpop.f32.mrf.mxu0  ;;  %v1207_v26 = vadd.f32 %v2843_v22, %v1014_v2  ;;  %v1020_v16 = vadd.f32 %v2809_v37, %v2942_v39  ;;  %v1024_v61 = vadd.f32 %v2811_v38, %v2936_v32 }
 0x1bf   :  { %v1384_v13 = vadd.f32 %v1383_v24, %v1191_v7  ;;  %1789 = vmatprep.mubr.bf16.mxu1 %v1585_v9  ;;  %v1527_v1 = vmax.f32 %v1382_v41, 0.0  ;;  %v1211_v41 = vadd.f32 %v2855_v34, %v1018_v3 }
 0x1c0   :  { %v1385_v4 = vpop.f32.mrf.mxu0  ;;  %1790 = vmatmul.mubr.bf16.gmra.mxu1 %v1584_v8  ;;  %v3016_v8 = vpop.f32.mrf.mxu1  ;;  %v1217_v38 = vadd.f32 %v2867_v51, %v1024_v61 }
 0x1c1   :  { %v1528_v0 = vmax.f32 %v1384_v13, 0.0  ;;  %v1386_v44 = vadd.f32 %v1385_v4, %v1193_v23  ;;  %v1209_v23 = vadd.f32 %v2849_v28, %v1016_v11  ;;  %v1213_v4 = vadd.f32 %v2861_v40, %v1020_v16 }
 0x1c2   :  { %v1389_v48 = vpop.f32.mrf.mxu0  ;;  %v3023_v30 = vpop.f32.mrf.mxu1  ;;  %v1028_v28 = vadd.f32 %v2817_v50, %v2936_v32  ;;  %v1030_v40 = vadd.f32 %v2821_v59, %v2942_v39 }
 0x1c3   :  { %v1586_v62 = vpack.c.bf16 %v1528_v0, %v1526_v36  ;;  %v1529_v20 = vmax.f32 %v1386_v44, 0.0  ;;  %v1390_v49 = vadd.f32 %v1389_v48, %v1197_v14  ;;  %v1026_v36 = vadd.f32 %v2815_v43, %v2942_v39 }
 0x1c4   :  { %v1391_v5 = vpop.f32.mrf.mxu0  ;;  %v3032_v0 = vpop.f32.mrf.mxu1  ;;  %v1223_v2 = vadd.f32 %v2885_v46, %v1030_v40  ;;  %v3437_v46 = vld [vmem:[#allocation14_spill] sm:$0xff] }
 0x1c5   :  { %v1587_v21 = vpack.c.bf16 %v1529_v20, %v1527_v1  ;;  %v1392_v17 = vadd.f32 %v1391_v5, %v1199_v12  ;;  %v1530_v10 = vmax.f32 %v1390_v49, 0.0  ;;  %v1219_v12 = vadd.f32 %v2873_v63, %v1026_v36 }
 0x1c6   :  { %v1393_v56 = vpop.f32.mrf.mxu0  ;;  %v3039_v43 = vpop.f32.mrf.mxu1  ;;  %v1034_v49 = vadd.f32 %v2823_v60, %v2936_v32  ;;  %v3436_v60 = vld [vmem:[#allocation34_spill] sm:$0xff] }
 0x1c7   :  { %v1394_v25 = vadd.f32 %v1393_v56, %v1201_v45  ;;  %1797 = vmatprep.mubr.bf16.mxu1 %v1587_v21  ;;  %v1531_v9 = vmax.f32 %v1392_v17, 0.0  ;;  %v1221_v45 = vadd.f32 %v2879_v35, %v1028_v28  ;;  %v3435_v35 = vld [vmem:[#allocation13_spill] sm:$0xff] }
 0x1c8   :  { %v1395_v54 = vpop.f32.mrf.mxu0  ;;  %1798 = vmatmul.mubr.bf16.gmra.mxu1 %v1586_v62  ;;  %v1038_v63 = vadd.f32 %v3435_v35, %v2936_v32 }
 0x1c9   :  { %v1532_v57 = vmax.f32 %v1394_v25, 0.0  ;;  %v1396_v31 = vadd.f32 %v1395_v54, %v1203_v53  ;;  %v3434_v53 = vld [vmem:[#allocation12_spill] sm:$0xff]  ;;  %v3048_v25 = vpop.f32.mrf.mxu1 }
 0x1ca   :  { %v1399_v7 = vpop.f32.mrf.mxu0  ;;  %v1036_v17 = vadd.f32 %v3434_v53, %v2942_v39  ;;  %v3446_v53 = vld [vmem:[#allocation49_spill] sm:$0xff] }
 0x1cb   :  { %v1588_v47 = vpack.c.bf16 %v1532_v57, %v1530_v10  ;;  %v1533_v58 = vmax.f32 %v1396_v31, 0.0  ;;  %v1400_v13 = vadd.f32 %v1399_v7, %v1207_v26  ;;  %v1227_v57 = vadd.f32 %v3436_v60, %v1034_v49 }
 0x1cc   :  { %v1401_v24 = vpop.f32.mrf.mxu0  ;;  %v1040_v26 = vadd.f32 %v3437_v46, %v2942_v39 }
 0x1cd   :  { %v1589_v33 = vpack.c.bf16 %v1533_v58, %v1531_v9  ;;  %v1402_v29 = vadd.f32 %v1401_v24, %v1209_v23  ;;  %v1534_v34 = vmax.f32 %v1400_v13, 0.0  ;;  %v3438_v24 = vld [vmem:[#allocation37_spill] sm:$0xff] }
 0x1ce   :  { %v1403_v22 = vpop.f32.mrf.mxu0  ;;  %v1229_v23 = vadd.f32 %v3438_v24, %v1036_v17  ;;  %v3451_v24 = vld [vmem:[#allocation21_spill] sm:$0xff] }
 0x1cf   :  { %v1404_v37 = vadd.f32 %v1403_v22, %v1211_v41  ;;  %1805 = vmatprep.mubr.bf16.mxu1 %v1589_v33  ;;  %v1535_v1 = vmax.f32 %v1402_v29, 0.0  ;;  %v3439_v41 = vld [vmem:[#allocation40_spill] sm:$0xff]  ;;  %v3440_v22 = vld [vmem:[#allocation15_spill] sm:$0xff] }
 0x1d0   :  { %v1405_v44 = vpop.f32.mrf.mxu0  ;;  %1806 = vmatmul.mubr.bf16.gmra.mxu1 %v1588_v47  ;;  %v3055_v47 = vpop.f32.mrf.mxu1  ;;  %v1231_v33 = vadd.f32 %v3439_v41, %v1038_v63 }
 0x1d1   :  { %v1536_v14 = vmax.f32 %v1404_v37, 0.0  ;;  %v1406_v48 = vadd.f32 %v1405_v44, %v1213_v4  ;;  %v1044_v4 = vadd.f32 %v3440_v22, %v2936_v32  ;;  %v3441_v37 = vld [vmem:[#allocation43_spill] sm:$0xff] }
 0x1d2   :  { %v1409_v42 = vpop.f32.mrf.mxu0  ;;  %v1233_v36 = vadd.f32 %v3441_v37, %v1040_v26 }
 0x1d3   :  { %v1590_v62 = vpack.c.bf16 %v1536_v14, %v1534_v34  ;;  %v1537_v20 = vmax.f32 %v1406_v48, 0.0  ;;  %v1410_v21 = vadd.f32 %v1409_v42, %v1217_v38  ;;  %v3442_v34 = vld [vmem:[#allocation16_spill] sm:$0xff]  ;;  %v3064_v48 = vpop.f32.mrf.mxu1  ;;  %v3443_v42 = vld [vmem:[#allocation17_spill] sm:$0xff] }
 0x1d4   :  { %v1411_v5 = vpop.f32.mrf.mxu0  ;;  %v1046_v14 = vadd.f32 %v3442_v34, %v2942_v39  ;;  %v1048_v40 = vadd.f32 %v3443_v42, %v2936_v32 }
 0x1d5   :  { %v1591_v50 = vpack.c.bf16 %v1537_v20, %v1535_v1  ;;  %v1412_v56 = vadd.f32 %v1411_v5, %v1219_v12  ;;  %v1538_v54 = vmax.f32 %v1410_v21, 0.0  ;;  %v3444_v5 = vld [vmem:[#allocation46_spill] sm:$0xff] }
 0x1d6   :  { %v1413_v51 = vpop.f32.mrf.mxu0  ;;  %v1237_v12 = vadd.f32 %v3444_v5, %v1044_v4  ;;  %v1239_v17 = vadd.f32 %v3446_v53, %v1046_v14 }
 0x1d7   :  { %v1414_v59 = vadd.f32 %v1413_v51, %v1221_v45  ;;  %1813 = vmatprep.mubr.bf16.mxu1 %v1591_v50  ;;  %v1539_v7 = vmax.f32 %v1412_v56, 0.0  ;;  %v3445_v50 = vld [vmem:[#allocation18_spill] sm:$0xff]  ;;  %v3071_v56 = vpop.f32.mrf.mxu1 }
 0x1d8   :  { %v1415_v11 = vpop.f32.mrf.mxu0  ;;  %1814 = vmatmul.mubr.bf16.gmra.mxu1 %v1590_v62  ;;  %v1050_v21 = vadd.f32 %v3445_v50, %v2942_v39 }
 0x1d9   :  { %v1540_v3 = vmax.f32 %v1414_v59, 0.0  ;;  %v1416_v10 = vadd.f32 %v1415_v11, %v1223_v2  ;;  %v3447_v11 = vld [vmem:[#allocation52_spill] sm:$0xff] }
 0x1da   :  { %v1419_v31 = vpop.f32.mrf.mxu0  ;;  %v1241_v35 = vadd.f32 %v3447_v11, %v1048_v40 }
 0x1db   :  { %v1592_v16 = vpack.c.bf16 %v1540_v3, %v1538_v54  ;;  %v1541_v9 = vmax.f32 %v1416_v10, 0.0  ;;  %v1420_v61 = vadd.f32 %v1419_v31, %v1227_v57  ;;  %v3448_v3 = vld [vmem:[#allocation19_spill] sm:$0xff] }
 0x1dc   :  { %v1421_v58 = vpop.f32.mrf.mxu0  ;;  %v1054_v10 = vadd.f32 %v3448_v3, %v2936_v32  ;;  %v3449_v57 = vld [vmem:[#allocation55_spill] sm:$0xff] }
 0x1dd   :  { %v1593_v13 = vpack.c.bf16 %v1541_v9, %v1539_v7  ;;  %v1422_v44 = vadd.f32 %v1421_v58, %v1229_v23  ;;  %v1542_v1 = vmax.f32 %v1420_v61, 0.0  ;;  %v1243_v31 = vadd.f32 %v3449_v57, %v1050_v21  ;;  %v3450_v7 = vld [vmem:[#allocation20_spill] sm:$0xff]  ;;  %v3080_v9 = vpop.f32.mrf.mxu1  ;;  %v3452_v61 = vld [vmem:[#allocation58_spill] sm:$0xff] }
 0x1de   :  { %v1423_v29 = vpop.f32.mrf.mxu0  ;;  %v1058_v23 = vadd.f32 %v3451_v24, %v2936_v32  ;;  %v1247_v22 = vadd.f32 %v3452_v61, %v1054_v10  ;;  %v3455_v21 = vld [vmem:[#allocation24_spill] sm:$0xff] }
 0x1df   :  { %v1424_v28 = vadd.f32 %v1423_v29, %v1231_v33  ;;  %1821 = vmatprep.mubr.bf16.mxu1 %v1593_v13  ;;  %v1543_v49 = vmax.f32 %v1422_v44, 0.0  ;;  %v3453_v29 = vld [vmem:[#allocation22_spill] sm:$0xff]  ;;  %v3087_v34 = vpop.f32.mrf.mxu1 }
 0x1e0   :  { %v1425_v38 = vpop.f32.mrf.mxu0  ;;  %1822 = vmatmul.mubr.bf16.gmra.mxu1 %v1592_v16  ;;  %v1056_v16 = vadd.f32 %v3450_v7, %v2942_v39  ;;  %v1060_v37 = vadd.f32 %v3453_v29, %v2942_v39  ;;  %v1251_v42 = vadd.f32 %v2968_v52, %v1058_v23 }
 0x1e1   :  { %v1544_v62 = vmax.f32 %v1424_v28, 0.0  ;;  %v1426_v20 = vadd.f32 %v1425_v38, %v1233_v36 }
 0x1e2   :  { %v1429_v45 = vpop.f32.mrf.mxu0  ;;  %v1249_v38 = vadd.f32 %v2959_v27, %v1056_v16  ;;  %v3456_v27 = vld [vmem:[#allocation25_spill] sm:$0xff]  ;;  %v3458_v16 = vld [vmem:[#allocation27_spill] sm:$0xff] }
 0x1e3   :  { %v1594_v51 = vpack.c.bf16 %v1544_v62, %v1542_v1  ;;  %v1545_v2 = vmax.f32 %v1426_v20, 0.0  ;;  %v1430_v54 = vadd.f32 %v1429_v45, %v1237_v12  ;;  %v3454_v62 = vld [vmem:[#allocation23_spill] sm:$0xff]  ;;  %v1253_v12 = vadd.f32 %v2975_v19, %v1060_v37  ;;  %v3457_v19 = vld [vmem:[#allocation26_spill] sm:$0xff] }
 0x1e4   :  { %v1431_v59 = vpop.f32.mrf.mxu0  ;;  %v1064_v20 = vadd.f32 %v3454_v62, %v2936_v32  ;;  %v1068_v52 = vadd.f32 %v3456_v27, %v2936_v32  ;;  %v3463_v27 = vld [vmem:[#allocation32_spill] sm:$0xff] }
 0x1e5   :  { %v1595_v63 = vpack.c.bf16 %v1545_v2, %v1543_v49  ;;  %v1432_v46 = vadd.f32 %v1431_v59, %v1239_v17  ;;  %v1546_v41 = vmax.f32 %v1430_v54, 0.0  ;;  %v1066_v49 = vadd.f32 %v3455_v21, %v2942_v39 }
 0x1e6   :  { %v1433_v60 = vpop.f32.mrf.mxu0  ;;  %v1257_v11 = vadd.f32 %v2984_v55, %v1064_v20 }
 0x1e7   :  { %v1434_v26 = vadd.f32 %v1433_v60, %v1241_v35  ;;  %1829 = vmatprep.mubr.bf16.mxu1 %v1595_v63  ;;  %v1547_v36 = vmax.f32 %v1432_v46, 0.0  ;;  %v1070_v63 = vadd.f32 %v3457_v19, %v2942_v39  ;;  %v1261_v46 = vadd.f32 %v3000_v15, %v1068_v52 }
 0x1e8   :  { %v1435_v58 = vpop.f32.mrf.mxu0  ;;  %1830 = vmatmul.mubr.bf16.gmra.mxu1 %v1594_v51  ;;  %v3096_v51 = vpop.f32.mrf.mxu1  ;;  %v1086_v52 = vadd.f32 %v3463_v27, %v2942_v39 }
 0x1e9   :  { %v1548_v33 = vmax.f32 %v1434_v26, 0.0  ;;  %v1436_v13 = vadd.f32 %v1435_v58, %v1243_v31  ;;  %v1259_v31 = vadd.f32 %v2991_v6, %v1066_v49  ;;  %v1074_v58 = vadd.f32 %v3458_v16, %v2936_v32  ;;  %v3460_v6 = vld [vmem:[#allocation29_spill] sm:$0xff] }
 0x1ea   :  { %v1439_v4 = vpop.f32.mrf.mxu0  ;;  %v3103_v60 = vpop.f32.mrf.mxu1  ;;  %v1263_v24 = vadd.f32 %v3007_v18, %v1070_v63  ;;  %v1078_v15 = vadd.f32 %v3460_v6, %v2936_v32  ;;  %v3461_v18 = vld [vmem:[#allocation30_spill] sm:$0xff] }
 0x1eb   :  { %v1596_v44 = vpack.c.bf16 %v1548_v33, %v1546_v41  ;;  %v1549_v28 = vmax.f32 %v1436_v13, 0.0  ;;  %v1440_v1 = vadd.f32 %v1439_v4, %v1247_v22  ;;  %v3459_v33 = vld [vmem:[#allocation28_spill] sm:$0xff] }
 0x1ec   :  { %v1441_v14 = vpop.f32.mrf.mxu0  ;;  %v1076_v13 = vadd.f32 %v3459_v33, %v2942_v39  ;;  %v3112_v61 = vpop.f32.mrf.mxu1  ;;  %v1271_v20 = vadd.f32 %v3032_v0, %v1078_v15 }
 0x1ed   :  { %v1597_v40 = vpack.c.bf16 %v1549_v28, %v1547_v36  ;;  %v1442_v45 = vadd.f32 %v1441_v14, %v1249_v38  ;;  %v1550_v59 = vmax.f32 %v1440_v1, 0.0  ;;  %v1267_v36 = vadd.f32 %v3016_v8, %v1074_v58 }
 0x1ee   :  { %v1443_v5 = vpop.f32.mrf.mxu0  ;;  %v1080_v28 = vadd.f32 %v3461_v18, %v2942_v39  ;;  %v1269_v62 = vadd.f32 %v3023_v30, %v1076_v13  ;;  %v3464_v30 = vld [vmem:[#allocation33_spill] sm:$0xff]  ;;  %v3467_v13 = vld [vmem:[#allocation38_spill] sm:$0xff] }
 0x1ef   :  { %v1444_v50 = vadd.f32 %v1443_v5, %v1251_v42  ;;  %1837 = vmatprep.mubr.bf16.mxu1 %v1597_v40  ;;  %v1551_v54 = vmax.f32 %v1442_v45, 0.0  ;;  %v3119_v40 = vpop.f32.mrf.mxu1  ;;  %v3462_v45 = vld [vmem:[#allocation31_spill] sm:$0xff]  ;;  %v1088_v0 = vadd.f32 %v3464_v30, %v2936_v32 }
 0x1f0   :  { %v1445_v2 = vpop.f32.mrf.mxu0  ;;  %1838 = vmatmul.mubr.bf16.gmra.mxu1 %v1596_v44  ;;  %v1273_v21 = vadd.f32 %v3039_v43, %v1080_v28  ;;  %v3465_v43 = vld [vmem:[#allocation35_spill] sm:$0xff] }
 0x1f1   :  { %v1552_v53 = vmax.f32 %v1444_v50, 0.0  ;;  %v1446_v17 = vadd.f32 %v1445_v2, %v1253_v12  ;;  %v1084_v50 = vadd.f32 %v3462_v45, %v2936_v32  ;;  %v3470_v45 = vld [vmem:[#allocation42_spill] sm:$0xff] }
 0x1f2   :  { %v1449_v35 = vpop.f32.mrf.mxu0 }
 0x1f3   :  { %v1598_v3 = vpack.c.bf16 %v1552_v53, %v1550_v59  ;;  %v1553_v10 = vmax.f32 %v1446_v17, 0.0  ;;  %v1450_v7 = vadd.f32 %v1449_v35, %v1257_v11  ;;  %v3128_v59 = vpop.f32.mrf.mxu1  ;;  %v1277_v19 = vadd.f32 %v3048_v25, %v1084_v50 }
 0x1f4   :  { %v1451_v57 = vpop.f32.mrf.mxu0  ;;  %v1104_v50 = vadd.f32 %v3470_v45, %v2936_v32 }
 0x1f5   :  { %v1599_v26 = vpack.c.bf16 %v1553_v10, %v1551_v54  ;;  %v1452_v23 = vadd.f32 %v1451_v57, %v1259_v31  ;;  %v1554_v4 = vmax.f32 %v1450_v7, 0.0  ;;  %v1090_v54 = vadd.f32 %v3465_v43, %v2942_v39  ;;  %v1302_v31 = vpop.f32.mrf.mxu1 }
 0x1f6   :  { %v1453_v55 = vpop.f32.mrf.mxu0  ;;  %v1281_v7 = vadd.f32 %v3064_v48, %v1088_v0 }
 0x1f7   :  { %v1454_v41 = vadd.f32 %v1453_v55, %v1261_v46  ;;  %1845 = vmatprep.mubr.bf16.mxu1 %v1599_v26  ;;  %v1555_v14 = vmax.f32 %v1452_v23, 0.0  ;;  %v1279_v26 = vadd.f32 %v3055_v47, %v1086_v52  ;;  %v3466_v55 = vld [vmem:[#allocation36_spill] sm:$0xff]  ;;  %v1283_v25 = vadd.f32 %v3071_v56, %v1090_v54  ;;  %v1306_v6 = vpop.f32.mrf.mxu1  ;;  %v3468_v47 = vld [vmem:[#allocation39_spill] sm:$0xff]  ;;  %v3469_v56 = vld [vmem:[#allocation41_spill] sm:$0xff] }
 0x1f8   :  { %v1455_v22 = vpop.f32.mrf.mxu0  ;;  %1846 = vmatmul.mubr.bf16.gmra.mxu1 %v1598_v3  ;;  %v1098_v48 = vadd.f32 %v3468_v47, %v2936_v32  ;;  %v1100_v18 = vadd.f32 %v3469_v56, %v2942_v39 }
 0x1f9   :  { %v1556_v29 = vmax.f32 %v1454_v41, 0.0  ;;  %v1456_v37 = vadd.f32 %v1455_v22, %v1263_v24  ;;  %v1094_v24 = vadd.f32 %v3466_v55, %v2936_v32  ;;  %v1096_v22 = vadd.f32 %v3467_v13, %v2942_v39 }
 0x1fa   :  { %v1459_v44 = vpop.f32.mrf.mxu0 }
 0x1fb   :  { %v1600_v38 = vpack.c.bf16 %v1556_v29, %v1554_v4  ;;  %v1557_v42 = vmax.f32 %v1456_v37, 0.0  ;;  %v1460_v12 = vadd.f32 %v1459_v44, %v1267_v36  ;;  %v1287_v36 = vadd.f32 %v3080_v9, %v1094_v24 }
 0x1fc   :  { %v1461_v1 = vpop.f32.mrf.mxu0  ;;  %v1293_v9 = vadd.f32 %v3103_v60, %v1100_v18  ;;  %v3473_v60 = vld [vmem:[#allocation47_spill] sm:$0xff] }
 0x1fd   :  { %v1601_v5 = vpack.c.bf16 %v1557_v42, %v1555_v14  ;;  %v1462_v49 = vadd.f32 %v1461_v1, %v1269_v62  ;;  %v1558_v17 = vmax.f32 %v1460_v12, 0.0  ;;  %v1308_v42 = vpop.f32.mrf.mxu1  ;;  %v1289_v62 = vadd.f32 %v3087_v34, %v1096_v22  ;;  %v3472_v34 = vld [vmem:[#allocation45_spill] sm:$0xff] }
 0x1fe   :  { %v1463_v8 = vpop.f32.mrf.mxu0 }
 0x1ff   :  { %v1464_v2 = vadd.f32 %v1463_v8, %v1271_v20  ;;  %1853 = vmatprep.mubr.bf16.mxu1 %v1601_v5  ;;  %v1559_v3 = vmax.f32 %v1462_v49, 0.0  ;;  %v1291_v20 = vadd.f32 %v3096_v51, %v1098_v48  ;;  %v1310_v52 = vpop.f32.mrf.mxu1  ;;  %v1108_v51 = vadd.f32 %v3472_v34, %v2936_v32 }
 0x200   :  { %v1465_v53 = vpop.f32.mrf.mxu0  ;;  %1854 = vmatmul.mubr.bf16.gmra.mxu1 %v1600_v38 }
 0x201   :  { %v1560_v11 = vmax.f32 %v1464_v2, 0.0  ;;  %v1466_v35 = vadd.f32 %v1465_v53, %v1273_v21  ;;  %v3471_v2 = vld [vmem:[#allocation44_spill] sm:$0xff] }
 0x202   :  { %v1469_v63 = vpop.f32.mrf.mxu0  ;;  %v1106_v27 = vadd.f32 %v3471_v2, %v2942_v39 }
 0x203   :  { %v1602_v10 = vpack.c.bf16 %v1560_v11, %v1558_v17  ;;  %v1561_v57 = vmax.f32 %v1466_v35, 0.0  ;;  %v1470_v58 = vadd.f32 %v1469_v63, %v1277_v19  ;;  %v1297_v11 = vadd.f32 %v3112_v61, %v1104_v50  ;;  %v3479_v50 = vld [vmem:[#allocation56_spill] sm:$0xff] }
 0x204   :  { %v1471_v46 = vpop.f32.mrf.mxu0  ;;  %v1110_v19 = vadd.f32 %v3473_v60, %v2942_v39 }
 0x205   :  { %v1603_v16 = vpack.c.bf16 %v1561_v57, %v1559_v3  ;;  %v1472_v41 = vadd.f32 %v1471_v46, %v1279_v26  ;;  %v1562_v4 = vmax.f32 %v1470_v58, 0.0  ;;  %v1312_v3 = vpop.f32.mrf.mxu1  ;;  %v1299_v57 = vadd.f32 %v3119_v40, %v1106_v27  ;;  %v3476_v40 = vld [vmem:[#allocation51_spill] sm:$0xff] }
 0x206   :  { %v1473_v23 = vpop.f32.mrf.mxu0  ;;  %v1301_v46 = vadd.f32 %v3128_v59, %v1108_v51  ;;  %v1303_v61 = vadd.f32 %v1302_v31, %v1110_v19  ;;  %v1118_v22 = vadd.f32 %v3476_v40, %v2936_v32  ;;  %v3481_v51 = vld [vmem:[#allocation59_spill] sm:$0xff] }
 0x207   :  { %v1474_v33 = vadd.f32 %v1473_v23, %v1281_v7  ;;  %1861 = vmatprep.mubr.bf16.mxu1 %v1603_v16  ;;  %v1563_v28 = vmax.f32 %v1472_v41, 0.0  ;;  %v3474_v16 = vld [vmem:[#allocation48_spill] sm:$0xff] }
 0x208   :  { %v1475_v15 = vpop.f32.mrf.mxu0  ;;  %1862 = vmatmul.mubr.bf16.gmra.mxu1 %v1602_v10  ;;  %v1114_v58 = vadd.f32 %v3474_v16, %v2936_v32 }
 0x209   :  { %v1564_v29 = vmax.f32 %v1474_v33, 0.0  ;;  %v1476_v37 = vadd.f32 %v1475_v15, %v1283_v25  ;;  %v3475_v25 = vld [vmem:[#allocation50_spill] sm:$0xff]  ;;  %v1316_v33 = vpop.f32.mrf.mxu1 }
 0x20a   :  { %v1479_v44 = vpop.f32.mrf.mxu0  ;;  %v1116_v41 = vadd.f32 %v3475_v25, %v2942_v39  ;;  %v1307_v48 = vadd.f32 %v1306_v6, %v1114_v58  ;;  %v3180_v25 = vld [vmem:[%s3384_s4] ss:$0 sm:$0xff]  ;;  %s2706_s4 = smov [#allocation8]  }
 0x20b   :  { %v1604_v14 = vpack.c.bf16 %v1564_v29, %v1562_v4  ;;  %v1565_v38 = vmax.f32 %v1476_v37, 0.0  ;;  %v1480_v12 = vadd.f32 %v1479_v44, %v1287_v36  ;;  %v3477_v29 = vld [vmem:[#allocation53_spill] sm:$0xff]  ;;  %v1318_v56 = vpop.f32.mrf.mxu1  ;;  %s2139_s14 = sshll.u32 %s2706_s4, 4  ;;  %s2140_s14 = int_to_ptr.vmem [resolvable:$true] %s2139_s14 }
 0x20c   :  { %v1481_v1 = vpop.f32.mrf.mxu0  ;;  %v1120_v31 = vadd.f32 %v3477_v29, %v2942_v39  ;;  %s2671_s15 = scalar_lea.vmem %s2140_s14, 4096  ;;  %p2676_p2 = scmp.lt.s32.totalorder %s2140_s14, %s2140_s14 }
 0x20d   :  { %v1605_v5 = vpack.c.bf16 %v1565_v38, %v1563_v28  ;;  %v1482_v21 = vadd.f32 %v1481_v1, %v1289_v62  ;;  %v1566_v30 = vmax.f32 %v1480_v12, 0.0  ;;  %v1309_v28 = vadd.f32 %v1308_v42, %v1116_v41  ;;  %v3478_v62 = vld [vmem:[#allocation54_spill] sm:$0xff]  ;;  %p2672_p1 = scmp.ne.s32.totalorder %s2140_s14, %s2671_s15  ;;  %p2677_p3 = scmp.lt.s32.totalorder %s2671_s15, %s2671_s15 }
 0x20e   :  { %v1483_v8 = vpop.f32.mrf.mxu0  ;;  %v1313_v12 = vadd.f32 %v1312_v3, %v1120_v31 }
 0x20f   :  { %v1484_v49 = vadd.f32 %v1483_v8, %v1291_v20  ;;  %1869 = vmatprep.mubr.bf16.mxu1 %v1605_v5  ;;  %v1567_v63 = vmax.f32 %v1482_v21, 0.0  ;;  %v1124_v20 = vadd.f32 %v3478_v62, %v2936_v32  ;;  %v1126_v8 = vadd.f32 %v3479_v50, %v2942_v39  ;;  %p2678_p4 = por %p2677_p3, %p2676_p2 }
 0x210   :  { %v1485_v53 = vpop.f32.mrf.mxu0  ;;  %1870 = vmatmul.mubr.bf16.gmra.mxu1 %v1604_v14  ;;  %v1311_v14 = vadd.f32 %v1310_v52, %v1118_v22 }
 0x211   :  { %v1568_v0 = vmax.f32 %v1484_v49, 0.0  ;;  %v1486_v17 = vadd.f32 %v1485_v53, %v1293_v9  ;;  %v1320_v9 = vpop.f32.mrf.mxu1  ;;  %v3480_v49 = vld [vmem:[#allocation57_spill] sm:$0xff]  ;;  %v1317_v53 = vadd.f32 %v1316_v33, %v1124_v20  ;;  %v1319_v19 = vadd.f32 %v1318_v56, %v1126_v8  ;;  %p2679_p5 = pnand %p2678_p4, %p2672_p1 }
 0x212   :  { %v1489_v35 = vpop.f32.mrf.mxu0  ;;  %v1128_v42 = vadd.f32 %v3480_v49, %v2936_v32 }
 0x213   :  { %v1606_v43 = vpack.c.bf16 %v1568_v0, %v1566_v30  ;;  %v1569_v54 = vmax.f32 %v1486_v17, 0.0  ;;  %v1490_v7 = vadd.f32 %v1489_v35, %v1297_v11  ;;  %v1130_v30 = vadd.f32 %v3481_v51, %v2942_v39  ;;  %v1322_v35 = vpop.f32.mrf.mxu1 }
 0x214   :  { %v1491_v10 = vpop.f32.mrf.mxu0 }
 0x215   :  { %v1607_v26 = vpack.c.bf16 %v1569_v54, %v1567_v63  ;;  %v1492_v24 = vadd.f32 %v1491_v10, %v1299_v57  ;;  %v1570_v59 = vmax.f32 %v1490_v7, 0.0  ;;  %v1321_v63 = vadd.f32 %v1320_v9, %v1128_v42 }
 0x216   :  { %v1493_v55 = vpop.f32.mrf.mxu0  ;;  %v1323_v10 = vadd.f32 %v1322_v35, %v1130_v30 }
 0x217   :  { %v1494_v23 = vadd.f32 %v1493_v55, %v1301_v46  ;;  %1877 = vmatprep.mubr.bf16.mxu1 %v1607_v26  ;;  %v1571_v37 = vmax.f32 %v1492_v24, 0.0 }
 0x218   :  { %v1495_v13 = vpop.f32.mrf.mxu0  ;;  %1878 = vmatmul.mubr.bf16.gmra.mxu1 %v1606_v43 }
 0x219   :  { %v1572_v15 = vmax.f32 %v1494_v23, 0.0  ;;  %v1496_v47 = vadd.f32 %v1495_v13, %v1303_v61 }
 0x21a   :  { %v1499_v4 = vpop.f32.mrf.mxu0 }
 0x21b   :  { %v1608_v36 = vpack.c.bf16 %v1572_v15, %v1570_v59  ;;  %v1573_v44 = vmax.f32 %v1496_v47, 0.0  ;;  %v1500_v1 = vadd.f32 %v1499_v4, %v1307_v48 }
 0x21c   :  { %v1501_v18 = vpop.f32.mrf.mxu0 }
 0x21d   :  { %v1609_v38 = vpack.c.bf16 %v1573_v44, %v1571_v37  ;;  %v1502_v45 = vadd.f32 %v1501_v18, %v1309_v28  ;;  %v1574_v2 = vmax.f32 %v1500_v1, 0.0 }
 0x21e   :  { %v1503_v5 = vpop.f32.mrf.mxu0 }
 0x21f   :  { %v1504_v6 = vadd.f32 %v1503_v5, %v1311_v14  ;;  %1885 = vmatprep.mubr.bf16.mxu1 %v1609_v38  ;;  %v1575_v0 = vmax.f32 %v1502_v45, 0.0 }
 0x220   :  { %v1505_v21 = vpop.f32.mrf.mxu0  ;;  %1886 = vmatmul.mubr.bf16.gmra.mxu1 %v1608_v36 }
 0x221   :  { %v1576_v27 = vmax.f32 %v1504_v6, 0.0  ;;  %v1506_v52 = vadd.f32 %v1505_v21, %v1313_v12 }
 0x222   :  { %v1509_v34 = vpop.f32.mrf.mxu0 }
 0x223   :  { %v1610_v17 = vpack.c.bf16 %v1576_v27, %v1574_v2  ;;  %v1577_v11 = vmax.f32 %v1506_v52, 0.0  ;;  %v1510_v54 = vadd.f32 %v1509_v34, %v1317_v53 }
 0x224   :  { %v1511_v60 = vpop.f32.mrf.mxu0 }
 0x225   :  { %v1611_v43 = vpack.c.bf16 %v1577_v11, %v1575_v0  ;;  %v1512_v32 = vadd.f32 %v1511_v60, %v1319_v19  ;;  %v1578_v26 = vmax.f32 %v1510_v54, 0.0 }
 0x226   :  { %v1513_v3 = vpop.f32.mrf.mxu0 }
 0x227   :  { %v1514_v57 = vadd.f32 %v1513_v3, %v1321_v63  ;;  %1893 = vmatprep.mubr.bf16.mxu1 %v1611_v43  ;;  %v1579_v39 = vmax.f32 %v1512_v32, 0.0 }
 0x228   :  { %v1515_v46 = vpop.f32.mrf.mxu0  ;;  %1894 = vmatmul.mubr.bf16.gmra.mxu1 %v1610_v17 }
 0x229   :  { %v1580_v7 = vmax.f32 %v1514_v57, 0.0  ;;  %v1516_v16 = vadd.f32 %v1515_v46, %v1323_v10 }
 0x22b   :  { %v1612_v58 = vpack.c.bf16 %v1580_v7, %v1578_v26  ;;  %v1581_v55 = vmax.f32 %v1516_v16, 0.0 }
 0x22d   :  { %v1613_v61 = vpack.c.bf16 %v1581_v55, %v1579_v39 }
 0x22f   :  { %1901 = vmatprep.mubr.bf16.mxu1 %v1613_v61 }
 0x230   :  { %1902 = vmatmul.mubr.bf16.gmra.mxu1 %v1612_v58 }
 0x278   :  { %v2281_v24 = vpop.f32.mrf.mxu1 }
 0x27a   :  { %v2282_v23 = vpop.f32.mrf.mxu1 }
 0x27b   :  { %v2283_v41 = vadd.f32 %v2282_v23, %v2281_v24 }
 0x27c   :  { %v2284_v33 = vpop.f32.mrf.mxu1 }
 0x27d   :  { %v3183_v13 = vadd.f32 %v2283_v41, %v3180_v25 }
 0x27e   :  { %v2285_v40 = vpop.f32.mrf.mxu1 }
 0x27f   :  { %v2286_v22 = vadd.f32 %v2285_v40, %v2284_v33  ;;  %v1910_v59 = vmul.f32 %v3183_v13, %v3183_v13 }
 0x280   :  { %v2287_v15 = vpop.f32.mrf.mxu1 }
 0x281   :  { %v3188_v47 = vadd.f32 %v2286_v22, %v3180_v25  ;;  %1942 = vadd.xlane.f32.xlu0 %v1910_v59 }
 0x282   :  { %v2288_v48 = vpop.f32.mrf.mxu1 }
 0x283   :  { %v2289_v4 = vadd.f32 %v2288_v48, %v2287_v15  ;;  %v1911_v29 = vmul.f32 %v3188_v47, %v3188_v47 }
 0x284   :  { %v2290_v31 = vpop.f32.mrf.mxu1 }
 0x285   :  { %1944 = vadd.xlane.f32.xlu0 %v1911_v29  ;;  %v3193_v37 = vadd.f32 %v2289_v4, %v3180_v25 }
 0x286   :  { %v2291_v36 = vpop.f32.mrf.mxu1 }
 0x287   :  { %v2292_v44 = vadd.f32 %v2291_v36, %v2290_v31  ;;  %v1912_v56 = vmul.f32 %v3193_v37, %v3193_v37 }
 0x288   :  { %v2293_v18 = vpop.f32.mrf.mxu1 }
 0x289   :  { %v3198_v28 = vadd.f32 %v2292_v44, %v3180_v25  ;;  %1946 = vadd.xlane.f32.xlu1 %v1912_v56 }
 0x28a   :  { %v2294_v14 = vpop.f32.mrf.mxu1 }
 0x28b   :  { %v2295_v38 = vadd.f32 %v2294_v14, %v2293_v18  ;;  %v1913_v1 = vmul.f32 %v3198_v28, %v3198_v28 }
 0x28c   :  { %v2296_v62 = vpop.f32.mrf.mxu1 }
 0x28d   :  { %v3203_v20 = vadd.f32 %v2295_v38, %v3180_v25  ;;  %1948 = vadd.xlane.f32.xlu1 %v1913_v1 }
 0x28e   :  { %v2297_v5 = vpop.f32.mrf.mxu1 }
 0x28f   :  { %v2298_v12 = vadd.f32 %v2297_v5, %v2296_v62  ;;  %v1914_v45 = vmul.f32 %v3203_v20, %v3203_v20 }
 0x290   :  { %v2299_v6 = vpop.f32.mrf.mxu1 }
 0x291   :  { %v3208_v50 = vadd.f32 %v2298_v12, %v3180_v25  ;;  %1950 = vadd.xlane.f32.xlu0 %v1914_v45 }
 0x292   :  { %v2300_v8 = vpop.f32.mrf.mxu1 }
 0x293   :  { %v2301_v9 = vadd.f32 %v2300_v8, %v2299_v6  ;;  %v1915_v21 = vmul.f32 %v3208_v50, %v3208_v50 }
 0x294   :  { %v2302_v49 = vpop.f32.mrf.mxu1 }
 0x295   :  { %v3213_v42 = vadd.f32 %v2301_v9, %v3180_v25  ;;  %1952 = vadd.xlane.f32.xlu1 %v1915_v21 }
 0x296   :  { %v2303_v2 = vpop.f32.mrf.mxu1 }
 0x297   :  { %v2304_v27 = vadd.f32 %v2303_v2, %v2302_v49  ;;  %v1916_v52 = vmul.f32 %v3213_v42, %v3213_v42 }
 0x298   :  { %v2305_v53 = vpop.f32.mrf.mxu1 }
 0x299   :  { %v3218_v34 = vadd.f32 %v2304_v27, %v3180_v25  ;;  %1954 = vadd.xlane.f32.xlu0 %v1916_v52 }
 0x29a   :  { %v2306_v51 = vpop.f32.mrf.mxu1 }
 0x29b   :  { %v2307_v30 = vadd.f32 %v2306_v51, %v2305_v53  ;;  %v1917_v0 = vmul.f32 %v3218_v34, %v3218_v34 }
 0x29c   :  { %v2308_v17 = vpop.f32.mrf.mxu1 }
 0x29d   :  { %v3223_v11 = vadd.f32 %v2307_v30, %v3180_v25  ;;  %1956 = vadd.xlane.f32.xlu1 %v1917_v0 }
 0x29e   :  { %v2309_v35 = vpop.f32.mrf.mxu1 }
 0x29f   :  { %v2310_v60 = vadd.f32 %v2309_v35, %v2308_v17  ;;  %v1918_v19 = vmul.f32 %v3223_v11, %v3223_v11 }
 0x2a0   :  { %v2311_v63 = vpop.f32.mrf.mxu1 }
 0x2a1   :  { %v3228_v43 = vadd.f32 %v2310_v60, %v3180_v25  ;;  %1958 = vadd.xlane.f32.xlu0 %v1918_v19 }
 0x2a2   :  { %v2312_v54 = vpop.f32.mrf.mxu1 }
 0x2a3   :  { %v2313_v3 = vadd.f32 %v2312_v54, %v2311_v63  ;;  %v1919_v10 = vmul.f32 %v3228_v43, %v3228_v43 }
 0x2a4   :  { %v2314_v32 = vpop.f32.mrf.mxu1 }
 0x2a5   :  { %v3233_v57 = vadd.f32 %v2313_v3, %v3180_v25  ;;  %1960 = vadd.xlane.f32.xlu1 %v1919_v10 }
 0x2a6   :  { %v2315_v46 = vpop.f32.mrf.mxu1 }
 0x2a7   :  { %v2316_v26 = vadd.f32 %v2315_v46, %v2314_v32  ;;  %v1920_v7 = vmul.f32 %v3233_v57, %v3233_v57 }
 0x2a8   :  { %v2317_v16 = vpop.f32.mrf.mxu1 }
 0x2a9   :  { %v3238_v39 = vadd.f32 %v2316_v26, %v3180_v25  ;;  %1962 = vadd.xlane.f32.xlu0 %v1920_v7 }
 0x2aa   :  { %v2318_v58 = vpop.f32.mrf.mxu1 }
 0x2ab   :  { %v2319_v55 = vadd.f32 %v2318_v58, %v2317_v16  ;;  %v1921_v61 = vmul.f32 %v3238_v39, %v3238_v39 }
 0x2ac   :  { %v2320_v24 = vpop.f32.mrf.mxu1 }
 0x2ad   :  { %v3243_v23 = vadd.f32 %v2319_v55, %v3180_v25  ;;  %1964 = vadd.xlane.f32.xlu1 %v1921_v61 }
 0x2ae   :  { %v2321_v41 = vpop.f32.mrf.mxu1 }
 0x2af   :  { %v2322_v33 = vadd.f32 %v2321_v41, %v2320_v24  ;;  %v1922_v40 = vmul.f32 %v3243_v23, %v3243_v23 }
 0x2b0   :  { %v2323_v22 = vpop.f32.mrf.mxu1 }
 0x2b1   :  { %v3248_v59 = vadd.f32 %v2322_v33, %v3180_v25  ;;  %1966 = vadd.xlane.f32.xlu0 %v1922_v40 }
 0x2b2   :  { %v2324_v15 = vpop.f32.mrf.mxu1 }
 0x2b3   :  { %v2325_v48 = vadd.f32 %v2324_v15, %v2323_v22  ;;  %v1923_v4 = vmul.f32 %v3248_v59, %v3248_v59 }
 0x2b4   :  { %v2326_v29 = vpop.f32.mrf.mxu1 }
 0x2b5   :  { %v3253_v31 = vadd.f32 %v2325_v48, %v3180_v25  ;;  %1968 = vadd.xlane.f32.xlu1 %v1923_v4 }
 0x2b6   :  { %v2327_v36 = vpop.f32.mrf.mxu1 }
 0x2b7   :  { %v2328_v44 = vadd.f32 %v2327_v36, %v2326_v29  ;;  %v1924_v56 = vmul.f32 %v3253_v31, %v3253_v31 }
 0x2b8   :  { %v2329_v18 = vpop.f32.mrf.mxu1 }
 0x2b9   :  { %v3258_v14 = vadd.f32 %v2328_v44, %v3180_v25  ;;  %1970 = vadd.xlane.f32.xlu0 %v1924_v56 }
 0x2ba   :  { %v2330_v38 = vpop.f32.mrf.mxu1 }
 0x2bb   :  { %v2331_v1 = vadd.f32 %v2330_v38, %v2329_v18  ;;  %v1925_v62 = vmul.f32 %v3258_v14, %v3258_v14 }
 0x2bc   :  { %v2332_v5 = vpop.f32.mrf.mxu1 }
 0x2bd   :  { %v3263_v12 = vadd.f32 %v2331_v1, %v3180_v25  ;;  %1972 = vadd.xlane.f32.xlu1 %v1925_v62 }
 0x2be   :  { %v2333_v45 = vpop.f32.mrf.mxu1 }
 0x2bf   :  { %v2334_v6 = vadd.f32 %v2333_v45, %v2332_v5  ;;  %v1926_v8 = vmul.f32 %v3263_v12, %v3263_v12 }
 0x2c0   :  { %v2335_v9 = vpop.f32.mrf.mxu1 }
 0x2c1   :  { %v3268_v21 = vadd.f32 %v2334_v6, %v3180_v25  ;;  %1974 = vadd.xlane.f32.xlu0 %v1926_v8 }
 0x2c2   :  { %v2336_v49 = vpop.f32.mrf.mxu1 }
 0x2c3   :  { %v2337_v2 = vadd.f32 %v2336_v49, %v2335_v9  ;;  %v1927_v27 = vmul.f32 %v3268_v21, %v3268_v21 }
 0x2c4   :  { %v2338_v52 = vpop.f32.mrf.mxu1 }
 0x2c5   :  { %v3273_v53 = vadd.f32 %v2337_v2, %v3180_v25  ;;  %1976 = vadd.xlane.f32.xlu1 %v1927_v27 }
 0x2c6   :  { %v2339_v51 = vpop.f32.mrf.mxu1 }
 0x2c7   :  { %v2340_v30 = vadd.f32 %v2339_v51, %v2338_v52  ;;  %v1928_v0 = vmul.f32 %v3273_v53, %v3273_v53 }
 0x2c8   :  { %v2341_v17 = vpop.f32.mrf.mxu1 }
 0x2c9   :  { %v3278_v35 = vadd.f32 %v2340_v30, %v3180_v25  ;;  %1978 = vadd.xlane.f32.xlu0 %v1928_v0 }
 0x2ca   :  { %v2342_v60 = vpop.f32.mrf.mxu1 }
 0x2cb   :  { %v2343_v19 = vadd.f32 %v2342_v60, %v2341_v17  ;;  %v1929_v63 = vmul.f32 %v3278_v35, %v3278_v35 }
 0x2cc   :  { %v2344_v54 = vpop.f32.mrf.mxu1 }
 0x2cd   :  { %v3283_v3 = vadd.f32 %v2343_v19, %v3180_v25  ;;  %1980 = vadd.xlane.f32.xlu1 %v1929_v63 }
 0x2ce   :  { %v2345_v10 = vpop.f32.mrf.mxu1 }
 0x2cf   :  { %v2346_v32 = vadd.f32 %v2345_v10, %v2344_v54  ;;  %v1930_v46 = vmul.f32 %v3283_v3, %v3283_v3 }
 0x2d0   :  { %v2347_v26 = vpop.f32.mrf.mxu1 }
 0x2d1   :  { %v3288_v7 = vadd.f32 %v2346_v32, %v3180_v25  ;;  %1982 = vadd.xlane.f32.xlu0 %v1930_v46 }
 0x2d2   :  { %v2348_v16 = vpop.f32.mrf.mxu1 }
 0x2d3   :  { %v2349_v58 = vadd.f32 %v2348_v16, %v2347_v26  ;;  %v1931_v55 = vmul.f32 %v3288_v7, %v3288_v7 }
 0x2d4   :  { %v2350_v61 = vpop.f32.mrf.mxu1 }
 0x2d5   :  { %v3293_v24 = vadd.f32 %v2349_v58, %v3180_v25  ;;  %1984 = vadd.xlane.f32.xlu1 %v1931_v55 }
 0x2d6   :  { %v2351_v41 = vpop.f32.mrf.mxu1 }
 0x2d7   :  { %v2352_v33 = vadd.f32 %v2351_v41, %v2350_v61  ;;  %v1932_v40 = vmul.f32 %v3293_v24, %v3293_v24 }
 0x2d8   :  { %v2353_v22 = vpop.f32.mrf.mxu1 }
 0x2d9   :  { %v3298_v15 = vadd.f32 %v2352_v33, %v3180_v25  ;;  %1986 = vadd.xlane.f32.xlu0 %v1932_v40 }
 0x2da   :  { %v2354_v48 = vpop.f32.mrf.mxu1 }
 0x2db   :  { %v2355_v4 = vadd.f32 %v2354_v48, %v2353_v22  ;;  %v1933_v29 = vmul.f32 %v3298_v15, %v3298_v15 }
 0x2dc   :  { %v2356_v36 = vpop.f32.mrf.mxu1 }
 0x2dd   :  { %v3303_v44 = vadd.f32 %v2355_v4, %v3180_v25  ;;  %1988 = vadd.xlane.f32.xlu1 %v1933_v29 }
 0x2de   :  { %v2357_v56 = vpop.f32.mrf.mxu1 }
 0x2df   :  { %v2358_v18 = vadd.f32 %v2357_v56, %v2356_v36  ;;  %v1934_v38 = vmul.f32 %v3303_v44, %v3303_v44 }
 0x2e0   :  { %v2359_v1 = vpop.f32.mrf.mxu1 }
 0x2e1   :  { %v3308_v62 = vadd.f32 %v2358_v18, %v3180_v25  ;;  %1990 = vadd.xlane.f32.xlu0 %v1934_v38 }
 0x2e2   :  { %v2360_v5 = vpop.f32.mrf.mxu1 }
 0x2e3   :  { %v2361_v45 = vadd.f32 %v2360_v5, %v2359_v1  ;;  %v1935_v6 = vmul.f32 %v3308_v62, %v3308_v62 }
 0x2e4   :  { %v2362_v8 = vpop.f32.mrf.mxu1 }
 0x2e5   :  { %v3313_v9 = vadd.f32 %v2361_v45, %v3180_v25  ;;  %1992 = vadd.xlane.f32.xlu1 %v1935_v6 }
 0x2e6   :  { %v2363_v49 = vpop.f32.mrf.mxu1 }
 0x2e7   :  { %v2364_v2 = vadd.f32 %v2363_v49, %v2362_v8  ;;  %v1936_v27 = vmul.f32 %v3313_v9, %v3313_v9 }
 0x2e8   :  { %v2365_v52 = vpop.f32.mrf.mxu1 }
 0x2e9   :  { %v3318_v51 = vadd.f32 %v2364_v2, %v3180_v25  ;;  %1994 = vadd.xlane.f32.xlu0 %v1936_v27 }
 0x2ea   :  { %v2366_v30 = vpop.f32.mrf.mxu1 }
 0x2eb   :  { %v2367_v0 = vadd.f32 %v2366_v30, %v2365_v52  ;;  %v1937_v17 = vmul.f32 %v3318_v51, %v3318_v51 }
 0x2ec   :  { %v2368_v60 = vpop.f32.mrf.mxu1 }
 0x2ed   :  { %v3323_v19 = vadd.f32 %v2367_v0, %v3180_v25  ;;  %1996 = vadd.xlane.f32.xlu1 %v1937_v17 }
 0x2ee   :  { %v2369_v63 = vpop.f32.mrf.mxu1 }
 0x2ef   :  { %v2370_v54 = vadd.f32 %v2369_v63, %v2368_v60  ;;  %v1938_v10 = vmul.f32 %v3323_v19, %v3323_v19 }
 0x2f0   :  { %v2371_v32 = vpop.f32.mrf.mxu1 }
 0x2f1   :  { %v3328_v46 = vadd.f32 %v2370_v54, %v3180_v25  ;;  %1998 = vadd.xlane.f32.xlu0 %v1938_v10 }
 0x2f2   :  { %v2372_v26 = vpop.f32.mrf.mxu1 }
 0x2f3   :  { %v2373_v16 = vadd.f32 %v2372_v26, %v2371_v32  ;;  %v1939_v58 = vmul.f32 %v3328_v46, %v3328_v46 }
 0x2f4   :  { %v2374_v55 = vpop.f32.mrf.mxu1 }
 0x2f5   :  { %v3333_v61 = vadd.f32 %v2373_v16, %v3180_v25  ;;  %2000 = vadd.xlane.f32.xlu1 %v1939_v58 }
 0x2f6   :  { %v2375_v41 = vpop.f32.mrf.mxu1 }
 0x2f7   :  { %v2376_v33 = vadd.f32 %v2375_v41, %v2374_v55  ;;  %v1940_v40 = vmul.f32 %v3333_v61, %v3333_v61 }
 0x2f9   :  { %v3338_v22 = vadd.f32 %v2376_v33, %v3180_v25  ;;  %2002 = vadd.xlane.f32.xlu0 %v1940_v40 }
 0x2fb   :  { %v1941_v48 = vmul.f32 %v3338_v22, %v3338_v22 }
 0x2fd   :  { %2004 = vadd.xlane.f32.xlu1 %v1941_v48 }
 0x30a   :  { %v1943_v4 = vpop.xlane.xlu0 %1942 }
 0x30b   :  { %v2006_v29 = vmax.f32 %v1943_v4, 1e-24 }
 0x30d   :  { %2547 = vrsqrt.f32 %v2006_v29 }
 0x30e   :  { %v1945_v36 = vpop.xlane.xlu0 %1944 }
 0x30f   :  { %v2007_v56 = vmax.f32 %v1945_v36, 1e-24 }
 0x311   :  { %2549 = vrsqrt.f32 %v2007_v56 }
 0x312   :  { %v1947_v18 = vpop.xlane.xlu1 %1946 }
 0x313   :  { %v2008_v38 = vmax.f32 %v1947_v18, 1e-24 }
 0x315   :  { %2551 = vrsqrt.f32 %v2008_v38 }
 0x316   :  { %v1949_v1 = vpop.xlane.xlu1 %1948 }
 0x317   :  { %v2009_v5 = vmax.f32 %v1949_v1, 1e-24 }
 0x319   :  { %2553 = vrsqrt.f32 %v2009_v5 }
 0x31a   :  { %v2548_v45 = vpop.eup %2547  ;;  %v1951_v25 = vpop.xlane.xlu0 %1950 }
 0x31b   :  { %v2070_v6 = vmul.f32 %v2548_v45, %v3183_v13  ;;  %v2010_v8 = vmax.f32 %v1951_v25, 1e-24 }
 0x31d   :  { %2102 = vst [vmem:[#allocation8] sm:$0xff] %v2070_v6  ;;  %2555 = vrsqrt.f32 %v2010_v8 }
 0x31e   :  { %v2550_v49 = vpop.eup %2549  ;;  %v1953_v2 = vpop.xlane.xlu1 %1952 }
 0x31f   :  { %v2071_v27 = vmul.f32 %v2550_v49, %v3188_v47  ;;  %v2011_v52 = vmax.f32 %v1953_v2, 1e-24 }
 0x321   :  { %2103 = vst [vmem:[#allocation8 + $0x8] sm:$0xff] %v2071_v27  ;;  %2557 = vrsqrt.f32 %v2011_v52 }
 0x322   :  { %v2552_v30 = vpop.eup %2551  ;;  %v1955_v0 = vpop.xlane.xlu0 %1954 }
 0x323   :  { %v2072_v17 = vmul.f32 %v2552_v30, %v3193_v37  ;;  %v2012_v60 = vmax.f32 %v1955_v0, 1e-24 }
 0x325   :  { %2104 = vst [vmem:[#allocation8 + $0x10] sm:$0xff] %v2072_v17  ;;  %2559 = vrsqrt.f32 %v2012_v60 }
 0x326   :  { %v2554_v63 = vpop.eup %2553  ;;  %v1957_v54 = vpop.xlane.xlu1 %1956 }
 0x327   :  { %v2073_v13 = vmul.f32 %v2554_v63, %v3198_v28  ;;  %v2013_v10 = vmax.f32 %v1957_v54, 1e-24 }
 0x329   :  { %2105 = vst [vmem:[#allocation8 + $0x18] sm:$0xff] %v2073_v13  ;;  %2561 = vrsqrt.f32 %v2013_v10 }
 0x32a   :  { %v2556_v32 = vpop.eup %2555  ;;  %v1959_v26 = vpop.xlane.xlu0 %1958 }
 0x32b   :  { %v2074_v47 = vmul.f32 %v2556_v32, %v3203_v20  ;;  %v2014_v16 = vmax.f32 %v1959_v26, 1e-24 }
 0x32d   :  { %2106 = vst [vmem:[#allocation8 + $0x20] sm:$0xff] %v2074_v47  ;;  %2563 = vrsqrt.f32 %v2014_v16 }
 0x32e   :  { %v2558_v58 = vpop.eup %2557  ;;  %v1961_v55 = vpop.xlane.xlu1 %1960 }
 0x32f   :  { %v2075_v37 = vmul.f32 %v2558_v58, %v3208_v50  ;;  %v2015_v41 = vmax.f32 %v1961_v55, 1e-24 }
 0x331   :  { %2107 = vst [vmem:[#allocation8 + $0x28] sm:$0xff] %v2075_v37  ;;  %2565 = vrsqrt.f32 %v2015_v41 }
 0x332   :  { %v2560_v33 = vpop.eup %2559  ;;  %v1963_v40 = vpop.xlane.xlu0 %1962 }
 0x333   :  { %v2076_v28 = vmul.f32 %v2560_v33, %v3213_v42  ;;  %v2016_v48 = vmax.f32 %v1963_v40, 1e-24 }
 0x335   :  { %2108 = vst [vmem:[#allocation8 + $0x30] sm:$0xff] %v2076_v28  ;;  %2567 = vrsqrt.f32 %v2016_v48 }
 0x336   :  { %v2562_v4 = vpop.eup %2561  ;;  %v1965_v29 = vpop.xlane.xlu1 %1964 }
 0x337   :  { %v2077_v20 = vmul.f32 %v2562_v4, %v3218_v34  ;;  %v2017_v36 = vmax.f32 %v1965_v29, 1e-24 }
 0x339   :  { %2109 = vst [vmem:[#allocation8 + $0x38] sm:$0xff] %v2077_v20  ;;  %2569 = vrsqrt.f32 %v2017_v36 }
 0x33a   :  { %v2564_v56 = vpop.eup %2563  ;;  %v1967_v18 = vpop.xlane.xlu0 %1966 }
 0x33b   :  { %v2078_v50 = vmul.f32 %v2564_v56, %v3223_v11  ;;  %v2018_v38 = vmax.f32 %v1967_v18, 1e-24 }
 0x33d   :  { %2110 = vst [vmem:[#allocation8 + $0x40] sm:$0xff] %v2078_v50  ;;  %2571 = vrsqrt.f32 %v2018_v38 }
 0x33e   :  { %v2566_v1 = vpop.eup %2565  ;;  %v1969_v5 = vpop.xlane.xlu1 %1968 }
 0x33f   :  { %v2079_v42 = vmul.f32 %v2566_v1, %v3228_v43  ;;  %v2019_v45 = vmax.f32 %v1969_v5, 1e-24 }
 0x341   :  { %2111 = vst [vmem:[#allocation8 + $0x48] sm:$0xff] %v2079_v42  ;;  %2573 = vrsqrt.f32 %v2019_v45 }
 0x342   :  { %v2568_v25 = vpop.eup %2567  ;;  %v1971_v6 = vpop.xlane.xlu0 %1970 }
 0x343   :  { %v2080_v34 = vmul.f32 %v2568_v25, %v3233_v57  ;;  %v2020_v8 = vmax.f32 %v1971_v6, 1e-24 }
 0x345   :  { %2112 = vst [vmem:[#allocation8 + $0x50] sm:$0xff] %v2080_v34  ;;  %2575 = vrsqrt.f32 %v2020_v8 }
 0x346   :  { %v2570_v49 = vpop.eup %2569  ;;  %v1973_v2 = vpop.xlane.xlu1 %1972 }
 0x347   :  { %v2081_v11 = vmul.f32 %v2570_v49, %v3238_v39  ;;  %v2021_v27 = vmax.f32 %v1973_v2, 1e-24 }
 0x349   :  { %2113 = vst [vmem:[#allocation8 + $0x58] sm:$0xff] %v2081_v11  ;;  %2577 = vrsqrt.f32 %v2021_v27 }
 0x34a   :  { %v2572_v52 = vpop.eup %2571  ;;  %v1975_v30 = vpop.xlane.xlu0 %1974 }
 0x34b   :  { %v2082_v43 = vmul.f32 %v2572_v52, %v3243_v23  ;;  %v2022_v0 = vmax.f32 %v1975_v30, 1e-24 }
 0x34d   :  { %2114 = vst [vmem:[#allocation8 + $0x60] sm:$0xff] %v2082_v43  ;;  %2579 = vrsqrt.f32 %v2022_v0 }
 0x34e   :  { %v2574_v17 = vpop.eup %2573  ;;  %v1977_v60 = vpop.xlane.xlu1 %1976 }
 0x34f   :  { %v2083_v57 = vmul.f32 %v2574_v17, %v3248_v59  ;;  %v2023_v63 = vmax.f32 %v1977_v60, 1e-24 }
 0x351   :  { %2115 = vst [vmem:[#allocation8 + $0x68] sm:$0xff] %v2083_v57  ;;  %2581 = vrsqrt.f32 %v2023_v63 }
 0x352   :  { %v2576_v54 = vpop.eup %2575  ;;  %v1979_v13 = vpop.xlane.xlu0 %1978 }
 0x353   :  { %v2084_v39 = vmul.f32 %v2576_v54, %v3253_v31  ;;  %v2024_v10 = vmax.f32 %v1979_v13, 1e-24 }
 0x355   :  { %2116 = vst [vmem:[#allocation8 + $0x70] sm:$0xff] %v2084_v39  ;;  %2583 = vrsqrt.f32 %v2024_v10 }
 0x356   :  { %v2578_v32 = vpop.eup %2577  ;;  %v1981_v26 = vpop.xlane.xlu1 %1980 }
 0x357   :  { %v2085_v23 = vmul.f32 %v2578_v32, %v3258_v14  ;;  %v2025_v47 = vmax.f32 %v1981_v26, 1e-24 }
 0x359   :  { %2117 = vst [vmem:[#allocation8 + $0x78] sm:$0xff] %v2085_v23  ;;  %2585 = vrsqrt.f32 %v2025_v47 }
 0x35a   :  { %v2580_v16 = vpop.eup %2579  ;;  %v1983_v58 = vpop.xlane.xlu0 %1982 }
 0x35b   :  { %v2086_v59 = vmul.f32 %v2580_v16, %v3263_v12  ;;  %v2026_v55 = vmax.f32 %v1983_v58, 1e-24 }
 0x35d   :  { %2118 = vst [vmem:[#allocation8 + $0x80] sm:$0xff] %v2086_v59  ;;  %2587 = vrsqrt.f32 %v2026_v55 }
 0x35e   :  { %v2582_v37 = vpop.eup %2581  ;;  %v1985_v41 = vpop.xlane.xlu1 %1984 }
 0x35f   :  { %v2087_v31 = vmul.f32 %v2582_v37, %v3268_v21  ;;  %v2027_v33 = vmax.f32 %v1985_v41, 1e-24 }
 0x361   :  { %2119 = vst [vmem:[#allocation8 + $0x88] sm:$0xff] %v2087_v31  ;;  %2589 = vrsqrt.f32 %v2027_v33 }
 0x362   :  { %v2584_v40 = vpop.eup %2583  ;;  %v1987_v28 = vpop.xlane.xlu0 %1986 }
 0x363   :  { %v2088_v14 = vmul.f32 %v2584_v40, %v3273_v53  ;;  %v2028_v48 = vmax.f32 %v1987_v28, 1e-24 }
 0x365   :  { %2120 = vst [vmem:[#allocation8 + $0x90] sm:$0xff] %v2088_v14  ;;  %2591 = vrsqrt.f32 %v2028_v48 }
 0x366   :  { %v2586_v4 = vpop.eup %2585  ;;  %v1989_v29 = vpop.xlane.xlu1 %1988 }
 0x367   :  { %v2089_v12 = vmul.f32 %v2586_v4, %v3278_v35  ;;  %v2029_v20 = vmax.f32 %v1989_v29, 1e-24 }
 0x369   :  { %2121 = vst [vmem:[#allocation8 + $0x98] sm:$0xff] %v2089_v12  ;;  %2593 = vrsqrt.f32 %v2029_v20 }
 0x36a   :  { %v2588_v36 = vpop.eup %2587  ;;  %v1991_v56 = vpop.xlane.xlu0 %1990 }
 0x36b   :  { %v2090_v21 = vmul.f32 %v2588_v36, %v3283_v3  ;;  %v2030_v18 = vmax.f32 %v1991_v56, 1e-24 }
 0x36d   :  { %2122 = vst [vmem:[#allocation8 + $0xa0] sm:$0xff] %v2090_v21  ;;  %2595 = vrsqrt.f32 %v2030_v18 }
 0x36e   :  { %v2590_v50 = vpop.eup %2589  ;;  %v1993_v38 = vpop.xlane.xlu1 %1992 }
 0x36f   :  { %v2091_v53 = vmul.f32 %v2590_v50, %v3288_v7  ;;  %v2031_v1 = vmax.f32 %v1993_v38, 1e-24 }
 0x371   :  { %2123 = vst [vmem:[#allocation8 + $0xa8] sm:$0xff] %v2091_v53  ;;  %2597 = vrsqrt.f32 %v2031_v1 }
 0x372   :  { %v2592_v5 = vpop.eup %2591  ;;  %v1995_v42 = vpop.xlane.xlu0 %1994 }
 0x373   :  { %v2092_v35 = vmul.f32 %v2592_v5, %v3293_v24  ;;  %v2032_v45 = vmax.f32 %v1995_v42, 1e-24 }
 0x375   :  { %2124 = vst [vmem:[#allocation8 + $0xb0] sm:$0xff] %v2092_v35  ;;  %2599 = vrsqrt.f32 %v2032_v45 }
 0x376   :  { %v2594_v25 = vpop.eup %2593  ;;  %v1997_v6 = vpop.xlane.xlu1 %1996 }
 0x377   :  { %v2093_v3 = vmul.f32 %v2594_v25, %v3298_v15  ;;  %v2033_v34 = vmax.f32 %v1997_v6, 1e-24 }
 0x379   :  { %2125 = vst [vmem:[#allocation8 + $0xb8] sm:$0xff] %v2093_v3  ;;  %2601 = vrsqrt.f32 %v2033_v34 }
 0x37a   :  { %v2596_v8 = vpop.eup %2595  ;;  %v1999_v49 = vpop.xlane.xlu0 %1998 }
 0x37b   :  { %v2094_v7 = vmul.f32 %v2596_v8, %v3303_v44  ;;  %v2034_v2 = vmax.f32 %v1999_v49, 1e-24 }
 0x37d   :  { %2126 = vst [vmem:[#allocation8 + $0xc0] sm:$0xff] %v2094_v7  ;;  %2603 = vrsqrt.f32 %v2034_v2 }
 0x37e   :  { %v2598_v11 = vpop.eup %2597  ;;  %v2001_v27 = vpop.xlane.xlu1 %2000 }
 0x37f   :  { %v2095_v24 = vmul.f32 %v2598_v11, %v3308_v62  ;;  %v2035_v52 = vmax.f32 %v2001_v27, 1e-24 }
 0x381   :  { %2127 = vst [vmem:[#allocation8 + $0xc8] sm:$0xff] %v2095_v24  ;;  %2605 = vrsqrt.f32 %v2035_v52 }
 0x382   :  { %v2600_v30 = vpop.eup %2599  ;;  %v2003_v43 = vpop.xlane.xlu0 %2002 }
 0x383   :  { %v2096_v15 = vmul.f32 %v2600_v30, %v3313_v9  ;;  %v2036_v0 = vmax.f32 %v2003_v43, 1e-24 }
 0x385   :  { %2128 = vst [vmem:[#allocation8 + $0xd0] sm:$0xff] %v2096_v15  ;;  %2607 = vrsqrt.f32 %v2036_v0 }
 0x386   :  { %v2602_v17 = vpop.eup %2601  ;;  %v2005_v60 = vpop.xlane.xlu1 %2004 }
 0x387   :  { %v2097_v44 = vmul.f32 %v2602_v17, %v3318_v51  ;;  %v2037_v57 = vmax.f32 %v2005_v60, 1e-24 }
 0x389   :  { %2129 = vst [vmem:[#allocation8 + $0xd8] sm:$0xff] %v2097_v44  ;;  %2609 = vrsqrt.f32 %v2037_v57 }
 0x38a   :  { %v2604_v63 = vpop.eup %2603 }
 0x38b   :  { %v2098_v62 = vmul.f32 %v2604_v63, %v3323_v19 }
 0x38d   :  { %2130 = vst [vmem:[#allocation8 + $0xe0] sm:$0xff] %v2098_v62 }
 0x38e   :  { %v2606_v54 = vpop.eup %2605 }
 0x38f   :  { %v2099_v13 = vmul.f32 %v2606_v54, %v3328_v46 }
 0x391   :  { %2131 = vst [vmem:[#allocation8 + $0xe8] sm:$0xff] %v2099_v13 }
 0x392   :  { %v2608_v39 = vpop.eup %2607 }
 0x393   :  { %v2100_v9 = vmul.f32 %v2608_v39, %v3333_v61 }
 0x395   :  { %2132 = vst [vmem:[#allocation8 + $0xf0] sm:$0xff] %v2100_v9 }
 0x396   :  { %v2610_v10 = vpop.eup %2609 }
 0x397   :  { %v2101_v51 = vmul.f32 %v2610_v10, %v3338_v22 }
 0x399   :  { %2133 = vst [vmem:[#allocation8 + $0xf8] sm:$0xff] %v2101_v51 }
 0x39a   :  { %2682 = shalt.err (!%p2679_p5)
}
 0x39b   :  { %2145 = dma.vmem_to_hbm [thread:$0]  %s2140_s14, 4096, %s3385_s5, [#allocation4], %s2698_s21, %s2698_s21, %s2699_s22  }
 0x39c   :  { %2695 = dma.done.wait [#allocation4], 4096  }
 0x39d   :  { %2696 = vsyncadd [#allocation4], 4294963200 }
 0x39e   :  { %2149 = vsyncpa [#allocation3], 1 }
 0x39f   :  { %2150 = vsyncpa [#allocation6], 1 }
 0x3a0   :  { %2151 = vsyncpa [#allocation4], 1 }

// kernel: tpu_custom_call.1
= control target key start
LH: loop header
LB: loop body
LE: loop exit
PB: predicated region body
PF: predicated region fallthrough
CT: control target
= control target key end

     0   :  { %10 = vsyncpa [#allocation3], 0  ;;  %s3380_s0 = inlined_call_operand.hbm [shape: f32[256,768], index: 0, kind: input, shape index: {}]   ;;  %s3381_s1 = inlined_call_operand.hbm [shape: bf16[768,256], index: 1, kind: input, shape index: {}]   ;;  %s3382_s2 = inlined_call_operand.vmem [shape: f32[1,256], index: 2, kind: input, shape index: {}]   ;;  %s3383_s3 = inlined_call_operand.hbm [shape: bf16[256,128], index: 3, kind: input, shape index: {}]   ;;  %s3384_s4 = inlined_call_operand.vmem [shape: f32[1,128], index: 4, kind: input, shape index: {}]   ;;  %s3385_s5 = inlined_call_operand.hbm [shape: f32[256,128], index: 5, kind: output, shape index: {}]  }
   0x1   :  { %11 = vsyncpa [#allocation6], 0 }
   0x2   :  { %12 = vsyncpa [#allocation4], 0  ;;  %s2697_s18 = smov [#allocation5]  }
   0x3   :  { %s30_s19 = sshll.u32 %s2697_s18, 4  ;;  %s31_s19 = int_to_ptr.vmem [resolvable:$true] %s30_s19 }
   0x4   :  { %s2619_s20 = scalar_lea.vmem %s31_s19, 12288  ;;  %p2624_p1 = scmp.lt.s32.totalorder %s31_s19, %s31_s19 }
   0x5   :  { %p2620_p0 = scmp.ne.s32.totalorder %s31_s19, %s2619_s20  ;;  %p2625_p2 = scmp.lt.s32.totalorder %s2619_s20, %s2619_s20 }
   0x7   :  { %p2626_p3 = por %p2625_p2, %p2624_p1 }
   0x9   :  { %p2627_p4 = pnand %p2626_p3, %p2620_p0 }
   0xb   :  { %2630 = shalt.err (!%p2627_p4)
}
   0xc   :  { %s2698_s21 = smov 128   ;;  %s2699_s22 = smov 8  }
   0xd   :  { %36 = dma.hbm_to_vmem [thread:$0]  %s3381_s1, 12288, %s31_s19, [#allocation6], %s2698_s21, %s2698_s21, %s2699_s22  }
   0xe   :  { %s2700_s25 = smov [#allocation2]  }
   0xf   :  { %s18_s26 = sshll.u32 %s2700_s25, 4  ;;  %s19_s26 = int_to_ptr.vmem [resolvable:$true] %s18_s26 }
  0x10   :  { %s2639_s27 = scalar_lea.vmem %s19_s26, 24576  ;;  %p2644_p6 = scmp.lt.s32.totalorder %s19_s26, %s19_s26 }
  0x11   :  { %p2640_p5 = scmp.ne.s32.totalorder %s19_s26, %s2639_s27  ;;  %p2645_p7 = scmp.lt.s32.totalorder %s2639_s27, %s2639_s27 }
  0x13   :  { %p2646_p8 = por %p2645_p7, %p2644_p6 }
  0x15   :  { %p2647_p9 = pnand %p2646_p8, %p2640_p5 }
  0x17   :  { %2650 = shalt.err (!%p2647_p9)
}
  0x18   :  { %s2701_s28 = smov 768   ;;  %s2702_s29 = smov 48  }
  0x19   :  { %24 = dma.hbm_to_vmem [thread:$0]  %s3380_s0, 24576, %s19_s26, [#allocation3], %s2701_s28, %s2701_s28, %s2702_s29  }
  0x1a   :  { %s2703_s7 = smov [#allocation7]  }
  0x1b   :  { %s44_s8 = sshll.u32 %s2703_s7, 4  ;;  %s45_s8 = int_to_ptr.vmem [resolvable:$true] %s44_s8 }
  0x1c   :  { %s2659_s1 = scalar_lea.vmem %s45_s8, 2048  ;;  %p2664_p11 = scmp.lt.s32.totalorder %s45_s8, %s45_s8 }
  0x1d   :  { %p2660_p10 = scmp.ne.s32.totalorder %s45_s8, %s2659_s1  ;;  %p2665_p12 = scmp.lt.s32.totalorder %s2659_s1, %s2659_s1 }
  0x1f   :  { %p2666_p13 = por %p2665_p12, %p2664_p11 }
  0x21   :  { %p2667_p0 = pnand %p2666_p13, %p2660_p10 }
  0x23   :  { %2670 = shalt.err (!%p2667_p0)
}
  0x24   :  { %s2704_s9 = smov 64   ;;  %s2705_s10 = smov 4  }
  0x25   :  { %50 = dma.hbm_to_vmem [thread:$0]  %s3383_s3, 2048, %s45_s8, [#allocation6], %s2704_s9, %s2704_s9, %s2705_s10  }
  0x26   :  { %2691 = dma.done.wait [#allocation3], 24576  }
  0x27   :  { %2692 = vsyncadd [#allocation3], 4294942720 }
  0x28   :  { %2693 = dma.done.wait [#allocation6], 14336  }
  0x29   :  { %2694 = vsyncadd [#allocation6], 4294952960  ;;  %v2387_v0 = vld [vmem:[#allocation5 + $0x74] ss:$8 sps:$4 sm:$0xff]   ;;  %v2389_v1 = vld [vmem:[#allocation5 + $0x70] ss:$8 sps:$4 sm:$0xff]  }
  0x2a   :  { %939 = vmatprep.subr.bf16.mxu0 %v2387_v0  ;;  %v2390_v2 = vld [vmem:[#allocation5 + $0x174] ss:$8 sps:$4 sm:$0xff]   ;;  %v2392_v3 = vld [vmem:[#allocation5 + $0x170] ss:$8 sps:$4 sm:$0xff]   ;;  %v2393_v4 = vld [vmem:[#allocation5 + $0x64] ss:$8 sps:$4 sm:$0xff]  }
  0x2b   :  { %940 = vmatpush1.bf16.msra.mxu0 %v2389_v1  ;;  %v2395_v5 = vld [vmem:[#allocation5 + $0x60] ss:$8 sps:$4 sm:$0xff]   ;;  %1132 = vmatprep.subr.bf16.mxu1 %v2390_v2  ;;  %v2396_v6 = vld [vmem:[#allocation5 + $0x164] ss:$8 sps:$4 sm:$0xff]   ;;  %v2399_v8 = vld [vmem:[#allocation5 + $0x54] ss:$8 sps:$4 sm:$0xff]  }
  0x2c   :  { %1133 = vmatpush1.bf16.msra.mxu1 %v2392_v3  ;;  %941 = vmatprep.subr.bf16.mxu0 %v2393_v4  ;;  %v2398_v7 = vld [vmem:[#allocation5 + $0x160] ss:$8 sps:$4 sm:$0xff]   ;;  %v2401_v9 = vld [vmem:[#allocation5 + $0x50] ss:$8 sps:$4 sm:$0xff]   ;;  %v2402_v10 = vld [vmem:[#allocation5 + $0x154] ss:$8 sps:$4 sm:$0xff]  }
  0x2d   :  { %1134 = vmatprep.subr.bf16.mxu1 %v2396_v6  ;;  %v2405_v11 = vld [vmem:[#allocation5 + $0x44] ss:$8 sps:$4 sm:$0xff]   ;;  %v2404_v12 = vld [vmem:[#allocation5 + $0x150] ss:$8 sps:$4 sm:$0xff]   ;;  %v2407_v14 = vld [vmem:[#allocation5 + $0x40] ss:$8 sps:$4 sm:$0xff]  }
  0x2e   :  { %v2408_v13 = vld [vmem:[#allocation5 + $0x144] ss:$8 sps:$4 sm:$0xff]   ;;  %v2411_v15 = vld [vmem:[#allocation5 + $0x34] ss:$8 sps:$4 sm:$0xff]   ;;  %v2410_v16 = vld [vmem:[#allocation5 + $0x140] ss:$8 sps:$4 sm:$0xff]  }
  0x2f   :  { %942 = vmatpush1.bf16.msra.mxu0 %v2395_v5  ;;  %v2414_v17 = vld [vmem:[#allocation5 + $0x134] ss:$8 sps:$4 sm:$0xff]   ;;  %v2413_v18 = vld [vmem:[#allocation5 + $0x30] ss:$8 sps:$4 sm:$0xff]   ;;  %v2417_v19 = vld [vmem:[#allocation5 + $0x24] ss:$8 sps:$4 sm:$0xff]  }
  0x30   :  { %943 = vmatprep.subr.bf16.mxu0 %v2399_v8  ;;  %1135 = vmatpush1.bf16.msra.mxu1 %v2398_v7  ;;  %v2416_v20 = vld [vmem:[#allocation5 + $0x130] ss:$8 sps:$4 sm:$0xff]   ;;  %v2420_v21 = vld [vmem:[#allocation5 + $0x124] ss:$8 sps:$4 sm:$0xff]   ;;  %v2419_v22 = vld [vmem:[#allocation5 + $0x20] ss:$8 sps:$4 sm:$0xff]  }
  0x31   :  { %1136 = vmatprep.subr.bf16.mxu1 %v2402_v10  ;;  %v2423_v23 = vld [vmem:[#allocation5 + $0x14] ss:$8 sps:$4 sm:$0xff]   ;;  %v2422_v24 = vld [vmem:[#allocation5 + $0x120] ss:$8 sps:$4 sm:$0xff]   ;;  %v2425_v26 = vld [vmem:[#allocation5 + $0x10] ss:$8 sps:$4 sm:$0xff]  }
  0x32   :  { %v2426_v25 = vld [vmem:[#allocation5 + $0x114] ss:$8 sps:$4 sm:$0xff]   ;;  %v2429_v27 = vld [vmem:[#allocation5 + $0x4] ss:$8 sps:$4 sm:$0xff]   ;;  %v2428_v28 = vld [vmem:[#allocation5 + $0x110] ss:$8 sps:$4 sm:$0xff]  }
  0x33   :  { %944 = vmatpush1.bf16.msra.mxu0 %v2401_v9  ;;  %v2432_v29 = vld [vmem:[#allocation5 + $0x104] ss:$8 sps:$4 sm:$0xff]   ;;  %v2431_v30 = vld [vmem:[#allocation5] ss:$8 sps:$4 sm:$0xff]   ;;  %v2435_v31 = vld [vmem:[#allocation5 + $0xf4] ss:$8 sps:$4 sm:$0xff]  }
  0x34   :  { %945 = vmatprep.subr.bf16.mxu0 %v2405_v11  ;;  %1137 = vmatpush1.bf16.msra.mxu1 %v2404_v12  ;;  %v2434_v32 = vld [vmem:[#allocation5 + $0x100] ss:$8 sps:$4 sm:$0xff]   ;;  %v2438_v33 = vld [vmem:[#allocation5 + $0x1f4] ss:$8 sps:$4 sm:$0xff]   ;;  %v2437_v34 = vld [vmem:[#allocation5 + $0xf0] ss:$8 sps:$4 sm:$0xff]  }
  0x35   :  { %1138 = vmatprep.subr.bf16.mxu1 %v2408_v13  ;;  %v2441_v35 = vld [vmem:[#allocation5 + $0xe4] ss:$8 sps:$4 sm:$0xff]   ;;  %v2440_v36 = vld [vmem:[#allocation5 + $0x1f0] ss:$8 sps:$4 sm:$0xff]   ;;  %v2443_v38 = vld [vmem:[#allocation5 + $0xe0] ss:$8 sps:$4 sm:$0xff]  }
  0x36   :  { %v2444_v37 = vld [vmem:[#allocation5 + $0x1e4] ss:$8 sps:$4 sm:$0xff]   ;;  %v2447_v39 = vld [vmem:[#allocation5 + $0xd4] ss:$8 sps:$4 sm:$0xff]   ;;  %v2446_v40 = vld [vmem:[#allocation5 + $0x1e0] ss:$8 sps:$4 sm:$0xff]  }
  0x37   :  { %946 = vmatpush1.bf16.msra.mxu0 %v2407_v14  ;;  %v2450_v41 = vld [vmem:[#allocation5 + $0x1d4] ss:$8 sps:$4 sm:$0xff]   ;;  %v2449_v42 = vld [vmem:[#allocation5 + $0xd0] ss:$8 sps:$4 sm:$0xff]   ;;  %v2453_v43 = vld [vmem:[#allocation5 + $0xc4] ss:$8 sps:$4 sm:$0xff]  }
  0x38   :  { %947 = vmatprep.subr.bf16.mxu0 %v2411_v15  ;;  %1139 = vmatpush1.bf16.msra.mxu1 %v2410_v16  ;;  %v2452_v44 = vld [vmem:[#allocation5 + $0x1d0] ss:$8 sps:$4 sm:$0xff]   ;;  %v2456_v45 = vld [vmem:[#allocation5 + $0x1c4] ss:$8 sps:$4 sm:$0xff]   ;;  %v2455_v48 = vld [vmem:[#allocation5 + $0xc0] ss:$8 sps:$4 sm:$0xff]  }
  0x39   :  { %1140 = vmatprep.subr.bf16.mxu1 %v2414_v17  ;;  %v64_v46 = vld [vmem:[#allocation2 + $0x8] sm:$0xff]  ;;  %v70_v47 = vld [vmem:[#allocation2 + $0x38] sm:$0xff]  ;;  %v63_v5 = vld [vmem:[#allocation2] sm:$0xff] }
  0x3a   :  { %v256_v49 = vpack.c.bf16 %v70_v47, %v64_v46  ;;  %v2459_v50 = vld [vmem:[#allocation5 + $0xb4] ss:$8 sps:$4 sm:$0xff]   ;;  %v2458_v51 = vld [vmem:[#allocation5 + $0x1c0] ss:$8 sps:$4 sm:$0xff]   ;;  %v2461_v56 = vld [vmem:[#allocation5 + $0xb0] ss:$8 sps:$4 sm:$0xff]  }
  0x3b   :  { %948 = vmatpush1.bf16.msra.mxu0 %v2413_v18  ;;  %v66_v52 = vld [vmem:[#allocation2 + $0x18] sm:$0xff]  ;;  %v72_v53 = vld [vmem:[#allocation2 + $0x48] sm:$0xff]  ;;  %v69_v6 = vld [vmem:[#allocation2 + $0x30] sm:$0xff] }
  0x3c   :  { %949 = vmatprep.subr.bf16.mxu0 %v2417_v19  ;;  %1141 = vmatpush1.bf16.msra.mxu1 %v2416_v20  ;;  %v2462_v54 = vld [vmem:[#allocation5 + $0x1b4] ss:$8 sps:$4 sm:$0xff]   ;;  %v258_v55 = vpack.c.bf16 %v72_v53, %v66_v52  ;;  %v2465_v57 = vld [vmem:[#allocation5 + $0xa4] ss:$8 sps:$4 sm:$0xff]   ;;  %v2464_v58 = vld [vmem:[#allocation5 + $0x1b0] ss:$8 sps:$4 sm:$0xff]   ;;  %v255_v13 = vpack.c.bf16 %v69_v6, %v63_v5 }
  0x3d   :  { %1142 = vmatprep.subr.bf16.mxu1 %v2420_v21  ;;  %971 = vmatprep.mubr.bf16.mxu0 %v256_v49  ;;  %v2468_v59 = vld [vmem:[#allocation5 + $0x1a4] ss:$8 sps:$4 sm:$0xff]   ;;  %v2467_v60 = vld [vmem:[#allocation5 + $0xa0] ss:$8 sps:$4 sm:$0xff]   ;;  %v2471_v61 = vld [vmem:[#allocation5 + $0x94] ss:$8 sps:$4 sm:$0xff]  }
  0x3e   :  { %1164 = vmatprep.mubr.bf16.mxu1 %v258_v55  ;;  %v2470_v62 = vld [vmem:[#allocation5 + $0x1a0] ss:$8 sps:$4 sm:$0xff]   ;;  %v2474_v63 = vld [vmem:[#allocation5 + $0x194] ss:$8 sps:$4 sm:$0xff]   ;;  %v2473_v0 = vld [vmem:[#allocation5 + $0x90] ss:$8 sps:$4 sm:$0xff]  }
  0x3f   :  { %950 = vmatpush1.bf16.msra.mxu0 %v2419_v22  ;;  %v2477_v1 = vld [vmem:[#allocation5 + $0x84] ss:$8 sps:$4 sm:$0xff]   ;;  %v2476_v2 = vld [vmem:[#allocation5 + $0x190] ss:$8 sps:$4 sm:$0xff]   ;;  %v2479_v3 = vld [vmem:[#allocation5 + $0x80] ss:$8 sps:$4 sm:$0xff]  }
  0x40   :  { %951 = vmatprep.subr.bf16.mxu0 %v2423_v23  ;;  %1143 = vmatpush1.bf16.msra.mxu1 %v2422_v24  ;;  %v2480_v4 = vld [vmem:[#allocation5 + $0x184] ss:$8 sps:$4 sm:$0xff]   ;;  %v2485_v7 = vld [vmem:[#allocation5 + $0x274] ss:$8 sps:$4 sm:$0xff]   ;;  %v2482_v10 = vld [vmem:[#allocation5 + $0x180] ss:$8 sps:$4 sm:$0xff]  }
  0x41   :  { %1144 = vmatprep.subr.bf16.mxu1 %v2426_v25  ;;  %v76_v8 = vld [vmem:[#allocation2 + $0x68] sm:$0xff]  ;;  %v82_v9 = vld [vmem:[#allocation2 + $0x98] sm:$0xff]  ;;  %v65_v11 = vld [vmem:[#allocation2 + $0x10] sm:$0xff] }
  0x42   :  { %v71_v12 = vld [vmem:[#allocation2 + $0x40] sm:$0xff]  ;;  %v78_v14 = vld [vmem:[#allocation2 + $0x78] sm:$0xff]  ;;  %v84_v15 = vld [vmem:[#allocation2 + $0xa8] sm:$0xff]  ;;  %v262_v17 = vpack.c.bf16 %v82_v9, %v76_v8 }
  0x43   :  { %952 = vmatpush1.bf16.msra.mxu0 %v2425_v26  ;;  %v2483_v16 = vld [vmem:[#allocation5 + $0x270] ss:$8 sps:$4 sm:$0xff]   ;;  %v257_v18 = vpack.c.bf16 %v71_v12, %v65_v11  ;;  %v2488_v19 = vld [vmem:[#allocation5 + $0x264] ss:$8 sps:$4 sm:$0xff]   ;;  %v264_v20 = vpack.c.bf16 %v84_v15, %v78_v14  ;;  %v2486_v23 = vld [vmem:[#allocation5 + $0x260] ss:$8 sps:$4 sm:$0xff]  }
  0x44   :  { %953 = vmatprep.subr.bf16.mxu0 %v2429_v27  ;;  %1145 = vmatpush1.bf16.msra.mxu1 %v2428_v28  ;;  %v75_v21 = vld [vmem:[#allocation2 + $0x60] sm:$0xff]  ;;  %v81_v22 = vld [vmem:[#allocation2 + $0x90] sm:$0xff]  ;;  %v88_v24 = vld [vmem:[#allocation2 + $0xc8] sm:$0xff] }
  0x45   :  { %1146 = vmatprep.subr.bf16.mxu1 %v2432_v29  ;;  %v94_v25 = vld [vmem:[#allocation2 + $0xf8] sm:$0xff]  ;;  %v77_v27 = vld [vmem:[#allocation2 + $0x70] sm:$0xff]  ;;  %v83_v28 = vld [vmem:[#allocation2 + $0xa0] sm:$0xff]  ;;  %v261_v29 = vpack.c.bf16 %v81_v22, %v75_v21 }
  0x46   :  { %v2491_v26 = vld [vmem:[#allocation5 + $0x254] ss:$8 sps:$4 sm:$0xff]   ;;  %v108_v47 = vld [vmem:[#allocation2 + $0x168] sm:$0xff]  ;;  %v2495_v49 = vld [vmem:[#allocation5 + $0x230] ss:$8 sps:$4 sm:$0xff]  }
  0x47   :  { %954 = vmatpush1.bf16.msra.mxu0 %v2431_v30  ;;  %v90_v30 = vld [vmem:[#allocation2 + $0xd8] sm:$0xff]  ;;  %v99_v53 = vld [vmem:[#allocation2 + $0x120] sm:$0xff]  ;;  %v112_v55 = vld [vmem:[#allocation2 + $0x188] sm:$0xff] }
  0x48   :  { %955 = vmatprep.subr.bf16.mxu0 %v2435_v31  ;;  %1147 = vmatpush1.bf16.msra.mxu1 %v2434_v32  ;;  %v96_v31 = vld [vmem:[#allocation2 + $0x108] sm:$0xff]  ;;  %v268_v32 = vpack.c.bf16 %v94_v25, %v88_v24  ;;  %v102_v46 = vld [vmem:[#allocation2 + $0x138] sm:$0xff]  ;;  %v111_v5 = vld [vmem:[#allocation2 + $0x180] sm:$0xff] }
  0x49   :  { %1148 = vmatprep.subr.bf16.mxu1 %v2438_v33  ;;  %v2489_v33 = vld [vmem:[#allocation5 + $0x250] ss:$8 sps:$4 sm:$0xff]   ;;  %v276_v52 = vpack.c.bf16 %v108_v47, %v102_v46  ;;  %v2504_v9 = vld [vmem:[#allocation5 + $0x200] ss:$8 sps:$4 sm:$0xff]  }
  0x4a   :  { %v117_v6 = vld [vmem:[#allocation2 + $0x1b0] sm:$0xff]  ;;  %v130_v8 = vld [vmem:[#allocation2 + $0x218] sm:$0xff]  ;;  %v119_v12 = vld [vmem:[#allocation2 + $0x1c0] sm:$0xff] }
  0x4b   :  { %956 = vmatpush2.bf16.msra.mxu0 %v2437_v34  ;;  %v263_v34 = vpack.c.bf16 %v83_v28, %v77_v27  ;;  %v113_v11 = vld [vmem:[#allocation2 + $0x190] sm:$0xff]  ;;  %v126_v14 = vld [vmem:[#allocation2 + $0x1f8] sm:$0xff]  ;;  %v132_v15 = vld [vmem:[#allocation2 + $0x228] sm:$0xff] }
  0x4c   :  { %957 = vmatprep.subr.bf16.mxu0 %v2441_v35  ;;  %1149 = vmatpush2.bf16.msra.mxu1 %v2440_v36  ;;  %v2494_v35 = vld [vmem:[#allocation5 + $0x244] ss:$8 sps:$4 sm:$0xff]   ;;  %v270_v36 = vpack.c.bf16 %v96_v31, %v90_v30  ;;  %v129_v22 = vld [vmem:[#allocation2 + $0x210] sm:$0xff]  ;;  %v142_v24 = vld [vmem:[#allocation2 + $0x278] sm:$0xff] }
  0x4d   :  { %1150 = vmatprep.subr.bf16.mxu1 %v2444_v37  ;;  %v87_v37 = vld [vmem:[#allocation2 + $0xc0] sm:$0xff]  ;;  %v125_v27 = vld [vmem:[#allocation2 + $0x1f0] sm:$0xff]  ;;  %v138_v30 = vld [vmem:[#allocation2 + $0x258] sm:$0xff] }
  0x4e   :  { %v123_v21 = vld [vmem:[#allocation2 + $0x1e0] sm:$0xff]  ;;  %v144_v31 = vld [vmem:[#allocation2 + $0x288] sm:$0xff]  ;;  %v150_v46 = vld [vmem:[#allocation2 + $0x2b8] sm:$0xff] }
  0x4f   :  { %958 = vmatpush2.bf16.msra.mxu0 %v2443_v38  ;;  %v93_v38 = vld [vmem:[#allocation2 + $0xf0] sm:$0xff]  ;;  %v2510_v25 = vld [vmem:[#allocation5 + $0x2e0] ss:$8 sps:$4 sm:$0xff]  }
  0x50   :  { %959 = vmatprep.subr.bf16.mxu0 %v2447_v39  ;;  %1151 = vmatpush2.bf16.msra.mxu1 %v2446_v40  ;;  %v100_v39 = vld [vmem:[#allocation2 + $0x128] sm:$0xff]  ;;  %v106_v40 = vld [vmem:[#allocation2 + $0x158] sm:$0xff]  ;;  %v131_v28 = vld [vmem:[#allocation2 + $0x220] sm:$0xff] }
  0x51   :  { %1152 = vmatprep.subr.bf16.mxu1 %v2450_v41  ;;  %v2492_v41 = vld [vmem:[#allocation5 + $0x240] ss:$8 sps:$4 sm:$0xff]  }
  0x52   :  { %v156_v47 = vld [vmem:[#allocation2 + $0x2e8] sm:$0xff] }
  0x53   :  { %960 = vmatpush2.bf16.msra.mxu0 %v2449_v42  ;;  %v2497_v42 = vld [vmem:[#allocation5 + $0x234] ss:$8 sps:$4 sm:$0xff]  }
  0x54   :  { %961 = vmatprep.subr.bf16.mxu0 %v2453_v43  ;;  %1153 = vmatpush2.bf16.msra.mxu1 %v2452_v44  ;;  %v89_v43 = vld [vmem:[#allocation2 + $0xd0] sm:$0xff]  ;;  %v95_v44 = vld [vmem:[#allocation2 + $0x100] sm:$0xff] }
  0x55   :  { %1154 = vmatprep.subr.bf16.mxu1 %v2456_v45  ;;  %v267_v45 = vpack.c.bf16 %v93_v38, %v87_v37  ;;  %v135_v37 = vld [vmem:[#allocation2 + $0x240] sm:$0xff]  ;;  %v141_v38 = vld [vmem:[#allocation2 + $0x270] sm:$0xff] }
  0x57   :  { %962 = vmatpush2.bf16.msra.mxu0 %v2455_v48  ;;  %v274_v48 = vpack.c.bf16 %v106_v40, %v100_v39  ;;  %v2516_v39 = vld [vmem:[#allocation5 + $0x2c0] ss:$8 sps:$4 sm:$0xff]  }
  0x58   :  { %963 = vmatprep.subr.bf16.mxu0 %v2459_v50  ;;  %1155 = vmatpush2.bf16.msra.mxu1 %v2458_v51  ;;  %v269_v50 = vpack.c.bf16 %v95_v44, %v89_v43  ;;  %v2500_v51 = vld [vmem:[#allocation5 + $0x224] ss:$8 sps:$4 sm:$0xff]   ;;  %v137_v43 = vld [vmem:[#allocation2 + $0x250] sm:$0xff] }
  0x59   :  { %1156 = vmatprep.subr.bf16.mxu1 %v2462_v54  ;;  %v105_v54 = vld [vmem:[#allocation2 + $0x150] sm:$0xff]  ;;  %v148_v40 = vld [vmem:[#allocation2 + $0x2a8] sm:$0xff]  ;;  %v143_v44 = vld [vmem:[#allocation2 + $0x280] sm:$0xff] }
  0x5b   :  { %964 = vmatpush2.bf16.msra.mxu0 %v2461_v56  ;;  %v118_v56 = vld [vmem:[#allocation2 + $0x1b8] sm:$0xff] }
  0x5c   :  { %965 = vmatprep.subr.bf16.mxu0 %v2465_v57  ;;  %1157 = vmatpush2.bf16.msra.mxu1 %v2464_v58  ;;  %v2498_v57 = vld [vmem:[#allocation5 + $0x220] ss:$8 sps:$4 sm:$0xff]   ;;  %v2503_v58 = vld [vmem:[#allocation5 + $0x214] ss:$8 sps:$4 sm:$0xff]  }
  0x5d   :  { %1158 = vmatprep.subr.bf16.mxu1 %v2468_v59  ;;  %v101_v59 = vld [vmem:[#allocation2 + $0x130] sm:$0xff] }
  0x5f   :  { %966 = vmatpush2.bf16.msra.mxu0 %v2467_v60  ;;  %v107_v60 = vld [vmem:[#allocation2 + $0x160] sm:$0xff] }
  0x60   :  { %967 = vmatprep.subr.bf16.mxu0 %v2471_v61  ;;  %1159 = vmatpush2.bf16.msra.mxu1 %v2470_v62  ;;  %v273_v61 = vpack.c.bf16 %v105_v54, %v99_v53  ;;  %v114_v62 = vld [vmem:[#allocation2 + $0x198] sm:$0xff]  ;;  %v147_v53 = vld [vmem:[#allocation2 + $0x2a0] sm:$0xff]  ;;  %v153_v54 = vld [vmem:[#allocation2 + $0x2d0] sm:$0xff] }
  0x61   :  { %1160 = vmatprep.subr.bf16.mxu1 %v2474_v63  ;;  %v120_v63 = vld [vmem:[#allocation2 + $0x1c8] sm:$0xff] }
  0x63   :  { %968 = vmatpush2.bf16.msra.mxu0 %v2473_v0  ;;  %v280_v0 = vpack.c.bf16 %v118_v56, %v112_v55  ;;  %v149_v55 = vld [vmem:[#allocation2 + $0x2b0] sm:$0xff]  ;;  %v155_v56 = vld [vmem:[#allocation2 + $0x2e0] sm:$0xff] }
  0x64   :  { %969 = vmatprep.subr.bf16.mxu0 %v2477_v1  ;;  %1161 = vmatpush2.bf16.msra.mxu1 %v2476_v2  ;;  %v2501_v1 = vld [vmem:[#allocation5 + $0x210] ss:$8 sps:$4 sm:$0xff]   ;;  %v275_v2 = vpack.c.bf16 %v107_v60, %v101_v59  ;;  %v2522_v59 = vld [vmem:[#allocation5 + $0x2a0] ss:$8 sps:$4 sm:$0xff]  }
  0x65   :  { %1162 = vmatprep.subr.bf16.mxu1 %v2480_v4  ;;  %v282_v4 = vpack.c.bf16 %v120_v63, %v114_v62  ;;  %v162_v60 = vld [vmem:[#allocation2 + $0x318] sm:$0xff] }
  0x66   :  { %v2527_v62 = vld [vmem:[#allocation5 + $0x294] ss:$8 sps:$4 sm:$0xff]   ;;  %v2525_v63 = vld [vmem:[#allocation5 + $0x290] ss:$8 sps:$4 sm:$0xff]  }
  0x67   :  { %970 = vmatpush2.bf16.msra.mxu0 %v2479_v3  ;;  %v2506_v3 = vld [vmem:[#allocation5 + $0x204] ss:$8 sps:$4 sm:$0xff]  }
  0x68   :  { %1325 = vmatprep.subr.bf16.mxu0 %v2485_v7  ;;  %1163 = vmatpush2.bf16.msra.mxu1 %v2482_v10  ;;  %v124_v7 = vld [vmem:[#allocation2 + $0x1e8] sm:$0xff]  ;;  %v2509_v10 = vld [vmem:[#allocation5 + $0x2f4] ss:$8 sps:$4 sm:$0xff]  }
  0x6a   :  { %972 = vmatmul.mubr.bf16.vlgmr.msra.gmra.mxu0 %v255_v13  ;;  %v279_v13 = vpack.c.bf16 %v117_v6, %v111_v5  ;;  %v165_v5 = vld [vmem:[#allocation2 + $0x330] sm:$0xff] }
  0x6b   :  { %1326 = vmatpush1.bf16.msra.mxu0 %v2483_v16  ;;  %981 = vmatprep.mubr.bf16.mxu0 %v262_v17  ;;  %v286_v16 = vpack.c.bf16 %v130_v8, %v124_v7  ;;  %v2507_v17 = vld [vmem:[#allocation5 + $0x2f0] ss:$8 sps:$4 sm:$0xff]   ;;  %v172_v7 = vld [vmem:[#allocation2 + $0x368] sm:$0xff] }
  0x6c   :  { %1165 = vmatmul.mubr.bf16.vlgmr.msra.gmra.mxu1 %v257_v18  ;;  %1327 = vmatprep.subr.bf16.mxu0 %v2488_v19  ;;  %v281_v18 = vpack.c.bf16 %v119_v12, %v113_v11  ;;  %v2512_v19 = vld [vmem:[#allocation5 + $0x2e4] ss:$8 sps:$4 sm:$0xff]   ;;  %v178_v8 = vld [vmem:[#allocation2 + $0x398] sm:$0xff]  ;;  %v2528_v11 = vld [vmem:[#allocation5 + $0x280] ss:$8 sps:$4 sm:$0xff]  }
  0x6d   :  { %1174 = vmatprep.mubr.bf16.mxu1 %v264_v20  ;;  %v288_v20 = vpack.c.bf16 %v132_v15, %v126_v14  ;;  %v174_v12 = vld [vmem:[#allocation2 + $0x378] sm:$0xff]  ;;  %v310_v15 = vpack.c.bf16 %v178_v8, %v172_v7  ;;  %v225_v7 = vld [vmem:[#allocation2 + $0x510] sm:$0xff]  ;;  %v232_v8 = vld [vmem:[#allocation2 + $0x548] sm:$0xff] }
  0x6f   :  { %1328 = vmatpush1.bf16.msra.mxu0 %v2486_v23  ;;  %v136_v23 = vld [vmem:[#allocation2 + $0x248] sm:$0xff] }
  0x70   :  { %1329 = vmatprep.subr.bf16.mxu0 %v2491_v26  ;;  %v2515_v26 = vld [vmem:[#allocation5 + $0x2d4] ss:$8 sps:$4 sm:$0xff]  }
  0x72   :  { %982 = vmatmul.mubr.bf16.gmra.mxu0 %v261_v29  ;;  %v285_v29 = vpack.c.bf16 %v129_v22, %v123_v21  ;;  %v190_v21 = vld [vmem:[#allocation2 + $0x3f8] sm:$0xff]  ;;  %v173_v22 = vld [vmem:[#allocation2 + $0x370] sm:$0xff] }
  0x73   :  { %991 = vmatprep.mubr.bf16.mxu0 %v268_v32  ;;  %1330 = vmatpush1.bf16.msra.mxu0 %v2489_v33  ;;  %v292_v32 = vpack.c.bf16 %v142_v24, %v136_v23  ;;  %v2513_v33 = vld [vmem:[#allocation5 + $0x2d0] ss:$8 sps:$4 sm:$0xff]   ;;  %v179_v23 = vld [vmem:[#allocation2 + $0x3a0] sm:$0xff] }
  0x74   :  { %1175 = vmatmul.mubr.bf16.gmra.mxu1 %v263_v34  ;;  %1331 = vmatprep.subr.bf16.mxu0 %v2494_v35  ;;  %v287_v34 = vpack.c.bf16 %v131_v28, %v125_v27  ;;  %v2518_v35 = vld [vmem:[#allocation5 + $0x2c4] ss:$8 sps:$4 sm:$0xff]   ;;  %v311_v28 = vpack.c.bf16 %v179_v23, %v173_v22  ;;  %v233_v22 = vld [vmem:[#allocation2 + $0x550] sm:$0xff] }
  0x75   :  { %1184 = vmatprep.mubr.bf16.mxu1 %v270_v36  ;;  %v294_v36 = vpack.c.bf16 %v144_v31, %v138_v30  ;;  %v183_v30 = vld [vmem:[#allocation2 + $0x3c0] sm:$0xff]  ;;  %v189_v31 = vld [vmem:[#allocation2 + $0x3f0] sm:$0xff] }
  0x76   :  { %v239_v23 = vld [vmem:[#allocation2 + $0x580] sm:$0xff] }
  0x77   :  { %1332 = vmatpush1.bf16.msra.mxu0 %v2492_v41  ;;  %v154_v41 = vld [vmem:[#allocation2 + $0x2d8] sm:$0xff] }
  0x78   :  { %1333 = vmatprep.subr.bf16.mxu0 %v2497_v42  ;;  %v2521_v42 = vld [vmem:[#allocation5 + $0x2b4] ss:$8 sps:$4 sm:$0xff]  }
  0x7a   :  { %992 = vmatmul.mubr.bf16.gmra.mxu0 %v267_v45  ;;  %v291_v45 = vpack.c.bf16 %v141_v38, %v135_v37  ;;  %v198_v37 = vld [vmem:[#allocation2 + $0x438] sm:$0xff]  ;;  %v204_v38 = vld [vmem:[#allocation2 + $0x468] sm:$0xff] }
  0x7b   :  { %1001 = vmatprep.mubr.bf16.mxu0 %v274_v48  ;;  %1334 = vmatpush1.bf16.msra.mxu0 %v2495_v49  ;;  %v298_v48 = vpack.c.bf16 %v154_v41, %v148_v40  ;;  %v2519_v49 = vld [vmem:[#allocation5 + $0x2b0] ss:$8 sps:$4 sm:$0xff]   ;;  %v324_v41 = vpack.c.bf16 %v204_v38, %v198_v37  ;;  %v251_v37 = vld [vmem:[#allocation2 + $0x5e0] sm:$0xff] }
  0x7c   :  { %1185 = vmatmul.mubr.bf16.gmra.mxu1 %v269_v50  ;;  %1335 = vmatprep.subr.bf16.mxu0 %v2500_v51  ;;  %v293_v50 = vpack.c.bf16 %v143_v44, %v137_v43  ;;  %v2524_v51 = vld [vmem:[#allocation5 + $0x2a4] ss:$8 sps:$4 sm:$0xff]   ;;  %v2532_v43 = vld [vmem:[#allocation7 + $0x38] sm:$0xff]  }
  0x7d   :  { %1194 = vmatprep.mubr.bf16.mxu1 %v276_v52  ;;  %v300_v52 = vpack.c.bf16 %v156_v47, %v150_v46  ;;  %v195_v44 = vld [vmem:[#allocation2 + $0x420] sm:$0xff]  ;;  %v208_v46 = vld [vmem:[#allocation2 + $0x488] sm:$0xff]  ;;  %v214_v47 = vld [vmem:[#allocation2 + $0x4b8] sm:$0xff] }
  0x7f   :  { %1336 = vmatpush1.bf16.msra.mxu0 %v2498_v57  ;;  %v160_v57 = vld [vmem:[#allocation2 + $0x308] sm:$0xff] }
  0x80   :  { %1337 = vmatprep.subr.bf16.mxu0 %v2503_v58  ;;  %v166_v58 = vld [vmem:[#allocation2 + $0x338] sm:$0xff] }
  0x82   :  { %1002 = vmatmul.mubr.bf16.gmra.mxu0 %v273_v61  ;;  %v168_v61 = vld [vmem:[#allocation2 + $0x348] sm:$0xff] }
  0x83   :  { %1011 = vmatprep.mubr.bf16.mxu0 %v280_v0  ;;  %1338 = vmatpush1.bf16.msra.mxu0 %v2501_v1  ;;  %v297_v0 = vpack.c.bf16 %v153_v54, %v147_v53  ;;  %v2530_v1 = vld [vmem:[#allocation5 + $0x284] ss:$8 sps:$4 sm:$0xff]   ;;  %v306_v6 = vpack.c.bf16 %v168_v61, %v162_v60  ;;  %v328_v53 = vpack.c.bf16 %v214_v47, %v208_v46  ;;  %v209_v60 = vld [vmem:[#allocation2 + $0x490] sm:$0xff] }
  0x84   :  { %1195 = vmatmul.mubr.bf16.gmra.mxu1 %v275_v2  ;;  %1339 = vmatprep.subr.bf16.mxu0 %v2506_v3  ;;  %v304_v2 = vpack.c.bf16 %v166_v58, %v160_v57  ;;  %v299_v3 = vpack.c.bf16 %v155_v56, %v149_v55  ;;  %v207_v56 = vld [vmem:[#allocation2 + $0x480] sm:$0xff]  ;;  %v213_v57 = vld [vmem:[#allocation2 + $0x4b0] sm:$0xff]  ;;  %v220_v58 = vld [vmem:[#allocation2 + $0x4e8] sm:$0xff] }
  0x85   :  { %1204 = vmatprep.mubr.bf16.mxu1 %v282_v4  ;;  %v159_v4 = vld [vmem:[#allocation2 + $0x300] sm:$0xff] }
  0x86   :  { %v303_v14 = vpack.c.bf16 %v165_v5, %v159_v4  ;;  %v215_v61 = vld [vmem:[#allocation2 + $0x4c0] sm:$0xff]  ;;  %v2533_v4 = vld [vmem:[#allocation7 + $0x70] sm:$0xff]  }
  0x87   :  { %1340 = vmatpush1.bf16.msra.mxu0 %v2504_v9  ;;  %v161_v9 = vld [vmem:[#allocation2 + $0x310] sm:$0xff]  ;;  %v2537_v47 = vld [vmem:[#allocation7 + $0x60] sm:$0xff]  }
  0x88   :  { %1341 = vmatprep.subr.bf16.mxu0 %v2509_v10  ;;  %v167_v10 = vld [vmem:[#allocation2 + $0x340] sm:$0xff]  ;;  %v2534_v5 = vld [vmem:[#allocation7 + $0x30] sm:$0xff]  }
  0x8a   :  { %1012 = vmatmul.mubr.bf16.gmra.mxu0 %v279_v13  ;;  %v180_v13 = vld [vmem:[#allocation2 + $0x3a8] sm:$0xff] }
  0x8b   :  { %1021 = vmatprep.mubr.bf16.mxu0 %v286_v16  ;;  %1342 = vmatpush2.bf16.msra.mxu0 %v2507_v17  ;;  %v305_v16 = vpack.c.bf16 %v167_v10, %v161_v9  ;;  %v312_v17 = vpack.c.bf16 %v180_v13, %v174_v12  ;;  %v238_v9 = vld [vmem:[#allocation2 + $0x578] sm:$0xff]  ;;  %v221_v10 = vld [vmem:[#allocation2 + $0x4f0] sm:$0xff] }
  0x8c   :  { %1205 = vmatmul.mubr.bf16.gmra.mxu1 %v281_v18  ;;  %1343 = vmatprep.subr.bf16.mxu0 %v2512_v19  ;;  %v171_v18 = vld [vmem:[#allocation2 + $0x360] sm:$0xff]  ;;  %v177_v19 = vld [vmem:[#allocation2 + $0x390] sm:$0xff]  ;;  %v234_v13 = vld [vmem:[#allocation2 + $0x558] sm:$0xff] }
  0x8d   :  { %1214 = vmatprep.mubr.bf16.mxu1 %v288_v20  ;;  %v184_v20 = vld [vmem:[#allocation2 + $0x3c8] sm:$0xff]  ;;  %v309_v24 = vpack.c.bf16 %v177_v19, %v171_v18  ;;  %v231_v18 = vld [vmem:[#allocation2 + $0x540] sm:$0xff]  ;;  %v237_v19 = vld [vmem:[#allocation2 + $0x570] sm:$0xff] }
  0x8e   :  { %v316_v27 = vpack.c.bf16 %v190_v21, %v184_v20  ;;  %v244_v20 = vld [vmem:[#allocation2 + $0x5a8] sm:$0xff]  ;;  %v250_v21 = vld [vmem:[#allocation2 + $0x5d8] sm:$0xff] }
  0x8f   :  { %1344 = vmatpush2.bf16.msra.mxu0 %v2510_v25  ;;  %v186_v25 = vld [vmem:[#allocation2 + $0x3d8] sm:$0xff] }
  0x90   :  { %1345 = vmatprep.subr.bf16.mxu0 %v2515_v26  ;;  %v192_v26 = vld [vmem:[#allocation2 + $0x408] sm:$0xff] }
  0x92   :  { %1022 = vmatmul.mubr.bf16.gmra.mxu0 %v285_v29  ;;  %v318_v29 = vpack.c.bf16 %v192_v26, %v186_v25  ;;  %v246_v25 = vld [vmem:[#allocation2 + $0x5b8] sm:$0xff]  ;;  %v252_v26 = vld [vmem:[#allocation2 + $0x5e8] sm:$0xff] }
  0x93   :  { %1031 = vmatprep.mubr.bf16.mxu0 %v292_v32  ;;  %1346 = vmatpush2.bf16.msra.mxu0 %v2513_v33  ;;  %v196_v32 = vld [vmem:[#allocation2 + $0x428] sm:$0xff]  ;;  %v202_v33 = vld [vmem:[#allocation2 + $0x458] sm:$0xff] }
  0x94   :  { %1215 = vmatmul.mubr.bf16.gmra.mxu1 %v287_v34  ;;  %1347 = vmatprep.subr.bf16.mxu0 %v2518_v35  ;;  %v185_v34 = vld [vmem:[#allocation2 + $0x3d0] sm:$0xff]  ;;  %v191_v35 = vld [vmem:[#allocation2 + $0x400] sm:$0xff] }
  0x95   :  { %1224 = vmatprep.mubr.bf16.mxu1 %v294_v36  ;;  %v315_v36 = vpack.c.bf16 %v189_v31, %v183_v30  ;;  %v317_v40 = vpack.c.bf16 %v191_v35, %v185_v34  ;;  %v2535_v30 = vld [vmem:[#allocation7 + $0x68] sm:$0xff]   ;;  %v74_v35 = vld [vmem:[#allocation2 + $0x58] sm:$0xff] }
  0x96   :  { %v2536_v31 = vld [vmem:[#allocation7 + $0x28] sm:$0xff]  }
  0x97   :  { %1348 = vmatpush2.bf16.msra.mxu0 %v2516_v39  ;;  %v322_v39 = vpack.c.bf16 %v202_v33, %v196_v32  ;;  %v243_v32 = vld [vmem:[#allocation2 + $0x5a0] sm:$0xff]  ;;  %v249_v33 = vld [vmem:[#allocation2 + $0x5d0] sm:$0xff]  ;;  %v68_v34 = vld [vmem:[#allocation2 + $0x28] sm:$0xff] }
  0x98   :  { %1349 = vmatprep.subr.bf16.mxu0 %v2521_v42  ;;  %v2531_v42 = vld [vmem:[#allocation7 + $0x78] sm:$0xff]   ;;  %v345_v38 = vpack.c.bf16 %v249_v33, %v243_v32  ;;  %v163_v33 = vld [vmem:[#allocation2 + $0x320] sm:$0xff] }
  0x99   :  { %2265 = vmatprep.subr.bf16.mxu1 %v2531_v42  ;;  %v73_v42 = vld [vmem:[#allocation2 + $0x50] sm:$0xff] }
  0x9a   :  { %1032 = vmatmul.mubr.bf16.gmra.mxu0 %v291_v45  ;;  %v201_v45 = vld [vmem:[#allocation2 + $0x450] sm:$0xff]  ;;  %2266 = vmatpush3.bf16.msra.mxu1 %v2532_v43  ;;  %v80_v43 = vld [vmem:[#allocation2 + $0x88] sm:$0xff] }
  0x9b   :  { %1041 = vmatprep.mubr.bf16.mxu0 %v298_v48  ;;  %1350 = vmatpush2.bf16.msra.mxu0 %v2519_v49  ;;  %v197_v48 = vld [vmem:[#allocation2 + $0x430] sm:$0xff]  ;;  %v203_v49 = vld [vmem:[#allocation2 + $0x460] sm:$0xff] }
  0x9c   :  { %1225 = vmatmul.mubr.bf16.gmra.mxu1 %v293_v50  ;;  %1351 = vmatprep.subr.bf16.mxu0 %v2524_v51  ;;  %v321_v50 = vpack.c.bf16 %v201_v45, %v195_v44  ;;  %v210_v51 = vld [vmem:[#allocation2 + $0x498] sm:$0xff]  ;;  %v323_v54 = vpack.c.bf16 %v203_v49, %v197_v48  ;;  %v2538_v48 = vld [vmem:[#allocation7 + $0x20] sm:$0xff]  }
  0x9d   :  { %1234 = vmatprep.mubr.bf16.mxu1 %v300_v52  ;;  %v216_v52 = vld [vmem:[#allocation2 + $0x4c8] sm:$0xff]  ;;  %2267 = vmatprep.subr.bf16.mxu1 %v2533_v4  ;;  %v86_v44 = vld [vmem:[#allocation2 + $0xb8] sm:$0xff]  ;;  %v79_v49 = vld [vmem:[#allocation2 + $0x80] sm:$0xff] }
  0x9e   :  { %v330_v55 = vpack.c.bf16 %v216_v52, %v210_v51  ;;  %2268 = vmatpush3.bf16.msra.mxu1 %v2534_v5  ;;  %v266_v46 = vpack.c.bf16 %v86_v44, %v80_v43  ;;  %v92_v51 = vld [vmem:[#allocation2 + $0xe8] sm:$0xff]  ;;  %v98_v52 = vld [vmem:[#allocation2 + $0x118] sm:$0xff]  ;;  %v115_v5 = vld [vmem:[#allocation2 + $0x1a0] sm:$0xff] }
  0x9f   :  { %1352 = vmatpush2.bf16.msra.mxu0 %v2522_v59  ;;  %v226_v59 = vld [vmem:[#allocation2 + $0x518] sm:$0xff]  ;;  %2269 = vmatprep.subr.bf16.mxu1 %v2535_v30  ;;  %v181_v43 = vld [vmem:[#allocation2 + $0x3b0] sm:$0xff] }
  0xa0   :  { %1353 = vmatprep.subr.bf16.mxu0 %v2527_v62  ;;  %v327_v62 = vpack.c.bf16 %v213_v57, %v207_v56  ;;  %v97_v56 = vld [vmem:[#allocation2 + $0x110] sm:$0xff]  ;;  %v104_v57 = vld [vmem:[#allocation2 + $0x148] sm:$0xff]  ;;  %v170_v30 = vld [vmem:[#allocation2 + $0x358] sm:$0xff] }
  0xa2   :  { %1042 = vmatmul.mubr.bf16.gmra.mxu0 %v297_v0  ;;  %v228_v0 = vld [vmem:[#allocation2 + $0x528] sm:$0xff]  ;;  %2270 = vmatpush3.bf16.msra.mxu1 %v2536_v31 }
  0xa3   :  { %1051 = vmatprep.mubr.bf16.mxu0 %v304_v2  ;;  %1354 = vmatpush2.bf16.msra.mxu0 %v2525_v63  ;;  %v222_v63 = vld [vmem:[#allocation2 + $0x4f8] sm:$0xff]  ;;  %v329_v2 = vpack.c.bf16 %v215_v61, %v209_v60 }
  0xa4   :  { %1235 = vmatmul.mubr.bf16.gmra.mxu1 %v299_v3  ;;  %1355 = vmatprep.subr.bf16.mxu0 %v2530_v1  ;;  %v334_v1 = vpack.c.bf16 %v226_v59, %v220_v58  ;;  %v336_v3 = vpack.c.bf16 %v228_v0, %v222_v63  ;;  %v110_v58 = vld [vmem:[#allocation2 + $0x178] sm:$0xff]  ;;  %v103_v63 = vld [vmem:[#allocation2 + $0x140] sm:$0xff]  ;;  %v109_v0 = vld [vmem:[#allocation2 + $0x170] sm:$0xff] }
  0xa5   :  { %1244 = vmatprep.mubr.bf16.mxu1 %v306_v6  ;;  %v219_v6 = vld [vmem:[#allocation2 + $0x4e0] sm:$0xff]  ;;  %2271 = vmatprep.subr.bf16.mxu1 %v2537_v47  ;;  %v278_v60 = vpack.c.bf16 %v110_v58, %v104_v57  ;;  %v2539_v61 = vld [vmem:[#allocation7 + $0x58] sm:$0xff]  }
  0xa6   :  { %v333_v12 = vpack.c.bf16 %v225_v7, %v219_v6  ;;  %2272 = vmatpush3.bf16.msra.mxu1 %v2538_v48  ;;  %v121_v6 = vld [vmem:[#allocation2 + $0x1d0] sm:$0xff]  ;;  %v128_v7 = vld [vmem:[#allocation2 + $0x208] sm:$0xff]  ;;  %v194_v47 = vld [vmem:[#allocation2 + $0x418] sm:$0xff] }
  0xa7   :  { %1356 = vmatpush2.bf16.msra.mxu0 %v2528_v11  ;;  %v227_v11 = vld [vmem:[#allocation2 + $0x520] sm:$0xff]  ;;  %2273 = vmatprep.subr.bf16.mxu1 %v2539_v61 }
  0xaa   :  { %1052 = vmatmul.mubr.bf16.gmra.mxu0 %v303_v14  ;;  %v240_v14 = vld [vmem:[#allocation2 + $0x588] sm:$0xff] }
  0xab   :  { %1061 = vmatprep.mubr.bf16.mxu0 %v310_v15  ;;  %v340_v15 = vpack.c.bf16 %v238_v9, %v232_v8  ;;  %v134_v8 = vld [vmem:[#allocation2 + $0x238] sm:$0xff]  ;;  %v283_v9 = vpack.c.bf16 %v121_v6, %v115_v5 }
  0xac   :  { %1245 = vmatmul.mubr.bf16.gmra.mxu1 %v305_v16  ;;  %v335_v16 = vpack.c.bf16 %v227_v11, %v221_v10  ;;  %v290_v10 = vpack.c.bf16 %v134_v8, %v128_v7  ;;  %v2541_v11 = vld [vmem:[#allocation7 + $0x50] sm:$0xff]   ;;  %v212_v7 = vld [vmem:[#allocation2 + $0x4a8] sm:$0xff]  ;;  %v218_v8 = vld [vmem:[#allocation2 + $0x4d8] sm:$0xff] }
  0xad   :  { %1254 = vmatprep.mubr.bf16.mxu1 %v312_v17  ;;  %v342_v17 = vpack.c.bf16 %v240_v14, %v234_v13  ;;  %v127_v13 = vld [vmem:[#allocation2 + $0x200] sm:$0xff]  ;;  %v133_v14 = vld [vmem:[#allocation2 + $0x230] sm:$0xff] }
  0xb2   :  { %1062 = vmatmul.mubr.bf16.gmra.mxu0 %v309_v24  ;;  %v339_v24 = vpack.c.bf16 %v237_v19, %v231_v18  ;;  %v139_v19 = vld [vmem:[#allocation2 + $0x260] sm:$0xff] }
  0xb3   :  { %1071 = vmatprep.mubr.bf16.mxu0 %v316_v27  ;;  %v346_v27 = vpack.c.bf16 %v250_v21, %v244_v20  ;;  %v145_v20 = vld [vmem:[#allocation2 + $0x290] sm:$0xff]  ;;  %v152_v21 = vld [vmem:[#allocation2 + $0x2c8] sm:$0xff] }
  0xb4   :  { %1255 = vmatmul.mubr.bf16.gmra.mxu1 %v311_v28  ;;  %v341_v28 = vpack.c.bf16 %v239_v23, %v233_v22  ;;  %v158_v22 = vld [vmem:[#allocation2 + $0x2f8] sm:$0xff]  ;;  %v295_v23 = vpack.c.bf16 %v145_v20, %v139_v19  ;;  %v224_v19 = vld [vmem:[#allocation2 + $0x508] sm:$0xff] }
  0xb5   :  { %1264 = vmatprep.mubr.bf16.mxu1 %v318_v29  ;;  %v348_v29 = vpack.c.bf16 %v252_v26, %v246_v25  ;;  %v2543_v25 = vld [vmem:[#allocation7 + $0x48] sm:$0xff]   ;;  %v230_v20 = vld [vmem:[#allocation2 + $0x538] sm:$0xff] }
  0xb6   :  { %v2544_v26 = vld [vmem:[#allocation7 + $0x8] sm:$0xff]  }
  0xba   :  { %1072 = vmatmul.mubr.bf16.gmra.mxu0 %v315_v36  ;;  %v245_v36 = vld [vmem:[#allocation2 + $0x5b0] sm:$0xff] }
  0xbb   :  { %1081 = vmatprep.mubr.bf16.mxu0 %v322_v39  ;;  %v260_v39 = vpack.c.bf16 %v74_v35, %v68_v34  ;;  %v169_v34 = vld [vmem:[#allocation2 + $0x350] sm:$0xff]  ;;  %v176_v35 = vld [vmem:[#allocation2 + $0x388] sm:$0xff] }
  0xbc   :  { %1265 = vmatmul.mubr.bf16.gmra.mxu1 %v317_v40  ;;  %v347_v40 = vpack.c.bf16 %v251_v37, %v245_v36  ;;  %v182_v36 = vld [vmem:[#allocation2 + $0x3b8] sm:$0xff]  ;;  %v307_v37 = vpack.c.bf16 %v169_v34, %v163_v33 }
  0xbd   :  { %1274 = vmatprep.mubr.bf16.mxu1 %v324_v41  ;;  %v67_v41 = vld [vmem:[#allocation2 + $0x20] sm:$0xff] }
  0xbe   :  { %v259_v45 = vpack.c.bf16 %v73_v42, %v67_v41  ;;  %v175_v42 = vld [vmem:[#allocation2 + $0x380] sm:$0xff] }
  0xc2   :  { %1082 = vmatmul.mubr.bf16.gmra.mxu0 %v321_v50  ;;  %v85_v50 = vld [vmem:[#allocation2 + $0xb0] sm:$0xff] }
  0xc3   :  { %1091 = vmatprep.mubr.bf16.mxu0 %v328_v53  ;;  %v265_v53 = vpack.c.bf16 %v85_v50, %v79_v49  ;;  %v313_v50 = vpack.c.bf16 %v181_v43, %v175_v42 }
  0xc4   :  { %1275 = vmatmul.mubr.bf16.gmra.mxu1 %v323_v54  ;;  %v272_v54 = vpack.c.bf16 %v98_v52, %v92_v51 }
  0xc5   :  { %1284 = vmatprep.mubr.bf16.mxu1 %v330_v55  ;;  %v91_v55 = vld [vmem:[#allocation2 + $0xe0] sm:$0xff] }
  0xc6   :  { %v271_v59 = vpack.c.bf16 %v97_v56, %v91_v55  ;;  %v187_v55 = vld [vmem:[#allocation2 + $0x3e0] sm:$0xff]  ;;  %v193_v56 = vld [vmem:[#allocation2 + $0x410] sm:$0xff] }
  0xca   :  { %1092 = vmatmul.mubr.bf16.gmra.mxu0 %v327_v62  ;;  %v2540_v62 = vld [vmem:[#allocation7 + $0x18] sm:$0xff]  }
  0xcb   :  { %1101 = vmatprep.mubr.bf16.mxu0 %v334_v1  ;;  %v116_v1 = vld [vmem:[#allocation2 + $0x1a8] sm:$0xff]  ;;  %2274 = vmatpush3.bf16.msra.mxu1 %v2540_v62  ;;  %v319_v62 = vpack.c.bf16 %v193_v56, %v187_v55 }
  0xcc   :  { %1285 = vmatmul.mubr.bf16.gmra.mxu1 %v329_v2  ;;  %v122_v2 = vld [vmem:[#allocation2 + $0x1d8] sm:$0xff]  ;;  %2275 = vmatprep.subr.bf16.mxu1 %v2541_v11  ;;  %v332_v11 = vpack.c.bf16 %v218_v8, %v212_v7 }
  0xcd   :  { %1294 = vmatprep.mubr.bf16.mxu1 %v336_v3  ;;  %v277_v3 = vpack.c.bf16 %v109_v0, %v103_v63  ;;  %v284_v4 = vpack.c.bf16 %v122_v2, %v116_v1 }
  0xd2   :  { %1102 = vmatmul.mubr.bf16.gmra.mxu0 %v333_v12  ;;  %v2542_v12 = vld [vmem:[#allocation7 + $0x10] sm:$0xff]  }
  0xd3   :  { %1111 = vmatprep.mubr.bf16.mxu0 %v340_v15  ;;  %v140_v15 = vld [vmem:[#allocation2 + $0x268] sm:$0xff]  ;;  %2276 = vmatpush3.bf16.msra.mxu1 %v2542_v12 }
  0xd4   :  { %1295 = vmatmul.mubr.bf16.gmra.mxu1 %v335_v16  ;;  %v146_v16 = vld [vmem:[#allocation2 + $0x298] sm:$0xff]  ;;  %2277 = vmatprep.subr.bf16.mxu1 %v2543_v25 }
  0xd5   :  { %1304 = vmatprep.mubr.bf16.mxu1 %v342_v17  ;;  %v289_v17 = vpack.c.bf16 %v133_v14, %v127_v13  ;;  %v296_v18 = vpack.c.bf16 %v146_v16, %v140_v15  ;;  %v211_v15 = vld [vmem:[#allocation2 + $0x4a0] sm:$0xff]  ;;  %v217_v16 = vld [vmem:[#allocation2 + $0x4d0] sm:$0xff] }
  0xd7   :  { %2278 = vmatpush3.bf16.msra.mxu1 %v2544_v26 }
  0xda   :  { %1112 = vmatmul.mubr.bf16.gmra.mxu0 %v339_v24  ;;  %v302_v24 = vpack.c.bf16 %v158_v22, %v152_v21  ;;  %v331_v22 = vpack.c.bf16 %v217_v16, %v211_v15 }
  0xdb   :  { %1121 = vmatprep.mubr.bf16.mxu0 %v346_v27  ;;  %v151_v27 = vld [vmem:[#allocation2 + $0x2c0] sm:$0xff] }
  0xdc   :  { %1305 = vmatmul.mubr.bf16.gmra.mxu1 %v341_v28  ;;  %v157_v28 = vld [vmem:[#allocation2 + $0x2f0] sm:$0xff] }
  0xdd   :  { %1314 = vmatprep.mubr.bf16.mxu1 %v348_v29  ;;  %v164_v29 = vld [vmem:[#allocation2 + $0x328] sm:$0xff]  ;;  %v301_v31 = vpack.c.bf16 %v157_v28, %v151_v27  ;;  %v223_v27 = vld [vmem:[#allocation2 + $0x500] sm:$0xff]  ;;  %v229_v28 = vld [vmem:[#allocation2 + $0x530] sm:$0xff] }
  0xde   :  { %v308_v32 = vpack.c.bf16 %v170_v30, %v164_v29  ;;  %v337_v34 = vpack.c.bf16 %v229_v28, %v223_v27 }
  0xe2   :  { %1122 = vmatmul.mubr.bf16.gmra.mxu0 %v345_v38  ;;  %v314_v38 = vpack.c.bf16 %v182_v36, %v176_v35 }
  0xe3   :  { %1357 = vmatprep.mubr.bf16.mxu0 %v260_v39  ;;  %v2545_v39 = vld [vmem:[#allocation7 + $0x40] sm:$0xff]  }
  0xe4   :  { %1315 = vmatmul.mubr.bf16.gmra.mxu1 %v347_v40  ;;  %v2546_v40 = vld [vmem:[#allocation7] sm:$0xff]   ;;  %2279 = vmatprep.subr.bf16.mxu1 %v2545_v39 }
  0xe5   :  { %2280 = vmatpush3.bf16.msra.mxu1 %v2546_v40  ;;  %v235_v39 = vld [vmem:[#allocation2 + $0x560] sm:$0xff]  ;;  %v241_v40 = vld [vmem:[#allocation2 + $0x590] sm:$0xff] }
  0xea   :  { %1358 = vmatmul.mubr.bf16.vlgmr.msra.gmra.mxu0 %v259_v45 }
  0xeb   :  { %1367 = vmatprep.mubr.bf16.mxu0 %v266_v46  ;;  %v188_v46 = vld [vmem:[#allocation2 + $0x3e8] sm:$0xff] }
  0xec   :  { %v320_v51 = vpack.c.bf16 %v194_v47, %v188_v46  ;;  %v248_v46 = vld [vmem:[#allocation2 + $0x5c8] sm:$0xff]  ;;  %v254_v47 = vld [vmem:[#allocation2 + $0x5f8] sm:$0xff] }
  0xed   :  { %v350_v55 = vpack.c.bf16 %v254_v47, %v248_v46 }
  0xf2   :  { %1368 = vmatmul.mubr.bf16.gmra.mxu0 %v265_v53 }
  0xf3   :  { %1377 = vmatprep.mubr.bf16.mxu0 %v272_v54 }
  0xfa   :  { %1378 = vmatmul.mubr.bf16.gmra.mxu0 %v271_v59  ;;  %v200_v59 = vld [vmem:[#allocation2 + $0x448] sm:$0xff] }
  0xfb   :  { %1387 = vmatprep.mubr.bf16.mxu0 %v278_v60  ;;  %v206_v60 = vld [vmem:[#allocation2 + $0x478] sm:$0xff] }
  0xfc   :  { %v326_v63 = vpack.c.bf16 %v206_v60, %v200_v59 }
 0x102   :  { %1388 = vmatmul.mubr.bf16.gmra.mxu0 %v277_v3  ;;  %v199_v3 = vld [vmem:[#allocation2 + $0x440] sm:$0xff] }
 0x103   :  { %1397 = vmatprep.mubr.bf16.mxu0 %v284_v4  ;;  %v205_v4 = vld [vmem:[#allocation2 + $0x470] sm:$0xff] }
 0x10a   :  { %1398 = vmatmul.mubr.bf16.gmra.mxu0 %v283_v9 }
 0x10b   :  { %1407 = vmatprep.mubr.bf16.mxu0 %v290_v10  ;;  %v325_v10 = vpack.c.bf16 %v205_v4, %v199_v3 }
 0x112   :  { %1408 = vmatmul.mubr.bf16.gmra.mxu0 %v289_v17 }
 0x113   :  { %1417 = vmatprep.mubr.bf16.mxu0 %v296_v18 }
 0x11a   :  { %1418 = vmatmul.mubr.bf16.gmra.mxu0 %v295_v23  ;;  %v338_v23 = vpack.c.bf16 %v230_v20, %v224_v19 }
 0x11b   :  { %1427 = vmatprep.mubr.bf16.mxu0 %v302_v24 }
 0x122   :  { %1428 = vmatmul.mubr.bf16.gmra.mxu0 %v301_v31  ;;  %v236_v31 = vld [vmem:[#allocation2 + $0x568] sm:$0xff] }
 0x123   :  { %1437 = vmatprep.mubr.bf16.mxu0 %v308_v32  ;;  %v242_v32 = vld [vmem:[#allocation2 + $0x598] sm:$0xff] }
 0x124   :  { %v344_v35 = vpack.c.bf16 %v242_v32, %v236_v31 }
 0x12a   :  { %v2749_v41 = vpop.f32.mrf.mxu0  ;;  %1438 = vmatmul.mubr.bf16.gmra.mxu0 %v307_v37 }
 0x12b   :  { %1447 = vmatprep.mubr.bf16.mxu0 %v314_v38 }
 0x12c   :  { %v2751_v44 = vpop.f32.mrf.mxu0  ;;  %v2753_v45 = vpop.f32.mrf.mxu1 }
 0x12e   :  { %v2755_v48 = vpop.f32.mrf.mxu0  ;;  %v2757_v49 = vpop.f32.mrf.mxu1 }
 0x130   :  { %v2759_v52 = vpop.f32.mrf.mxu0  ;;  %v2761_v53 = vpop.f32.mrf.mxu1 }
 0x132   :  { %v2763_v54 = vpop.f32.mrf.mxu0  ;;  %1448 = vmatmul.mubr.bf16.gmra.mxu0 %v313_v50  ;;  %v2765_v57 = vpop.f32.mrf.mxu1 }
 0x133   :  { %1457 = vmatprep.mubr.bf16.mxu0 %v320_v51  ;;  %v343_v51 = vpack.c.bf16 %v241_v40, %v235_v39 }
 0x134   :  { %v2767_v58 = vpop.f32.mrf.mxu0  ;;  %v2771_v0 = vpop.f32.mrf.mxu1 }
 0x136   :  { %v2769_v61 = vpop.f32.mrf.mxu0  ;;  %v2777_v5 = vpop.f32.mrf.mxu1 }
 0x138   :  { %v2773_v1 = vpop.f32.mrf.mxu0  ;;  %v2783_v12 = vpop.f32.mrf.mxu1 }
 0x13a   :  { %v2775_v2 = vpop.f32.mrf.mxu0  ;;  %1458 = vmatmul.mubr.bf16.gmra.mxu0 %v319_v62  ;;  %v2789_v17 = vpop.f32.mrf.mxu1  ;;  %v247_v62 = vld [vmem:[#allocation2 + $0x5c0] sm:$0xff] }
 0x13b   :  { %1467 = vmatprep.mubr.bf16.mxu0 %v326_v63  ;;  %v253_v63 = vld [vmem:[#allocation2 + $0x5f0] sm:$0xff] }
 0x13c   :  { %v2779_v6 = vpop.f32.mrf.mxu0  ;;  %v2795_v24 = vpop.f32.mrf.mxu1  ;;  %v349_v8 = vpack.c.bf16 %v253_v63, %v247_v62 }
 0x13e   :  { %v2781_v9 = vpop.f32.mrf.mxu0  ;;  %v2801_v29 = vpop.f32.mrf.mxu1 }
 0x140   :  { %v2785_v13 = vpop.f32.mrf.mxu0  ;;  %v2807_v36 = vpop.f32.mrf.mxu1 }
 0x142   :  { %v2787_v14 = vpop.f32.mrf.mxu0  ;;  %1468 = vmatmul.mubr.bf16.gmra.mxu0 %v325_v10  ;;  %v2813_v42 = vpop.f32.mrf.mxu1 }
 0x143   :  { %1477 = vmatprep.mubr.bf16.mxu0 %v332_v11 }
 0x144   :  { %v2791_v18 = vpop.f32.mrf.mxu0  ;;  %v2819_v56 = vpop.f32.mrf.mxu1 }
 0x146   :  { %v2793_v21 = vpop.f32.mrf.mxu0  ;;  %v2825_v3 = vpop.f32.mrf.mxu1 }
 0x148   :  { %v2797_v25 = vpop.f32.mrf.mxu0  ;;  %v2831_v10 = vpop.f32.mrf.mxu1 }
 0x14a   :  { %v2799_v26 = vpop.f32.mrf.mxu0  ;;  %1478 = vmatmul.mubr.bf16.gmra.mxu0 %v331_v22  ;;  %v2837_v16 = vpop.f32.mrf.mxu1 }
 0x14b   :  { %1487 = vmatprep.mubr.bf16.mxu0 %v338_v23 }
 0x14c   :  { %v2803_v30 = vpop.f32.mrf.mxu0  ;;  %v2843_v22 = vpop.f32.mrf.mxu1 }
 0x14e   :  { %v2805_v33 = vpop.f32.mrf.mxu0  ;;  %v2849_v28 = vpop.f32.mrf.mxu1 }
 0x150   :  { %v2809_v37 = vpop.f32.mrf.mxu0 }
 0x152   :  { %v2811_v38 = vpop.f32.mrf.mxu0  ;;  %1488 = vmatmul.mubr.bf16.gmra.mxu0 %v337_v34  ;;  %v2855_v34 = vpop.f32.mrf.mxu1 }
 0x153   :  { %1497 = vmatprep.mubr.bf16.mxu0 %v344_v35 }
 0x154   :  { %v2815_v43 = vpop.f32.mrf.mxu0  ;;  %v2861_v40 = vpop.f32.mrf.mxu1 }
 0x156   :  { %v2817_v50 = vpop.f32.mrf.mxu0 }
 0x158   :  { %v2821_v59 = vpop.f32.mrf.mxu0 }
 0x15a   :  { %v2823_v60 = vpop.f32.mrf.mxu0  ;;  %1498 = vmatmul.mubr.bf16.gmra.mxu0 %v343_v51  ;;  %v2867_v51 = vpop.f32.mrf.mxu1 }
 0x15b   :  { %1507 = vmatprep.mubr.bf16.mxu0 %v350_v55 }
 0x15c   :  { %v2827_v4 = vpop.f32.mrf.mxu0  ;;  %v2873_v63 = vpop.f32.mrf.mxu1 }
 0x15d   :  { %3386 = vst [vmem:[#allocation12_spill] sm:$0xff] %v2827_v4 }
 0x15e   :  { %v2829_v7 = vpop.f32.mrf.mxu0 }
 0x15f   :  { %3387 = vst [vmem:[#allocation13_spill] sm:$0xff] %v2829_v7 }
 0x160   :  { %v2833_v11 = vpop.f32.mrf.mxu0 }
 0x161   :  { %3388 = vst [vmem:[#allocation14_spill] sm:$0xff] %v2833_v11 }
 0x162   :  { %v2835_v15 = vpop.f32.mrf.mxu0  ;;  %1508 = vmatmul.mubr.bf16.gmra.mxu0 %v349_v8 }
 0x163   :  { %3389 = vst [vmem:[#allocation15_spill] sm:$0xff] %v2835_v15 }
 0x164   :  { %v2839_v19 = vpop.f32.mrf.mxu0 }
 0x165   :  { %3390 = vst [vmem:[#allocation16_spill] sm:$0xff] %v2839_v19 }
 0x166   :  { %v2841_v20 = vpop.f32.mrf.mxu0 }
 0x167   :  { %3391 = vst [vmem:[#allocation17_spill] sm:$0xff] %v2841_v20 }
 0x168   :  { %v2845_v23 = vpop.f32.mrf.mxu0 }
 0x169   :  { %3392 = vst [vmem:[#allocation18_spill] sm:$0xff] %v2845_v23 }
 0x16a   :  { %v2847_v27 = vpop.f32.mrf.mxu0 }
 0x16b   :  { %3393 = vst [vmem:[#allocation19_spill] sm:$0xff] %v2847_v27 }
 0x16c   :  { %v2851_v31 = vpop.f32.mrf.mxu0 }
 0x16d   :  { %3394 = vst [vmem:[#allocation20_spill] sm:$0xff] %v2851_v31 }
 0x16e   :  { %v2853_v32 = vpop.f32.mrf.mxu0 }
 0x16f   :  { %3395 = vst [vmem:[#allocation21_spill] sm:$0xff] %v2853_v32 }
 0x170   :  { %v2857_v35 = vpop.f32.mrf.mxu0 }
 0x171   :  { %3396 = vst [vmem:[#allocation22_spill] sm:$0xff] %v2857_v35  ;;  %v2879_v35 = vpop.f32.mrf.mxu1 }
 0x172   :  { %v2859_v39 = vpop.f32.mrf.mxu0 }
 0x173   :  { %3397 = vst [vmem:[#allocation23_spill] sm:$0xff] %v2859_v39 }
 0x174   :  { %v2863_v46 = vpop.f32.mrf.mxu0 }
 0x175   :  { %3398 = vst [vmem:[#allocation24_spill] sm:$0xff] %v2863_v46  ;;  %v2885_v46 = vpop.f32.mrf.mxu1 }
 0x176   :  { %v2865_v47 = vpop.f32.mrf.mxu0 }
 0x177   :  { %3399 = vst [vmem:[#allocation25_spill] sm:$0xff] %v2865_v47 }
 0x178   :  { %v2869_v55 = vpop.f32.mrf.mxu0 }
 0x179   :  { %3400 = vst [vmem:[#allocation26_spill] sm:$0xff] %v2869_v55  ;;  %v2891_v55 = vpop.f32.mrf.mxu1 }
 0x17a   :  { %v2871_v62 = vpop.f32.mrf.mxu0  ;;  %3408 = vst [vmem:[#allocation34_spill] sm:$0xff] %v2891_v55 }
 0x17b   :  { %3401 = vst [vmem:[#allocation27_spill] sm:$0xff] %v2871_v62 }
 0x17c   :  { %v2875_v8 = vpop.f32.mrf.mxu0 }
 0x17d   :  { %3402 = vst [vmem:[#allocation28_spill] sm:$0xff] %v2875_v8  ;;  %v2897_v8 = vpop.f32.mrf.mxu1 }
 0x17e   :  { %v2877_v32 = vpop.f32.mrf.mxu0  ;;  %3411 = vst [vmem:[#allocation37_spill] sm:$0xff] %v2897_v8 }
 0x17f   :  { %3403 = vst [vmem:[#allocation29_spill] sm:$0xff] %v2877_v32 }
 0x180   :  { %v2881_v39 = vpop.f32.mrf.mxu0 }
 0x181   :  { %3404 = vst [vmem:[#allocation30_spill] sm:$0xff] %v2881_v39  ;;  %v2903_v39 = vpop.f32.mrf.mxu1 }
 0x182   :  { %v2883_v31 = vpop.f32.mrf.mxu0  ;;  %3414 = vst [vmem:[#allocation40_spill] sm:$0xff] %v2903_v39 }
 0x183   :  { %3405 = vst [vmem:[#allocation31_spill] sm:$0xff] %v2883_v31 }
 0x184   :  { %v2887_v47 = vpop.f32.mrf.mxu0 }
 0x185   :  { %3406 = vst [vmem:[#allocation32_spill] sm:$0xff] %v2887_v47  ;;  %v2909_v47 = vpop.f32.mrf.mxu1 }
 0x186   :  { %v2889_v27 = vpop.f32.mrf.mxu0  ;;  %3417 = vst [vmem:[#allocation43_spill] sm:$0xff] %v2909_v47 }
 0x187   :  { %3407 = vst [vmem:[#allocation33_spill] sm:$0xff] %v2889_v27 }
 0x188   :  { %v2893_v62 = vpop.f32.mrf.mxu0 }
 0x189   :  { %3409 = vst [vmem:[#allocation35_spill] sm:$0xff] %v2893_v62  ;;  %v449_v62 = vlaneseq }
 0x18a   :  { %v2895_v23 = vpop.f32.mrf.mxu0 }
 0x18b   :  { %3410 = vst [vmem:[#allocation36_spill] sm:$0xff] %v2895_v23  ;;  %v2915_v23 = vpop.f32.mrf.mxu1 }
 0x18c   :  { %v2899_v32 = vpop.f32.mrf.mxu0  ;;  %3420 = vst [vmem:[#allocation46_spill] sm:$0xff] %v2915_v23 }
 0x18d   :  { %3412 = vst [vmem:[#allocation38_spill] sm:$0xff] %v2899_v32  ;;  %v2921_v11 = vpop.f32.mrf.mxu1 }
 0x18e   :  { %v2901_v20 = vpop.f32.mrf.mxu0  ;;  %3423 = vst [vmem:[#allocation49_spill] sm:$0xff] %v2921_v11 }
 0x18f   :  { %3413 = vst [vmem:[#allocation39_spill] sm:$0xff] %v2901_v20  ;;  %v450_v20 = vshrl.u32 %v449_v62, 7 }
 0x190   :  { %v2905_v31 = vpop.f32.mrf.mxu0 }
 0x191   :  { %3415 = vst [vmem:[#allocation41_spill] sm:$0xff] %v2905_v31  ;;  %v455_v23 = vsub.s32 1, %v450_v20 }
 0x192   :  { %v2907_v19 = vpop.f32.mrf.mxu0 }
 0x193   :  { %3416 = vst [vmem:[#allocation42_spill] sm:$0xff] %v2907_v19  ;;  %v451_v19 = vsub.s32 0, %v450_v20 }
 0x194   :  { %v2911_v27 = vpop.f32.mrf.mxu0 }
 0x195   :  { %3418 = vst [vmem:[#allocation44_spill] sm:$0xff] %v2911_v27  ;;  %v447_v27 = vld [vmem:[%s3382_s2] sm:$0x3] }
 0x196   :  { %v2913_v15 = vpop.f32.mrf.mxu0 }
 0x197   :  { %3419 = vst [vmem:[#allocation45_spill] sm:$0xff] %v2913_v15  ;;  %v2930_v15 = vpop.f32.mrf.mxu1 }
 0x198   :  { %v2917_v8 = vpop.f32.mrf.mxu0  ;;  %3426 = vst [vmem:[#allocation52_spill] sm:$0xff] %v2930_v15 }
 0x199   :  { %3421 = vst [vmem:[#allocation47_spill] sm:$0xff] %v2917_v8  ;;  %v2938_v62 = vpop.f32.mrf.mxu1 }
 0x19a   :  { %v2919_v32 = vpop.f32.mrf.mxu0  ;;  %3429 = vst [vmem:[#allocation55_spill] sm:$0xff] %v2938_v62 }
 0x19b   :  { %3422 = vst [vmem:[#allocation48_spill] sm:$0xff] %v2919_v32  ;;  %v2936_v32 = vrot.slane %v447_v27, %v451_v19  ;;  %v2948_v7 = vpop.f32.mrf.mxu1 }
 0x19c   :  { %v2923_v39 = vpop.f32.mrf.mxu0  ;;  %3432 = vst [vmem:[#allocation58_spill] sm:$0xff] %v2948_v7 }
 0x19d   :  { %3424 = vst [vmem:[#allocation50_spill] sm:$0xff] %v2923_v39  ;;  %v2942_v39 = vrot.slane %v447_v27, %v455_v23  ;;  %v974_v55 = vadd.f32 %v2749_v41, %v2936_v32  ;;  %v978_v19 = vadd.f32 %v2755_v48, %v2936_v32  ;;  %v2959_v27 = vpop.f32.mrf.mxu1 }
 0x19e   :  { %v2925_v31 = vpop.f32.mrf.mxu0 }
 0x19f   :  { %3425 = vst [vmem:[#allocation51_spill] sm:$0xff] %v2925_v31  ;;  %v976_v20 = vadd.f32 %v2751_v44, %v2942_v39  ;;  %v980_v23 = vadd.f32 %v2759_v52, %v2942_v39  ;;  %v984_v44 = vadd.f32 %v2763_v54, %v2936_v32  ;;  %v2968_v52 = vpop.f32.mrf.mxu1 }
 0x1a0   :  { %v2932_v47 = vpop.f32.mrf.mxu0 }
 0x1a1   :  { %3427 = vst [vmem:[#allocation53_spill] sm:$0xff] %v2932_v47  ;;  %v1169_v41 = vadd.f32 %v2757_v49, %v976_v20  ;;  %v1171_v47 = vadd.f32 %v2761_v53, %v978_v19  ;;  %v1173_v48 = vadd.f32 %v2765_v57, %v980_v23  ;;  %v988_v49 = vadd.f32 %v2769_v61, %v2936_v32  ;;  %v2975_v19 = vpop.f32.mrf.mxu1 }
 0x1a2   :  { %v2934_v8 = vpop.f32.mrf.mxu0  ;;  %v990_v57 = vadd.f32 %v2773_v1, %v2942_v39 }
 0x1a3   :  { %3428 = vst [vmem:[#allocation54_spill] sm:$0xff] %v2934_v8 }
 0x1a4   :  { %v2940_v11 = vpop.f32.mrf.mxu0 }
 0x1a5   :  { %3430 = vst [vmem:[#allocation56_spill] sm:$0xff] %v2940_v11  ;;  %v1167_v11 = vadd.f32 %v2753_v45, %v974_v55  ;;  %v986_v45 = vadd.f32 %v2767_v58, %v2942_v39 }
 0x1a6   :  { %v2944_v31 = vpop.f32.mrf.mxu0 }
 0x1a7   :  { %3431 = vst [vmem:[#allocation57_spill] sm:$0xff] %v2944_v31  ;;  %v1179_v23 = vadd.f32 %v2777_v5, %v986_v45  ;;  %v998_v5 = vadd.f32 %v2781_v9, %v2936_v32 }
 0x1a8   :  { %v2950_v15 = vpop.f32.mrf.mxu0 }
 0x1a9   :  { %3433 = vst [vmem:[#allocation59_spill] sm:$0xff] %v2950_v15 }
 0x1aa   :  { %v1359_v8 = vpop.f32.mrf.mxu0 }
 0x1ab   :  { %v1360_v15 = vadd.f32 %v1359_v8, %v1167_v11  ;;  %v1177_v8 = vadd.f32 %v2771_v0, %v984_v44  ;;  %v1183_v44 = vadd.f32 %v2789_v17, %v990_v57  ;;  %v1000_v17 = vadd.f32 %v2785_v13, %v2942_v39 }
 0x1ac   :  { %v1361_v31 = vpop.f32.mrf.mxu0 }
 0x1ad   :  { %v1362_v62 = vadd.f32 %v1361_v31, %v1169_v41  ;;  %v1518_v20 = vmax.f32 %v1360_v15, 0.0  ;;  %v1181_v41 = vadd.f32 %v2783_v12, %v988_v49 }
 0x1ae   :  { %v1363_v7 = vpop.f32.mrf.mxu0 }
 0x1af   :  { %v1364_v4 = vadd.f32 %v1363_v7, %v1171_v47  ;;  %v1519_v31 = vmax.f32 %v1362_v62, 0.0  ;;  %v996_v62 = vadd.f32 %v2779_v6, %v2942_v39 }
 0x1b0   :  { %v1365_v55 = vpop.f32.mrf.mxu0 }
 0x1b1   :  { %v1520_v53 = vmax.f32 %v1364_v4, 0.0  ;;  %v1366_v11 = vadd.f32 %v1365_v55, %v1173_v48  ;;  %v994_v4 = vadd.f32 %v2775_v2, %v2936_v32  ;;  %v2984_v55 = vpop.f32.mrf.mxu1 }
 0x1b2   :  { %v1369_v54 = vpop.f32.mrf.mxu0 }
 0x1b3   :  { %v1582_v7 = vpack.c.bf16 %v1520_v53, %v1518_v20  ;;  %v1521_v47 = vmax.f32 %v1366_v11, 0.0  ;;  %v1370_v15 = vadd.f32 %v1369_v54, %v1177_v8  ;;  %v1187_v2 = vadd.f32 %v2795_v24, %v994_v4  ;;  %v2991_v6 = vpop.f32.mrf.mxu1 }
 0x1b4   :  { %v1371_v58 = vpop.f32.mrf.mxu0 }
 0x1b5   :  { %v1583_v61 = vpack.c.bf16 %v1521_v47, %v1519_v31  ;;  %v1372_v48 = vadd.f32 %v1371_v58, %v1179_v23  ;;  %v1522_v12 = vmax.f32 %v1370_v15, 0.0  ;;  %v1189_v31 = vadd.f32 %v2801_v29, %v996_v62  ;;  %v3000_v15 = vpop.f32.mrf.mxu1 }
 0x1b6   :  { %v1373_v0 = vpop.f32.mrf.mxu0  ;;  %v1004_v58 = vadd.f32 %v2787_v14, %v2936_v32  ;;  %v1193_v23 = vadd.f32 %v2813_v42, %v1000_v17  ;;  %v1008_v29 = vadd.f32 %v2793_v21, %v2936_v32  ;;  %v1010_v42 = vadd.f32 %v2797_v25, %v2942_v39 }
 0x1b7   :  { %v1374_v1 = vadd.f32 %v1373_v0, %v1181_v41  ;;  %1781 = vmatprep.mubr.bf16.mxu1 %v1583_v61  ;;  %v1523_v11 = vmax.f32 %v1372_v48, 0.0  ;;  %v1006_v61 = vadd.f32 %v2791_v18, %v2942_v39  ;;  %v3007_v18 = vpop.f32.mrf.mxu1 }
 0x1b8   :  { %v1375_v20 = vpop.f32.mrf.mxu0  ;;  %1782 = vmatmul.mubr.bf16.vlgmr.msra.gmra.mxu1 %v1582_v7  ;;  %v1191_v7 = vadd.f32 %v2807_v36, %v998_v5  ;;  %v1197_v14 = vadd.f32 %v2819_v56, %v1004_v58 }
 0x1b9   :  { %v1524_v45 = vmax.f32 %v1374_v1, 0.0  ;;  %v1376_v49 = vadd.f32 %v1375_v20, %v1183_v44 }
 0x1ba   :  { %v1379_v53 = vpop.f32.mrf.mxu0 }
 0x1bb   :  { %v1584_v8 = vpack.c.bf16 %v1524_v45, %v1522_v12  ;;  %v1525_v54 = vmax.f32 %v1376_v49, 0.0  ;;  %v1380_v47 = vadd.f32 %v1379_v53, %v1187_v2  ;;  %v1199_v12 = vadd.f32 %v2825_v3, %v1006_v61 }
 0x1bc   :  { %v1381_v57 = vpop.f32.mrf.mxu0  ;;  %v1201_v45 = vadd.f32 %v2831_v10, %v1008_v29  ;;  %v1014_v2 = vadd.f32 %v2799_v26, %v2936_v32  ;;  %v1203_v53 = vadd.f32 %v2837_v16, %v1010_v42  ;;  %v1018_v3 = vadd.f32 %v2805_v33, %v2936_v32 }
 0x1bd   :  { %v1585_v9 = vpack.c.bf16 %v1525_v54, %v1523_v11  ;;  %v1382_v41 = vadd.f32 %v1381_v57, %v1189_v31  ;;  %v1526_v36 = vmax.f32 %v1380_v47, 0.0  ;;  %v1016_v11 = vadd.f32 %v2803_v30, %v2942_v39 }
 0x1be   :  { %v1383_v24 = vpop.f32.mrf.mxu0  ;;  %v1207_v26 = vadd.f32 %v2843_v22, %v1014_v2  ;;  %v1020_v16 = vadd.f32 %v2809_v37, %v2942_v39  ;;  %v1024_v61 = vadd.f32 %v2811_v38, %v2936_v32 }
 0x1bf   :  { %v1384_v13 = vadd.f32 %v1383_v24, %v1191_v7  ;;  %1789 = vmatprep.mubr.bf16.mxu1 %v1585_v9  ;;  %v1527_v1 = vmax.f32 %v1382_v41, 0.0  ;;  %v1211_v41 = vadd.f32 %v2855_v34, %v1018_v3 }
 0x1c0   :  { %v1385_v4 = vpop.f32.mrf.mxu0  ;;  %1790 = vmatmul.mubr.bf16.gmra.mxu1 %v1584_v8  ;;  %v3016_v8 = vpop.f32.mrf.mxu1  ;;  %v1217_v38 = vadd.f32 %v2867_v51, %v1024_v61 }
 0x1c1   :  { %v1528_v0 = vmax.f32 %v1384_v13, 0.0  ;;  %v1386_v44 = vadd.f32 %v1385_v4, %v1193_v23  ;;  %v1209_v23 = vadd.f32 %v2849_v28, %v1016_v11  ;;  %v1213_v4 = vadd.f32 %v2861_v40, %v1020_v16 }
 0x1c2   :  { %v1389_v48 = vpop.f32.mrf.mxu0  ;;  %v3023_v30 = vpop.f32.mrf.mxu1  ;;  %v1028_v28 = vadd.f32 %v2817_v50, %v2936_v32  ;;  %v1030_v40 = vadd.f32 %v2821_v59, %v2942_v39 }
 0x1c3   :  { %v1586_v62 = vpack.c.bf16 %v1528_v0, %v1526_v36  ;;  %v1529_v20 = vmax.f32 %v1386_v44, 0.0  ;;  %v1390_v49 = vadd.f32 %v1389_v48, %v1197_v14  ;;  %v1026_v36 = vadd.f32 %v2815_v43, %v2942_v39 }
 0x1c4   :  { %v1391_v5 = vpop.f32.mrf.mxu0  ;;  %v3032_v0 = vpop.f32.mrf.mxu1  ;;  %v1223_v2 = vadd.f32 %v2885_v46, %v1030_v40  ;;  %v3437_v46 = vld [vmem:[#allocation14_spill] sm:$0xff] }
 0x1c5   :  { %v1587_v21 = vpack.c.bf16 %v1529_v20, %v1527_v1  ;;  %v1392_v17 = vadd.f32 %v1391_v5, %v1199_v12  ;;  %v1530_v10 = vmax.f32 %v1390_v49, 0.0  ;;  %v1219_v12 = vadd.f32 %v2873_v63, %v1026_v36 }
 0x1c6   :  { %v1393_v56 = vpop.f32.mrf.mxu0  ;;  %v3039_v43 = vpop.f32.mrf.mxu1  ;;  %v1034_v49 = vadd.f32 %v2823_v60, %v2936_v32  ;;  %v3436_v60 = vld [vmem:[#allocation34_spill] sm:$0xff] }
 0x1c7   :  { %v1394_v25 = vadd.f32 %v1393_v56, %v1201_v45  ;;  %1797 = vmatprep.mubr.bf16.mxu1 %v1587_v21  ;;  %v1531_v9 = vmax.f32 %v1392_v17, 0.0  ;;  %v1221_v45 = vadd.f32 %v2879_v35, %v1028_v28  ;;  %v3435_v35 = vld [vmem:[#allocation13_spill] sm:$0xff] }
 0x1c8   :  { %v1395_v54 = vpop.f32.mrf.mxu0  ;;  %1798 = vmatmul.mubr.bf16.gmra.mxu1 %v1586_v62  ;;  %v1038_v63 = vadd.f32 %v3435_v35, %v2936_v32 }
 0x1c9   :  { %v1532_v57 = vmax.f32 %v1394_v25, 0.0  ;;  %v1396_v31 = vadd.f32 %v1395_v54, %v1203_v53  ;;  %v3434_v53 = vld [vmem:[#allocation12_spill] sm:$0xff]  ;;  %v3048_v25 = vpop.f32.mrf.mxu1 }
 0x1ca   :  { %v1399_v7 = vpop.f32.mrf.mxu0  ;;  %v1036_v17 = vadd.f32 %v3434_v53, %v2942_v39  ;;  %v3446_v53 = vld [vmem:[#allocation49_spill] sm:$0xff] }
 0x1cb   :  { %v1588_v47 = vpack.c.bf16 %v1532_v57, %v1530_v10  ;;  %v1533_v58 = vmax.f32 %v1396_v31, 0.0  ;;  %v1400_v13 = vadd.f32 %v1399_v7, %v1207_v26  ;;  %v1227_v57 = vadd.f32 %v3436_v60, %v1034_v49 }
 0x1cc   :  { %v1401_v24 = vpop.f32.mrf.mxu0  ;;  %v1040_v26 = vadd.f32 %v3437_v46, %v2942_v39 }
 0x1cd   :  { %v1589_v33 = vpack.c.bf16 %v1533_v58, %v1531_v9  ;;  %v1402_v29 = vadd.f32 %v1401_v24, %v1209_v23  ;;  %v1534_v34 = vmax.f32 %v1400_v13, 0.0  ;;  %v3438_v24 = vld [vmem:[#allocation37_spill] sm:$0xff] }
 0x1ce   :  { %v1403_v22 = vpop.f32.mrf.mxu0  ;;  %v1229_v23 = vadd.f32 %v3438_v24, %v1036_v17  ;;  %v3451_v24 = vld [vmem:[#allocation21_spill] sm:$0xff] }
 0x1cf   :  { %v1404_v37 = vadd.f32 %v1403_v22, %v1211_v41  ;;  %1805 = vmatprep.mubr.bf16.mxu1 %v1589_v33  ;;  %v1535_v1 = vmax.f32 %v1402_v29, 0.0  ;;  %v3439_v41 = vld [vmem:[#allocation40_spill] sm:$0xff]  ;;  %v3440_v22 = vld [vmem:[#allocation15_spill] sm:$0xff] }
 0x1d0   :  { %v1405_v44 = vpop.f32.mrf.mxu0  ;;  %1806 = vmatmul.mubr.bf16.gmra.mxu1 %v1588_v47  ;;  %v3055_v47 = vpop.f32.mrf.mxu1  ;;  %v1231_v33 = vadd.f32 %v3439_v41, %v1038_v63 }
 0x1d1   :  { %v1536_v14 = vmax.f32 %v1404_v37, 0.0  ;;  %v1406_v48 = vadd.f32 %v1405_v44, %v1213_v4  ;;  %v1044_v4 = vadd.f32 %v3440_v22, %v2936_v32  ;;  %v3441_v37 = vld [vmem:[#allocation43_spill] sm:$0xff] }
 0x1d2   :  { %v1409_v42 = vpop.f32.mrf.mxu0  ;;  %v1233_v36 = vadd.f32 %v3441_v37, %v1040_v26 }
 0x1d3   :  { %v1590_v62 = vpack.c.bf16 %v1536_v14, %v1534_v34  ;;  %v1537_v20 = vmax.f32 %v1406_v48, 0.0  ;;  %v1410_v21 = vadd.f32 %v1409_v42, %v1217_v38  ;;  %v3442_v34 = vld [vmem:[#allocation16_spill] sm:$0xff]  ;;  %v3064_v48 = vpop.f32.mrf.mxu1  ;;  %v3443_v42 = vld [vmem:[#allocation17_spill] sm:$0xff] }
 0x1d4   :  { %v1411_v5 = vpop.f32.mrf.mxu0  ;;  %v1046_v14 = vadd.f32 %v3442_v34, %v2942_v39  ;;  %v1048_v40 = vadd.f32 %v3443_v42, %v2936_v32 }
 0x1d5   :  { %v1591_v50 = vpack.c.bf16 %v1537_v20, %v1535_v1  ;;  %v1412_v56 = vadd.f32 %v1411_v5, %v1219_v12  ;;  %v1538_v54 = vmax.f32 %v1410_v21, 0.0  ;;  %v3444_v5 = vld [vmem:[#allocation46_spill] sm:$0xff] }
 0x1d6   :  { %v1413_v51 = vpop.f32.mrf.mxu0  ;;  %v1237_v12 = vadd.f32 %v3444_v5, %v1044_v4  ;;  %v1239_v17 = vadd.f32 %v3446_v53, %v1046_v14 }
 0x1d7   :  { %v1414_v59 = vadd.f32 %v1413_v51, %v1221_v45  ;;  %1813 = vmatprep.mubr.bf16.mxu1 %v1591_v50  ;;  %v1539_v7 = vmax.f32 %v1412_v56, 0.0  ;;  %v3445_v50 = vld [vmem:[#allocation18_spill] sm:$0xff]  ;;  %v3071_v56 = vpop.f32.mrf.mxu1 }
 0x1d8   :  { %v1415_v11 = vpop.f32.mrf.mxu0  ;;  %1814 = vmatmul.mubr.bf16.gmra.mxu1 %v1590_v62  ;;  %v1050_v21 = vadd.f32 %v3445_v50, %v2942_v39 }
 0x1d9   :  { %v1540_v3 = vmax.f32 %v1414_v59, 0.0  ;;  %v1416_v10 = vadd.f32 %v1415_v11, %v1223_v2  ;;  %v3447_v11 = vld [vmem:[#allocation52_spill] sm:$0xff] }
 0x1da   :  { %v1419_v31 = vpop.f32.mrf.mxu0  ;;  %v1241_v35 = vadd.f32 %v3447_v11, %v1048_v40 }
 0x1db   :  { %v1592_v16 = vpack.c.bf16 %v1540_v3, %v1538_v54  ;;  %v1541_v9 = vmax.f32 %v1416_v10, 0.0  ;;  %v1420_v61 = vadd.f32 %v1419_v31, %v1227_v57  ;;  %v3448_v3 = vld [vmem:[#allocation19_spill] sm:$0xff] }
 0x1dc   :  { %v1421_v58 = vpop.f32.mrf.mxu0  ;;  %v1054_v10 = vadd.f32 %v3448_v3, %v2936_v32  ;;  %v3449_v57 = vld [vmem:[#allocation55_spill] sm:$0xff] }
 0x1dd   :  { %v1593_v13 = vpack.c.bf16 %v1541_v9, %v1539_v7  ;;  %v1422_v44 = vadd.f32 %v1421_v58, %v1229_v23  ;;  %v1542_v1 = vmax.f32 %v1420_v61, 0.0  ;;  %v1243_v31 = vadd.f32 %v3449_v57, %v1050_v21  ;;  %v3450_v7 = vld [vmem:[#allocation20_spill] sm:$0xff]  ;;  %v3080_v9 = vpop.f32.mrf.mxu1  ;;  %v3452_v61 = vld [vmem:[#allocation58_spill] sm:$0xff] }
 0x1de   :  { %v1423_v29 = vpop.f32.mrf.mxu0  ;;  %v1058_v23 = vadd.f32 %v3451_v24, %v2936_v32  ;;  %v1247_v22 = vadd.f32 %v3452_v61, %v1054_v10  ;;  %v3455_v21 = vld [vmem:[#allocation24_spill] sm:$0xff] }
 0x1df   :  { %v1424_v28 = vadd.f32 %v1423_v29, %v1231_v33  ;;  %1821 = vmatprep.mubr.bf16.mxu1 %v1593_v13  ;;  %v1543_v49 = vmax.f32 %v1422_v44, 0.0  ;;  %v3453_v29 = vld [vmem:[#allocation22_spill] sm:$0xff]  ;;  %v3087_v34 = vpop.f32.mrf.mxu1 }
 0x1e0   :  { %v1425_v38 = vpop.f32.mrf.mxu0  ;;  %1822 = vmatmul.mubr.bf16.gmra.mxu1 %v1592_v16  ;;  %v1056_v16 = vadd.f32 %v3450_v7, %v2942_v39  ;;  %v1060_v37 = vadd.f32 %v3453_v29, %v2942_v39  ;;  %v1251_v42 = vadd.f32 %v2968_v52, %v1058_v23 }
 0x1e1   :  { %v1544_v62 = vmax.f32 %v1424_v28, 0.0  ;;  %v1426_v20 = vadd.f32 %v1425_v38, %v1233_v36 }
 0x1e2   :  { %v1429_v45 = vpop.f32.mrf.mxu0  ;;  %v1249_v38 = vadd.f32 %v2959_v27, %v1056_v16  ;;  %v3456_v27 = vld [vmem:[#allocation25_spill] sm:$0xff]  ;;  %v3458_v16 = vld [vmem:[#allocation27_spill] sm:$0xff] }
 0x1e3   :  { %v1594_v51 = vpack.c.bf16 %v1544_v62, %v1542_v1  ;;  %v1545_v2 = vmax.f32 %v1426_v20, 0.0  ;;  %v1430_v54 = vadd.f32 %v1429_v45, %v1237_v12  ;;  %v3454_v62 = vld [vmem:[#allocation23_spill] sm:$0xff]  ;;  %v1253_v12 = vadd.f32 %v2975_v19, %v1060_v37  ;;  %v3457_v19 = vld [vmem:[#allocation26_spill] sm:$0xff] }
 0x1e4   :  { %v1431_v59 = vpop.f32.mrf.mxu0  ;;  %v1064_v20 = vadd.f32 %v3454_v62, %v2936_v32  ;;  %v1068_v52 = vadd.f32 %v3456_v27, %v2936_v32  ;;  %v3463_v27 = vld [vmem:[#allocation32_spill] sm:$0xff] }
 0x1e5   :  { %v1595_v63 = vpack.c.bf16 %v1545_v2, %v1543_v49  ;;  %v1432_v46 = vadd.f32 %v1431_v59, %v1239_v17  ;;  %v1546_v41 = vmax.f32 %v1430_v54, 0.0  ;;  %v1066_v49 = vadd.f32 %v3455_v21, %v2942_v39 }
 0x1e6   :  { %v1433_v60 = vpop.f32.mrf.mxu0  ;;  %v1257_v11 = vadd.f32 %v2984_v55, %v1064_v20 }
 0x1e7   :  { %v1434_v26 = vadd.f32 %v1433_v60, %v1241_v35  ;;  %1829 = vmatprep.mubr.bf16.mxu1 %v1595_v63  ;;  %v1547_v36 = vmax.f32 %v1432_v46, 0.0  ;;  %v1070_v63 = vadd.f32 %v3457_v19, %v2942_v39  ;;  %v1261_v46 = vadd.f32 %v3000_v15, %v1068_v52 }
 0x1e8   :  { %v1435_v58 = vpop.f32.mrf.mxu0  ;;  %1830 = vmatmul.mubr.bf16.gmra.mxu1 %v1594_v51  ;;  %v3096_v51 = vpop.f32.mrf.mxu1  ;;  %v1086_v52 = vadd.f32 %v3463_v27, %v2942_v39 }
 0x1e9   :  { %v1548_v33 = vmax.f32 %v1434_v26, 0.0  ;;  %v1436_v13 = vadd.f32 %v1435_v58, %v1243_v31  ;;  %v1259_v31 = vadd.f32 %v2991_v6, %v1066_v49  ;;  %v1074_v58 = vadd.f32 %v3458_v16, %v2936_v32  ;;  %v3460_v6 = vld [vmem:[#allocation29_spill] sm:$0xff] }
 0x1ea   :  { %v1439_v4 = vpop.f32.mrf.mxu0  ;;  %v3103_v60 = vpop.f32.mrf.mxu1  ;;  %v1263_v24 = vadd.f32 %v3007_v18, %v1070_v63  ;;  %v1078_v15 = vadd.f32 %v3460_v6, %v2936_v32  ;;  %v3461_v18 = vld [vmem:[#allocation30_spill] sm:$0xff] }
 0x1eb   :  { %v1596_v44 = vpack.c.bf16 %v1548_v33, %v1546_v41  ;;  %v1549_v28 = vmax.f32 %v1436_v13, 0.0  ;;  %v1440_v1 = vadd.f32 %v1439_v4, %v1247_v22  ;;  %v3459_v33 = vld [vmem:[#allocation28_spill] sm:$0xff] }
 0x1ec   :  { %v1441_v14 = vpop.f32.mrf.mxu0  ;;  %v1076_v13 = vadd.f32 %v3459_v33, %v2942_v39  ;;  %v3112_v61 = vpop.f32.mrf.mxu1  ;;  %v1271_v20 = vadd.f32 %v3032_v0, %v1078_v15 }
 0x1ed   :  { %v1597_v40 = vpack.c.bf16 %v1549_v28, %v1547_v36  ;;  %v1442_v45 = vadd.f32 %v1441_v14, %v1249_v38  ;;  %v1550_v59 = vmax.f32 %v1440_v1, 0.0  ;;  %v1267_v36 = vadd.f32 %v3016_v8, %v1074_v58 }
 0x1ee   :  { %v1443_v5 = vpop.f32.mrf.mxu0  ;;  %v1080_v28 = vadd.f32 %v3461_v18, %v2942_v39  ;;  %v1269_v62 = vadd.f32 %v3023_v30, %v1076_v13  ;;  %v3464_v30 = vld [vmem:[#allocation33_spill] sm:$0xff]  ;;  %v3467_v13 = vld [vmem:[#allocation38_spill] sm:$0xff] }
 0x1ef   :  { %v1444_v50 = vadd.f32 %v1443_v5, %v1251_v42  ;;  %1837 = vmatprep.mubr.bf16.mxu1 %v1597_v40  ;;  %v1551_v54 = vmax.f32 %v1442_v45, 0.0  ;;  %v3119_v40 = vpop.f32.mrf.mxu1  ;;  %v3462_v45 = vld [vmem:[#allocation31_spill] sm:$0xff]  ;;  %v1088_v0 = vadd.f32 %v3464_v30, %v2936_v32 }
 0x1f0   :  { %v1445_v2 = vpop.f32.mrf.mxu0  ;;  %1838 = vmatmul.mubr.bf16.gmra.mxu1 %v1596_v44  ;;  %v1273_v21 = vadd.f32 %v3039_v43, %v1080_v28  ;;  %v3465_v43 = vld [vmem:[#allocation35_spill] sm:$0xff] }
 0x1f1   :  { %v1552_v53 = vmax.f32 %v1444_v50, 0.0  ;;  %v1446_v17 = vadd.f32 %v1445_v2, %v1253_v12  ;;  %v1084_v50 = vadd.f32 %v3462_v45, %v2936_v32  ;;  %v3470_v45 = vld [vmem:[#allocation42_spill] sm:$0xff] }
 0x1f2   :  { %v1449_v35 = vpop.f32.mrf.mxu0 }
 0x1f3   :  { %v1598_v3 = vpack.c.bf16 %v1552_v53, %v1550_v59  ;;  %v1553_v10 = vmax.f32 %v1446_v17, 0.0  ;;  %v1450_v7 = vadd.f32 %v1449_v35, %v1257_v11  ;;  %v3128_v59 = vpop.f32.mrf.mxu1  ;;  %v1277_v19 = vadd.f32 %v3048_v25, %v1084_v50 }
 0x1f4   :  { %v1451_v57 = vpop.f32.mrf.mxu0  ;;  %v1104_v50 = vadd.f32 %v3470_v45, %v2936_v32 }
 0x1f5   :  { %v1599_v26 = vpack.c.bf16 %v1553_v10, %v1551_v54  ;;  %v1452_v23 = vadd.f32 %v1451_v57, %v1259_v31  ;;  %v1554_v4 = vmax.f32 %v1450_v7, 0.0  ;;  %v1090_v54 = vadd.f32 %v3465_v43, %v2942_v39  ;;  %v1302_v31 = vpop.f32.mrf.mxu1 }
 0x1f6   :  { %v1453_v55 = vpop.f32.mrf.mxu0  ;;  %v1281_v7 = vadd.f32 %v3064_v48, %v1088_v0 }
 0x1f7   :  { %v1454_v41 = vadd.f32 %v1453_v55, %v1261_v46  ;;  %1845 = vmatprep.mubr.bf16.mxu1 %v1599_v26  ;;  %v1555_v14 = vmax.f32 %v1452_v23, 0.0  ;;  %v1279_v26 = vadd.f32 %v3055_v47, %v1086_v52  ;;  %v3466_v55 = vld [vmem:[#allocation36_spill] sm:$0xff]  ;;  %v1283_v25 = vadd.f32 %v3071_v56, %v1090_v54  ;;  %v1306_v6 = vpop.f32.mrf.mxu1  ;;  %v3468_v47 = vld [vmem:[#allocation39_spill] sm:$0xff]  ;;  %v3469_v56 = vld [vmem:[#allocation41_spill] sm:$0xff] }
 0x1f8   :  { %v1455_v22 = vpop.f32.mrf.mxu0  ;;  %1846 = vmatmul.mubr.bf16.gmra.mxu1 %v1598_v3  ;;  %v1098_v48 = vadd.f32 %v3468_v47, %v2936_v32  ;;  %v1100_v18 = vadd.f32 %v3469_v56, %v2942_v39 }
 0x1f9   :  { %v1556_v29 = vmax.f32 %v1454_v41, 0.0  ;;  %v1456_v37 = vadd.f32 %v1455_v22, %v1263_v24  ;;  %v1094_v24 = vadd.f32 %v3466_v55, %v2936_v32  ;;  %v1096_v22 = vadd.f32 %v3467_v13, %v2942_v39 }
 0x1fa   :  { %v1459_v44 = vpop.f32.mrf.mxu0 }
 0x1fb   :  { %v1600_v38 = vpack.c.bf16 %v1556_v29, %v1554_v4  ;;  %v1557_v42 = vmax.f32 %v1456_v37, 0.0  ;;  %v1460_v12 = vadd.f32 %v1459_v44, %v1267_v36  ;;  %v1287_v36 = vadd.f32 %v3080_v9, %v1094_v24 }
 0x1fc   :  { %v1461_v1 = vpop.f32.mrf.mxu0  ;;  %v1293_v9 = vadd.f32 %v3103_v60, %v1100_v18  ;;  %v3473_v60 = vld [vmem:[#allocation47_spill] sm:$0xff] }
 0x1fd   :  { %v1601_v5 = vpack.c.bf16 %v1557_v42, %v1555_v14  ;;  %v1462_v49 = vadd.f32 %v1461_v1, %v1269_v62  ;;  %v1558_v17 = vmax.f32 %v1460_v12, 0.0  ;;  %v1308_v42 = vpop.f32.mrf.mxu1  ;;  %v1289_v62 = vadd.f32 %v3087_v34, %v1096_v22  ;;  %v3472_v34 = vld [vmem:[#allocation45_spill] sm:$0xff] }
 0x1fe   :  { %v1463_v8 = vpop.f32.mrf.mxu0 }
 0x1ff   :  { %v1464_v2 = vadd.f32 %v1463_v8, %v1271_v20  ;;  %1853 = vmatprep.mubr.bf16.mxu1 %v1601_v5  ;;  %v1559_v3 = vmax.f32 %v1462_v49, 0.0  ;;  %v1291_v20 = vadd.f32 %v3096_v51, %v1098_v48  ;;  %v1310_v52 = vpop.f32.mrf.mxu1  ;;  %v1108_v51 = vadd.f32 %v3472_v34, %v2936_v32 }
 0x200   :  { %v1465_v53 = vpop.f32.mrf.mxu0  ;;  %1854 = vmatmul.mubr.bf16.gmra.mxu1 %v1600_v38 }
 0x201   :  { %v1560_v11 = vmax.f32 %v1464_v2, 0.0  ;;  %v1466_v35 = vadd.f32 %v1465_v53, %v1273_v21  ;;  %v3471_v2 = vld [vmem:[#allocation44_spill] sm:$0xff] }
 0x202   :  { %v1469_v63 = vpop.f32.mrf.mxu0  ;;  %v1106_v27 = vadd.f32 %v3471_v2, %v2942_v39 }
 0x203   :  { %v1602_v10 = vpack.c.bf16 %v1560_v11, %v1558_v17  ;;  %v1561_v57 = vmax.f32 %v1466_v35, 0.0  ;;  %v1470_v58 = vadd.f32 %v1469_v63, %v1277_v19  ;;  %v1297_v11 = vadd.f32 %v3112_v61, %v1104_v50  ;;  %v3479_v50 = vld [vmem:[#allocation56_spill] sm:$0xff] }
 0x204   :  { %v1471_v46 = vpop.f32.mrf.mxu0  ;;  %v1110_v19 = vadd.f32 %v3473_v60, %v2942_v39 }
 0x205   :  { %v1603_v16 = vpack.c.bf16 %v1561_v57, %v1559_v3  ;;  %v1472_v41 = vadd.f32 %v1471_v46, %v1279_v26  ;;  %v1562_v4 = vmax.f32 %v1470_v58, 0.0  ;;  %v1312_v3 = vpop.f32.mrf.mxu1  ;;  %v1299_v57 = vadd.f32 %v3119_v40, %v1106_v27  ;;  %v3476_v40 = vld [vmem:[#allocation51_spill] sm:$0xff] }
 0x206   :  { %v1473_v23 = vpop.f32.mrf.mxu0  ;;  %v1301_v46 = vadd.f32 %v3128_v59, %v1108_v51  ;;  %v1303_v61 = vadd.f32 %v1302_v31, %v1110_v19  ;;  %v1118_v22 = vadd.f32 %v3476_v40, %v2936_v32  ;;  %v3481_v51 = vld [vmem:[#allocation59_spill] sm:$0xff] }
 0x207   :  { %v1474_v33 = vadd.f32 %v1473_v23, %v1281_v7  ;;  %1861 = vmatprep.mubr.bf16.mxu1 %v1603_v16  ;;  %v1563_v28 = vmax.f32 %v1472_v41, 0.0  ;;  %v3474_v16 = vld [vmem:[#allocation48_spill] sm:$0xff] }
 0x208   :  { %v1475_v15 = vpop.f32.mrf.mxu0  ;;  %1862 = vmatmul.mubr.bf16.gmra.mxu1 %v1602_v10  ;;  %v1114_v58 = vadd.f32 %v3474_v16, %v2936_v32 }
 0x209   :  { %v1564_v29 = vmax.f32 %v1474_v33, 0.0  ;;  %v1476_v37 = vadd.f32 %v1475_v15, %v1283_v25  ;;  %v3475_v25 = vld [vmem:[#allocation50_spill] sm:$0xff]  ;;  %v1316_v33 = vpop.f32.mrf.mxu1 }
 0x20a   :  { %v1479_v44 = vpop.f32.mrf.mxu0  ;;  %v1116_v41 = vadd.f32 %v3475_v25, %v2942_v39  ;;  %v1307_v48 = vadd.f32 %v1306_v6, %v1114_v58  ;;  %v3180_v25 = vld [vmem:[%s3384_s4] ss:$0 sm:$0xff]  ;;  %s2706_s4 = smov [#allocation8]  }
 0x20b   :  { %v1604_v14 = vpack.c.bf16 %v1564_v29, %v1562_v4  ;;  %v1565_v38 = vmax.f32 %v1476_v37, 0.0  ;;  %v1480_v12 = vadd.f32 %v1479_v44, %v1287_v36  ;;  %v3477_v29 = vld [vmem:[#allocation53_spill] sm:$0xff]  ;;  %v1318_v56 = vpop.f32.mrf.mxu1  ;;  %s2139_s14 = sshll.u32 %s2706_s4, 4  ;;  %s2140_s14 = int_to_ptr.vmem [resolvable:$true] %s2139_s14 }
 0x20c   :  { %v1481_v1 = vpop.f32.mrf.mxu0  ;;  %v1120_v31 = vadd.f32 %v3477_v29, %v2942_v39  ;;  %s2671_s15 = scalar_lea.vmem %s2140_s14, 4096  ;;  %p2676_p2 = scmp.lt.s32.totalorder %s2140_s14, %s2140_s14 }
 0x20d   :  { %v1605_v5 = vpack.c.bf16 %v1565_v38, %v1563_v28  ;;  %v1482_v21 = vadd.f32 %v1481_v1, %v1289_v62  ;;  %v1566_v30 = vmax.f32 %v1480_v12, 0.0  ;;  %v1309_v28 = vadd.f32 %v1308_v42, %v1116_v41  ;;  %v3478_v62 = vld [vmem:[#allocation54_spill] sm:$0xff]  ;;  %p2672_p1 = scmp.ne.s32.totalorder %s2140_s14, %s2671_s15  ;;  %p2677_p3 = scmp.lt.s32.totalorder %s2671_s15, %s2671_s15 }
 0x20e   :  { %v1483_v8 = vpop.f32.mrf.mxu0  ;;  %v1313_v12 = vadd.f32 %v1312_v3, %v1120_v31 }
 0x20f   :  { %v1484_v49 = vadd.f32 %v1483_v8, %v1291_v20  ;;  %1869 = vmatprep.mubr.bf16.mxu1 %v1605_v5  ;;  %v1567_v63 = vmax.f32 %v1482_v21, 0.0  ;;  %v1124_v20 = vadd.f32 %v3478_v62, %v2936_v32  ;;  %v1126_v8 = vadd.f32 %v3479_v50, %v2942_v39  ;;  %p2678_p4 = por %p2677_p3, %p2676_p2 }
 0x210   :  { %v1485_v53 = vpop.f32.mrf.mxu0  ;;  %1870 = vmatmul.mubr.bf16.gmra.mxu1 %v1604_v14  ;;  %v1311_v14 = vadd.f32 %v1310_v52, %v1118_v22 }
 0x211   :  { %v1568_v0 = vmax.f32 %v1484_v49, 0.0  ;;  %v1486_v17 = vadd.f32 %v1485_v53, %v1293_v9  ;;  %v1320_v9 = vpop.f32.mrf.mxu1  ;;  %v3480_v49 = vld [vmem:[#allocation57_spill] sm:$0xff]  ;;  %v1317_v53 = vadd.f32 %v1316_v33, %v1124_v20  ;;  %v1319_v19 = vadd.f32 %v1318_v56, %v1126_v8  ;;  %p2679_p5 = pnand %p2678_p4, %p2672_p1 }
 0x212   :  { %v1489_v35 = vpop.f32.mrf.mxu0  ;;  %v1128_v42 = vadd.f32 %v3480_v49, %v2936_v32 }
 0x213   :  { %v1606_v43 = vpack.c.bf16 %v1568_v0, %v1566_v30  ;;  %v1569_v54 = vmax.f32 %v1486_v17, 0.0  ;;  %v1490_v7 = vadd.f32 %v1489_v35, %v1297_v11  ;;  %v1130_v30 = vadd.f32 %v3481_v51, %v2942_v39  ;;  %v1322_v35 = vpop.f32.mrf.mxu1 }
 0x214   :  { %v1491_v10 = vpop.f32.mrf.mxu0 }
 0x215   :  { %v1607_v26 = vpack.c.bf16 %v1569_v54, %v1567_v63  ;;  %v1492_v24 = vadd.f32 %v1491_v10, %v1299_v57  ;;  %v1570_v59 = vmax.f32 %v1490_v7, 0.0  ;;  %v1321_v63 = vadd.f32 %v1320_v9, %v1128_v42 }
 0x216   :  { %v1493_v55 = vpop.f32.mrf.mxu0  ;;  %v1323_v10 = vadd.f32 %v1322_v35, %v1130_v30 }
 0x217   :  { %v1494_v23 = vadd.f32 %v1493_v55, %v1301_v46  ;;  %1877 = vmatprep.mubr.bf16.mxu1 %v1607_v26  ;;  %v1571_v37 = vmax.f32 %v1492_v24, 0.0 }
 0x218   :  { %v1495_v13 = vpop.f32.mrf.mxu0  ;;  %1878 = vmatmul.mubr.bf16.gmra.mxu1 %v1606_v43 }
 0x219   :  { %v1572_v15 = vmax.f32 %v1494_v23, 0.0  ;;  %v1496_v47 = vadd.f32 %v1495_v13, %v1303_v61 }
 0x21a   :  { %v1499_v4 = vpop.f32.mrf.mxu0 }
 0x21b   :  { %v1608_v36 = vpack.c.bf16 %v1572_v15, %v1570_v59  ;;  %v1573_v44 = vmax.f32 %v1496_v47, 0.0  ;;  %v1500_v1 = vadd.f32 %v1499_v4, %v1307_v48 }
 0x21c   :  { %v1501_v18 = vpop.f32.mrf.mxu0 }
 0x21d   :  { %v1609_v38 = vpack.c.bf16 %v1573_v44, %v1571_v37  ;;  %v1502_v45 = vadd.f32 %v1501_v18, %v1309_v28  ;;  %v1574_v2 = vmax.f32 %v1500_v1, 0.0 }
 0x21e   :  { %v1503_v5 = vpop.f32.mrf.mxu0 }
 0x21f   :  { %v1504_v6 = vadd.f32 %v1503_v5, %v1311_v14  ;;  %1885 = vmatprep.mubr.bf16.mxu1 %v1609_v38  ;;  %v1575_v0 = vmax.f32 %v1502_v45, 0.0 }
 0x220   :  { %v1505_v21 = vpop.f32.mrf.mxu0  ;;  %1886 = vmatmul.mubr.bf16.gmra.mxu1 %v1608_v36 }
 0x221   :  { %v1576_v27 = vmax.f32 %v1504_v6, 0.0  ;;  %v1506_v52 = vadd.f32 %v1505_v21, %v1313_v12 }
 0x222   :  { %v1509_v34 = vpop.f32.mrf.mxu0 }
 0x223   :  { %v1610_v17 = vpack.c.bf16 %v1576_v27, %v1574_v2  ;;  %v1577_v11 = vmax.f32 %v1506_v52, 0.0  ;;  %v1510_v54 = vadd.f32 %v1509_v34, %v1317_v53 }
 0x224   :  { %v1511_v60 = vpop.f32.mrf.mxu0 }
 0x225   :  { %v1611_v43 = vpack.c.bf16 %v1577_v11, %v1575_v0  ;;  %v1512_v32 = vadd.f32 %v1511_v60, %v1319_v19  ;;  %v1578_v26 = vmax.f32 %v1510_v54, 0.0 }
 0x226   :  { %v1513_v3 = vpop.f32.mrf.mxu0 }
 0x227   :  { %v1514_v57 = vadd.f32 %v1513_v3, %v1321_v63  ;;  %1893 = vmatprep.mubr.bf16.mxu1 %v1611_v43  ;;  %v1579_v39 = vmax.f32 %v1512_v32, 0.0 }
 0x228   :  { %v1515_v46 = vpop.f32.mrf.mxu0  ;;  %1894 = vmatmul.mubr.bf16.gmra.mxu1 %v1610_v17 }
 0x229   :  { %v1580_v7 = vmax.f32 %v1514_v57, 0.0  ;;  %v1516_v16 = vadd.f32 %v1515_v46, %v1323_v10 }
 0x22b   :  { %v1612_v58 = vpack.c.bf16 %v1580_v7, %v1578_v26  ;;  %v1581_v55 = vmax.f32 %v1516_v16, 0.0 }
 0x22d   :  { %v1613_v61 = vpack.c.bf16 %v1581_v55, %v1579_v39 }
 0x22f   :  { %1901 = vmatprep.mubr.bf16.mxu1 %v1613_v61 }
 0x230   :  { %1902 = vmatmul.mubr.bf16.gmra.mxu1 %v1612_v58 }
 0x278   :  { %v2281_v24 = vpop.f32.mrf.mxu1 }
 0x27a   :  { %v2282_v23 = vpop.f32.mrf.mxu1 }
 0x27b   :  { %v2283_v41 = vadd.f32 %v2282_v23, %v2281_v24 }
 0x27c   :  { %v2284_v33 = vpop.f32.mrf.mxu1 }
 0x27d   :  { %v3183_v13 = vadd.f32 %v2283_v41, %v3180_v25 }
 0x27e   :  { %v2285_v40 = vpop.f32.mrf.mxu1 }
 0x27f   :  { %v2286_v22 = vadd.f32 %v2285_v40, %v2284_v33  ;;  %v1910_v59 = vmul.f32 %v3183_v13, %v3183_v13 }
 0x280   :  { %v2287_v15 = vpop.f32.mrf.mxu1 }
 0x281   :  { %v3188_v47 = vadd.f32 %v2286_v22, %v3180_v25  ;;  %1942 = vadd.xlane.f32.xlu0 %v1910_v59 }
 0x282   :  { %v2288_v48 = vpop.f32.mrf.mxu1 }
 0x283   :  { %v2289_v4 = vadd.f32 %v2288_v48, %v2287_v15  ;;  %v1911_v29 = vmul.f32 %v3188_v47, %v3188_v47 }
 0x284   :  { %v2290_v31 = vpop.f32.mrf.mxu1 }
 0x285   :  { %1944 = vadd.xlane.f32.xlu0 %v1911_v29  ;;  %v3193_v37 = vadd.f32 %v2289_v4, %v3180_v25 }
 0x286   :  { %v2291_v36 = vpop.f32.mrf.mxu1 }
 0x287   :  { %v2292_v44 = vadd.f32 %v2291_v36, %v2290_v31  ;;  %v1912_v56 = vmul.f32 %v3193_v37, %v3193_v37 }
 0x288   :  { %v2293_v18 = vpop.f32.mrf.mxu1 }
 0x289   :  { %v3198_v28 = vadd.f32 %v2292_v44, %v3180_v25  ;;  %1946 = vadd.xlane.f32.xlu1 %v1912_v56 }
 0x28a   :  { %v2294_v14 = vpop.f32.mrf.mxu1 }
 0x28b   :  { %v2295_v38 = vadd.f32 %v2294_v14, %v2293_v18  ;;  %v1913_v1 = vmul.f32 %v3198_v28, %v3198_v28 }
 0x28c   :  { %v2296_v62 = vpop.f32.mrf.mxu1 }
 0x28d   :  { %v3203_v20 = vadd.f32 %v2295_v38, %v3180_v25  ;;  %1948 = vadd.xlane.f32.xlu1 %v1913_v1 }
 0x28e   :  { %v2297_v5 = vpop.f32.mrf.mxu1 }
 0x28f   :  { %v2298_v12 = vadd.f32 %v2297_v5, %v2296_v62  ;;  %v1914_v45 = vmul.f32 %v3203_v20, %v3203_v20 }
 0x290   :  { %v2299_v6 = vpop.f32.mrf.mxu1 }
 0x291   :  { %v3208_v50 = vadd.f32 %v2298_v12, %v3180_v25  ;;  %1950 = vadd.xlane.f32.xlu0 %v1914_v45 }
 0x292   :  { %v2300_v8 = vpop.f32.mrf.mxu1 }
 0x293   :  { %v2301_v9 = vadd.f32 %v2300_v8, %v2299_v6  ;;  %v1915_v21 = vmul.f32 %v3208_v50, %v3208_v50 }
 0x294   :  { %v2302_v49 = vpop.f32.mrf.mxu1 }
 0x295   :  { %v3213_v42 = vadd.f32 %v2301_v9, %v3180_v25  ;;  %1952 = vadd.xlane.f32.xlu1 %v1915_v21 }
 0x296   :  { %v2303_v2 = vpop.f32.mrf.mxu1 }
 0x297   :  { %v2304_v27 = vadd.f32 %v2303_v2, %v2302_v49  ;;  %v1916_v52 = vmul.f32 %v3213_v42, %v3213_v42 }
 0x298   :  { %v2305_v53 = vpop.f32.mrf.mxu1 }
 0x299   :  { %v3218_v34 = vadd.f32 %v2304_v27, %v3180_v25  ;;  %1954 = vadd.xlane.f32.xlu0 %v1916_v52 }
 0x29a   :  { %v2306_v51 = vpop.f32.mrf.mxu1 }
 0x29b   :  { %v2307_v30 = vadd.f32 %v2306_v51, %v2305_v53  ;;  %v1917_v0 = vmul.f32 %v3218_v34, %v3218_v34 }
 0x29c   :  { %v2308_v17 = vpop.f32.mrf.mxu1 }
 0x29d   :  { %v3223_v11 = vadd.f32 %v2307_v30, %v3180_v25  ;;  %1956 = vadd.xlane.f32.xlu1 %v1917_v0 }
 0x29e   :  { %v2309_v35 = vpop.f32.mrf.mxu1 }
 0x29f   :  { %v2310_v60 = vadd.f32 %v2309_v35, %v2308_v17  ;;  %v1918_v19 = vmul.f32 %v3223_v11, %v3223_v11 }
 0x2a0   :  { %v2311_v63 = vpop.f32.mrf.mxu1 }
 0x2a1   :  { %v3228_v43 = vadd.f32 %v2310_v60, %v3180_v25  ;;  %1958 = vadd.xlane.f32.xlu0 %v1918_v19 }
 0x2a2   :  { %v2312_v54 = vpop.f32.mrf.mxu1 }
 0x2a3   :  { %v2313_v3 = vadd.f32 %v2312_v54, %v2311_v63  ;;  %v1919_v10 = vmul.f32 %v3228_v43, %v3228_v43 }
 0x2a4   :  { %v2314_v32 = vpop.f32.mrf.mxu1 }
 0x2a5   :  { %v3233_v57 = vadd.f32 %v2313_v3, %v3180_v25  ;;  %1960 = vadd.xlane.f32.xlu1 %v1919_v10 }
 0x2a6   :  { %v2315_v46 = vpop.f32.mrf.mxu1 }
 0x2a7   :  { %v2316_v26 = vadd.f32 %v2315_v46, %v2314_v32  ;;  %v1920_v7 = vmul.f32 %v3233_v57, %v3233_v57 }
 0x2a8   :  { %v2317_v16 = vpop.f32.mrf.mxu1 }
 0x2a9   :  { %v3238_v39 = vadd.f32 %v2316_v26, %v3180_v25  ;;  %1962 = vadd.xlane.f32.xlu0 %v1920_v7 }
 0x2aa   :  { %v2318_v58 = vpop.f32.mrf.mxu1 }
 0x2ab   :  { %v2319_v55 = vadd.f32 %v2318_v58, %v2317_v16  ;;  %v1921_v61 = vmul.f32 %v3238_v39, %v3238_v39 }
 0x2ac   :  { %v2320_v24 = vpop.f32.mrf.mxu1 }
 0x2ad   :  { %v3243_v23 = vadd.f32 %v2319_v55, %v3180_v25  ;;  %1964 = vadd.xlane.f32.xlu1 %v1921_v61 }
 0x2ae   :  { %v2321_v41 = vpop.f32.mrf.mxu1 }
 0x2af   :  { %v2322_v33 = vadd.f32 %v2321_v41, %v2320_v24  ;;  %v1922_v40 = vmul.f32 %v3243_v23, %v3243_v23 }
 0x2b0   :  { %v2323_v22 = vpop.f32.mrf.mxu1 }
 0x2b1   :  { %v3248_v59 = vadd.f32 %v2322_v33, %v3180_v25  ;;  %1966 = vadd.xlane.f32.xlu0 %v1922_v40 }
 0x2b2   :  { %v2324_v15 = vpop.f32.mrf.mxu1 }
 0x2b3   :  { %v2325_v48 = vadd.f32 %v2324_v15, %v2323_v22  ;;  %v1923_v4 = vmul.f32 %v3248_v59, %v3248_v59 }
 0x2b4   :  { %v2326_v29 = vpop.f32.mrf.mxu1 }
 0x2b5   :  { %v3253_v31 = vadd.f32 %v2325_v48, %v3180_v25  ;;  %1968 = vadd.xlane.f32.xlu1 %v1923_v4 }
 0x2b6   :  { %v2327_v36 = vpop.f32.mrf.mxu1 }
 0x2b7   :  { %v2328_v44 = vadd.f32 %v2327_v36, %v2326_v29  ;;  %v1924_v56 = vmul.f32 %v3253_v31, %v3253_v31 }
 0x2b8   :  { %v2329_v18 = vpop.f32.mrf.mxu1 }
 0x2b9   :  { %v3258_v14 = vadd.f32 %v2328_v44, %v3180_v25  ;;  %1970 = vadd.xlane.f32.xlu0 %v1924_v56 }
 0x2ba   :  { %v2330_v38 = vpop.f32.mrf.mxu1 }
 0x2bb   :  { %v2331_v1 = vadd.f32 %v2330_v38, %v2329_v18  ;;  %v1925_v62 = vmul.f32 %v3258_v14, %v3258_v14 }
 0x2bc   :  { %v2332_v5 = vpop.f32.mrf.mxu1 }
 0x2bd   :  { %v3263_v12 = vadd.f32 %v2331_v1, %v3180_v25  ;;  %1972 = vadd.xlane.f32.xlu1 %v1925_v62 }
 0x2be   :  { %v2333_v45 = vpop.f32.mrf.mxu1 }
 0x2bf   :  { %v2334_v6 = vadd.f32 %v2333_v45, %v2332_v5  ;;  %v1926_v8 = vmul.f32 %v3263_v12, %v3263_v12 }
 0x2c0   :  { %v2335_v9 = vpop.f32.mrf.mxu1 }
 0x2c1   :  { %v3268_v21 = vadd.f32 %v2334_v6, %v3180_v25  ;;  %1974 = vadd.xlane.f32.xlu0 %v1926_v8 }
 0x2c2   :  { %v2336_v49 = vpop.f32.mrf.mxu1 }
 0x2c3   :  { %v2337_v2 = vadd.f32 %v2336_v49, %v2335_v9  ;;  %v1927_v27 = vmul.f32 %v3268_v21, %v3268_v21 }
 0x2c4   :  { %v2338_v52 = vpop.f32.mrf.mxu1 }
 0x2c5   :  { %v3273_v53 = vadd.f32 %v2337_v2, %v3180_v25  ;;  %1976 = vadd.xlane.f32.xlu1 %v1927_v27 }
 0x2c6   :  { %v2339_v51 = vpop.f32.mrf.mxu1 }
 0x2c7   :  { %v2340_v30 = vadd.f32 %v2339_v51, %v2338_v52  ;;  %v1928_v0 = vmul.f32 %v3273_v53, %v3273_v53 }
 0x2c8   :  { %v2341_v17 = vpop.f32.mrf.mxu1 }
 0x2c9   :  { %v3278_v35 = vadd.f32 %v2340_v30, %v3180_v25  ;;  %1978 = vadd.xlane.f32.xlu0 %v1928_v0 }
 0x2ca   :  { %v2342_v60 = vpop.f32.mrf.mxu1 }
 0x2cb   :  { %v2343_v19 = vadd.f32 %v2342_v60, %v2341_v17  ;;  %v1929_v63 = vmul.f32 %v3278_v35, %v3278_v35 }
 0x2cc   :  { %v2344_v54 = vpop.f32.mrf.mxu1 }
 0x2cd   :  { %v3283_v3 = vadd.f32 %v2343_v19, %v3180_v25  ;;  %1980 = vadd.xlane.f32.xlu1 %v1929_v63 }
 0x2ce   :  { %v2345_v10 = vpop.f32.mrf.mxu1 }
 0x2cf   :  { %v2346_v32 = vadd.f32 %v2345_v10, %v2344_v54  ;;  %v1930_v46 = vmul.f32 %v3283_v3, %v3283_v3 }
 0x2d0   :  { %v2347_v26 = vpop.f32.mrf.mxu1 }
 0x2d1   :  { %v3288_v7 = vadd.f32 %v2346_v32, %v3180_v25  ;;  %1982 = vadd.xlane.f32.xlu0 %v1930_v46 }
 0x2d2   :  { %v2348_v16 = vpop.f32.mrf.mxu1 }
 0x2d3   :  { %v2349_v58 = vadd.f32 %v2348_v16, %v2347_v26  ;;  %v1931_v55 = vmul.f32 %v3288_v7, %v3288_v7 }
 0x2d4   :  { %v2350_v61 = vpop.f32.mrf.mxu1 }
 0x2d5   :  { %v3293_v24 = vadd.f32 %v2349_v58, %v3180_v25  ;;  %1984 = vadd.xlane.f32.xlu1 %v1931_v55 }
 0x2d6   :  { %v2351_v41 = vpop.f32.mrf.mxu1 }
 0x2d7   :  { %v2352_v33 = vadd.f32 %v2351_v41, %v2350_v61  ;;  %v1932_v40 = vmul.f32 %v3293_v24, %v3293_v24 }
 0x2d8   :  { %v2353_v22 = vpop.f32.mrf.mxu1 }
 0x2d9   :  { %v3298_v15 = vadd.f32 %v2352_v33, %v3180_v25  ;;  %1986 = vadd.xlane.f32.xlu0 %v1932_v40 }
 0x2da   :  { %v2354_v48 = vpop.f32.mrf.mxu1 }
 0x2db   :  { %v2355_v4 = vadd.f32 %v2354_v48, %v2353_v22  ;;  %v1933_v29 = vmul.f32 %v3298_v15, %v3298_v15 }
 0x2dc   :  { %v2356_v36 = vpop.f32.mrf.mxu1 }
 0x2dd   :  { %v3303_v44 = vadd.f32 %v2355_v4, %v3180_v25  ;;  %1988 = vadd.xlane.f32.xlu1 %v1933_v29 }
 0x2de   :  { %v2357_v56 = vpop.f32.mrf.mxu1 }
 0x2df   :  { %v2358_v18 = vadd.f32 %v2357_v56, %v2356_v36  ;;  %v1934_v38 = vmul.f32 %v3303_v44, %v3303_v44 }
 0x2e0   :  { %v2359_v1 = vpop.f32.mrf.mxu1 }
 0x2e1   :  { %v3308_v62 = vadd.f32 %v2358_v18, %v3180_v25  ;;  %1990 = vadd.xlane.f32.xlu0 %v1934_v38 }
 0x2e2   :  { %v2360_v5 = vpop.f32.mrf.mxu1 }
 0x2e3   :  { %v2361_v45 = vadd.f32 %v2360_v5, %v2359_v1  ;;  %v1935_v6 = vmul.f32 %v3308_v62, %v3308_v62 }
 0x2e4   :  { %v2362_v8 = vpop.f32.mrf.mxu1 }
 0x2e5   :  { %v3313_v9 = vadd.f32 %v2361_v45, %v3180_v25  ;;  %1992 = vadd.xlane.f32.xlu1 %v1935_v6 }
 0x2e6   :  { %v2363_v49 = vpop.f32.mrf.mxu1 }
 0x2e7   :  { %v2364_v2 = vadd.f32 %v2363_v49, %v2362_v8  ;;  %v1936_v27 = vmul.f32 %v3313_v9, %v3313_v9 }
 0x2e8   :  { %v2365_v52 = vpop.f32.mrf.mxu1 }
 0x2e9   :  { %v3318_v51 = vadd.f32 %v2364_v2, %v3180_v25  ;;  %1994 = vadd.xlane.f32.xlu0 %v1936_v27 }
 0x2ea   :  { %v2366_v30 = vpop.f32.mrf.mxu1 }
 0x2eb   :  { %v2367_v0 = vadd.f32 %v2366_v30, %v2365_v52  ;;  %v1937_v17 = vmul.f32 %v3318_v51, %v3318_v51 }
 0x2ec   :  { %v2368_v60 = vpop.f32.mrf.mxu1 }
 0x2ed   :  { %v3323_v19 = vadd.f32 %v2367_v0, %v3180_v25  ;;  %1996 = vadd.xlane.f32.xlu1 %v1937_v17 }
 0x2ee   :  { %v2369_v63 = vpop.f32.mrf.mxu1 }
 0x2ef   :  { %v2370_v54 = vadd.f32 %v2369_v63, %v2368_v60  ;;  %v1938_v10 = vmul.f32 %v3323_v19, %v3323_v19 }
 0x2f0   :  { %v2371_v32 = vpop.f32.mrf.mxu1 }
 0x2f1   :  { %v3328_v46 = vadd.f32 %v2370_v54, %v3180_v25  ;;  %1998 = vadd.xlane.f32.xlu0 %v1938_v10 }
 0x2f2   :  { %v2372_v26 = vpop.f32.mrf.mxu1 }
 0x2f3   :  { %v2373_v16 = vadd.f32 %v2372_v26, %v2371_v32  ;;  %v1939_v58 = vmul.f32 %v3328_v46, %v3328_v46 }
 0x2f4   :  { %v2374_v55 = vpop.f32.mrf.mxu1 }
 0x2f5   :  { %v3333_v61 = vadd.f32 %v2373_v16, %v3180_v25  ;;  %2000 = vadd.xlane.f32.xlu1 %v1939_v58 }
 0x2f6   :  { %v2375_v41 = vpop.f32.mrf.mxu1 }
 0x2f7   :  { %v2376_v33 = vadd.f32 %v2375_v41, %v2374_v55  ;;  %v1940_v40 = vmul.f32 %v3333_v61, %v3333_v61 }
 0x2f9   :  { %v3338_v22 = vadd.f32 %v2376_v33, %v3180_v25  ;;  %2002 = vadd.xlane.f32.xlu0 %v1940_v40 }
 0x2fb   :  { %v1941_v48 = vmul.f32 %v3338_v22, %v3338_v22 }
 0x2fd   :  { %2004 = vadd.xlane.f32.xlu1 %v1941_v48 }
 0x30a   :  { %v1943_v4 = vpop.xlane.xlu0 %1942 }
 0x30b   :  { %v2006_v29 = vmax.f32 %v1943_v4, 1e-24 }
 0x30d   :  { %2547 = vrsqrt.f32 %v2006_v29 }
 0x30e   :  { %v1945_v36 = vpop.xlane.xlu0 %1944 }
 0x30f   :  { %v2007_v56 = vmax.f32 %v1945_v36, 1e-24 }
 0x311   :  { %2549 = vrsqrt.f32 %v2007_v56 }
 0x312   :  { %v1947_v18 = vpop.xlane.xlu1 %1946 }
 0x313   :  { %v2008_v38 = vmax.f32 %v1947_v18, 1e-24 }
 0x315   :  { %2551 = vrsqrt.f32 %v2008_v38 }
 0x316   :  { %v1949_v1 = vpop.xlane.xlu1 %1948 }
 0x317   :  { %v2009_v5 = vmax.f32 %v1949_v1, 1e-24 }
 0x319   :  { %2553 = vrsqrt.f32 %v2009_v5 }
 0x31a   :  { %v2548_v45 = vpop.eup %2547  ;;  %v1951_v25 = vpop.xlane.xlu0 %1950 }
 0x31b   :  { %v2070_v6 = vmul.f32 %v2548_v45, %v3183_v13  ;;  %v2010_v8 = vmax.f32 %v1951_v25, 1e-24 }
 0x31d   :  { %2102 = vst [vmem:[#allocation8] sm:$0xff] %v2070_v6  ;;  %2555 = vrsqrt.f32 %v2010_v8 }
 0x31e   :  { %v2550_v49 = vpop.eup %2549  ;;  %v1953_v2 = vpop.xlane.xlu1 %1952 }
 0x31f   :  { %v2071_v27 = vmul.f32 %v2550_v49, %v3188_v47  ;;  %v2011_v52 = vmax.f32 %v1953_v2, 1e-24 }
 0x321   :  { %2103 = vst [vmem:[#allocation8 + $0x8] sm:$0xff] %v2071_v27  ;;  %2557 = vrsqrt.f32 %v2011_v52 }
 0x322   :  { %v2552_v30 = vpop.eup %2551  ;;  %v1955_v0 = vpop.xlane.xlu0 %1954 }
 0x323   :  { %v2072_v17 = vmul.f32 %v2552_v30, %v3193_v37  ;;  %v2012_v60 = vmax.f32 %v1955_v0, 1e-24 }
 0x325   :  { %2104 = vst [vmem:[#allocation8 + $0x10] sm:$0xff] %v2072_v17  ;;  %2559 = vrsqrt.f32 %v2012_v60 }
 0x326   :  { %v2554_v63 = vpop.eup %2553  ;;  %v1957_v54 = vpop.xlane.xlu1 %1956 }
 0x327   :  { %v2073_v13 = vmul.f32 %v2554_v63, %v3198_v28  ;;  %v2013_v10 = vmax.f32 %v1957_v54, 1e-24 }
 0x329   :  { %2105 = vst [vmem:[#allocation8 + $0x18] sm:$0xff] %v2073_v13  ;;  %2561 = vrsqrt.f32 %v2013_v10 }
 0x32a   :  { %v2556_v32 = vpop.eup %2555  ;;  %v1959_v26 = vpop.xlane.xlu0 %1958 }
 0x32b   :  { %v2074_v47 = vmul.f32 %v2556_v32, %v3203_v20  ;;  %v2014_v16 = vmax.f32 %v1959_v26, 1e-24 }
 0x32d   :  { %2106 = vst [vmem:[#allocation8 + $0x20] sm:$0xff] %v2074_v47  ;;  %2563 = vrsqrt.f32 %v2014_v16 }
 0x32e   :  { %v2558_v58 = vpop.eup %2557  ;;  %v1961_v55 = vpop.xlane.xlu1 %1960 }
 0x32f   :  { %v2075_v37 = vmul.f32 %v2558_v58, %v3208_v50  ;;  %v2015_v41 = vmax.f32 %v1961_v55, 1e-24 }
 0x331   :  { %2107 = vst [vmem:[#allocation8 + $0x28] sm:$0xff] %v2075_v37  ;;  %2565 = vrsqrt.f32 %v2015_v41 }
 0x332   :  { %v2560_v33 = vpop.eup %2559  ;;  %v1963_v40 = vpop.xlane.xlu0 %1962 }
 0x333   :  { %v2076_v28 = vmul.f32 %v2560_v33, %v3213_v42  ;;  %v2016_v48 = vmax.f32 %v1963_v40, 1e-24 }
 0x335   :  { %2108 = vst [vmem:[#allocation8 + $0x30] sm:$0xff] %v2076_v28  ;;  %2567 = vrsqrt.f32 %v2016_v48 }
 0x336   :  { %v2562_v4 = vpop.eup %2561  ;;  %v1965_v29 = vpop.xlane.xlu1 %1964 }
 0x337   :  { %v2077_v20 = vmul.f32 %v2562_v4, %v3218_v34  ;;  %v2017_v36 = vmax.f32 %v1965_v29, 1e-24 }
 0x339   :  { %2109 = vst [vmem:[#allocation8 + $0x38] sm:$0xff] %v2077_v20  ;;  %2569 = vrsqrt.f32 %v2017_v36 }
 0x33a   :  { %v2564_v56 = vpop.eup %2563  ;;  %v1967_v18 = vpop.xlane.xlu0 %1966 }
 0x33b   :  { %v2078_v50 = vmul.f32 %v2564_v56, %v3223_v11  ;;  %v2018_v38 = vmax.f32 %v1967_v18, 1e-24 }
 0x33d   :  { %2110 = vst [vmem:[#allocation8 + $0x40] sm:$0xff] %v2078_v50  ;;  %2571 = vrsqrt.f32 %v2018_v38 }
 0x33e   :  { %v2566_v1 = vpop.eup %2565  ;;  %v1969_v5 = vpop.xlane.xlu1 %1968 }
 0x33f   :  { %v2079_v42 = vmul.f32 %v2566_v1, %v3228_v43  ;;  %v2019_v45 = vmax.f32 %v1969_v5, 1e-24 }
 0x341   :  { %2111 = vst [vmem:[#allocation8 + $0x48] sm:$0xff] %v2079_v42  ;;  %2573 = vrsqrt.f32 %v2019_v45 }
 0x342   :  { %v2568_v25 = vpop.eup %2567  ;;  %v1971_v6 = vpop.xlane.xlu0 %1970 }
 0x343   :  { %v2080_v34 = vmul.f32 %v2568_v25, %v3233_v57  ;;  %v2020_v8 = vmax.f32 %v1971_v6, 1e-24 }
 0x345   :  { %2112 = vst [vmem:[#allocation8 + $0x50] sm:$0xff] %v2080_v34  ;;  %2575 = vrsqrt.f32 %v2020_v8 }
 0x346   :  { %v2570_v49 = vpop.eup %2569  ;;  %v1973_v2 = vpop.xlane.xlu1 %1972 }
 0x347   :  { %v2081_v11 = vmul.f32 %v2570_v49, %v3238_v39  ;;  %v2021_v27 = vmax.f32 %v1973_v2, 1e-24 }
 0x349   :  { %2113 = vst [vmem:[#allocation8 + $0x58] sm:$0xff] %v2081_v11  ;;  %2577 = vrsqrt.f32 %v2021_v27 }
 0x34a   :  { %v2572_v52 = vpop.eup %2571  ;;  %v1975_v30 = vpop.xlane.xlu0 %1974 }
 0x34b   :  { %v2082_v43 = vmul.f32 %v2572_v52, %v3243_v23  ;;  %v2022_v0 = vmax.f32 %v1975_v30, 1e-24 }
 0x34d   :  { %2114 = vst [vmem:[#allocation8 + $0x60] sm:$0xff] %v2082_v43  ;;  %2579 = vrsqrt.f32 %v2022_v0 }
 0x34e   :  { %v2574_v17 = vpop.eup %2573  ;;  %v1977_v60 = vpop.xlane.xlu1 %1976 }
 0x34f   :  { %v2083_v57 = vmul.f32 %v2574_v17, %v3248_v59  ;;  %v2023_v63 = vmax.f32 %v1977_v60, 1e-24 }
 0x351   :  { %2115 = vst [vmem:[#allocation8 + $0x68] sm:$0xff] %v2083_v57  ;;  %2581 = vrsqrt.f32 %v2023_v63 }
 0x352   :  { %v2576_v54 = vpop.eup %2575  ;;  %v1979_v13 = vpop.xlane.xlu0 %1978 }
 0x353   :  { %v2084_v39 = vmul.f32 %v2576_v54, %v3253_v31  ;;  %v2024_v10 = vmax.f32 %v1979_v13, 1e-24 }
 0x355   :  { %2116 = vst [vmem:[#allocation8 + $0x70] sm:$0xff] %v2084_v39  ;;  %2583 = vrsqrt.f32 %v2024_v10 }
 0x356   :  { %v2578_v32 = vpop.eup %2577  ;;  %v1981_v26 = vpop.xlane.xlu1 %1980 }
 0x357   :  { %v2085_v23 = vmul.f32 %v2578_v32, %v3258_v14  ;;  %v2025_v47 = vmax.f32 %v1981_v26, 1e-24 }
 0x359   :  { %2117 = vst [vmem:[#allocation8 + $0x78] sm:$0xff] %v2085_v23  ;;  %2585 = vrsqrt.f32 %v2025_v47 }
 0x35a   :  { %v2580_v16 = vpop.eup %2579  ;;  %v1983_v58 = vpop.xlane.xlu0 %1982 }
 0x35b   :  { %v2086_v59 = vmul.f32 %v2580_v16, %v3263_v12  ;;  %v2026_v55 = vmax.f32 %v1983_v58, 1e-24 }
 0x35d   :  { %2118 = vst [vmem:[#allocation8 + $0x80] sm:$0xff] %v2086_v59  ;;  %2587 = vrsqrt.f32 %v2026_v55 }
 0x35e   :  { %v2582_v37 = vpop.eup %2581  ;;  %v1985_v41 = vpop.xlane.xlu1 %1984 }
 0x35f   :  { %v2087_v31 = vmul.f32 %v2582_v37, %v3268_v21  ;;  %v2027_v33 = vmax.f32 %v1985_v41, 1e-24 }
 0x361   :  { %2119 = vst [vmem:[#allocation8 + $0x88] sm:$0xff] %v2087_v31  ;;  %2589 = vrsqrt.f32 %v2027_v33 }
 0x362   :  { %v2584_v40 = vpop.eup %2583  ;;  %v1987_v28 = vpop.xlane.xlu0 %1986 }
 0x363   :  { %v2088_v14 = vmul.f32 %v2584_v40, %v3273_v53  ;;  %v2028_v48 = vmax.f32 %v1987_v28, 1e-24 }
 0x365   :  { %2120 = vst [vmem:[#allocation8 + $0x90] sm:$0xff] %v2088_v14  ;;  %2591 = vrsqrt.f32 %v2028_v48 }
 0x366   :  { %v2586_v4 = vpop.eup %2585  ;;  %v1989_v29 = vpop.xlane.xlu1 %1988 }
 0x367   :  { %v2089_v12 = vmul.f32 %v2586_v4, %v3278_v35  ;;  %v2029_v20 = vmax.f32 %v1989_v29, 1e-24 }
 0x369   :  { %2121 = vst [vmem:[#allocation8 + $0x98] sm:$0xff] %v2089_v12  ;;  %2593 = vrsqrt.f32 %v2029_v20 }
 0x36a   :  { %v2588_v36 = vpop.eup %2587  ;;  %v1991_v56 = vpop.xlane.xlu0 %1990 }
 0x36b   :  { %v2090_v21 = vmul.f32 %v2588_v36, %v3283_v3  ;;  %v2030_v18 = vmax.f32 %v1991_v56, 1e-24 }
 0x36d   :  { %2122 = vst [vmem:[#allocation8 + $0xa0] sm:$0xff] %v2090_v21  ;;  %2595 = vrsqrt.f32 %v2030_v18 }
 0x36e   :  { %v2590_v50 = vpop.eup %2589  ;;  %v1993_v38 = vpop.xlane.xlu1 %1992 }
 0x36f   :  { %v2091_v53 = vmul.f32 %v2590_v50, %v3288_v7  ;;  %v2031_v1 = vmax.f32 %v1993_v38, 1e-24 }
 0x371   :  { %2123 = vst [vmem:[#allocation8 + $0xa8] sm:$0xff] %v2091_v53  ;;  %2597 = vrsqrt.f32 %v2031_v1 }
 0x372   :  { %v2592_v5 = vpop.eup %2591  ;;  %v1995_v42 = vpop.xlane.xlu0 %1994 }
 0x373   :  { %v2092_v35 = vmul.f32 %v2592_v5, %v3293_v24  ;;  %v2032_v45 = vmax.f32 %v1995_v42, 1e-24 }
 0x375   :  { %2124 = vst [vmem:[#allocation8 + $0xb0] sm:$0xff] %v2092_v35  ;;  %2599 = vrsqrt.f32 %v2032_v45 }
 0x376   :  { %v2594_v25 = vpop.eup %2593  ;;  %v1997_v6 = vpop.xlane.xlu1 %1996 }
 0x377   :  { %v2093_v3 = vmul.f32 %v2594_v25, %v3298_v15  ;;  %v2033_v34 = vmax.f32 %v1997_v6, 1e-24 }
 0x379   :  { %2125 = vst [vmem:[#allocation8 + $0xb8] sm:$0xff] %v2093_v3  ;;  %2601 = vrsqrt.f32 %v2033_v34 }
 0x37a   :  { %v2596_v8 = vpop.eup %2595  ;;  %v1999_v49 = vpop.xlane.xlu0 %1998 }
 0x37b   :  { %v2094_v7 = vmul.f32 %v2596_v8, %v3303_v44  ;;  %v2034_v2 = vmax.f32 %v1999_v49, 1e-24 }
 0x37d   :  { %2126 = vst [vmem:[#allocation8 + $0xc0] sm:$0xff] %v2094_v7  ;;  %2603 = vrsqrt.f32 %v2034_v2 }
 0x37e   :  { %v2598_v11 = vpop.eup %2597  ;;  %v2001_v27 = vpop.xlane.xlu1 %2000 }
 0x37f   :  { %v2095_v24 = vmul.f32 %v2598_v11, %v3308_v62  ;;  %v2035_v52 = vmax.f32 %v2001_v27, 1e-24 }
 0x381   :  { %2127 = vst [vmem:[#allocation8 + $0xc8] sm:$0xff] %v2095_v24  ;;  %2605 = vrsqrt.f32 %v2035_v52 }
 0x382   :  { %v2600_v30 = vpop.eup %2599  ;;  %v2003_v43 = vpop.xlane.xlu0 %2002 }
 0x383   :  { %v2096_v15 = vmul.f32 %v2600_v30, %v3313_v9  ;;  %v2036_v0 = vmax.f32 %v2003_v43, 1e-24 }
 0x385   :  { %2128 = vst [vmem:[#allocation8 + $0xd0] sm:$0xff] %v2096_v15  ;;  %2607 = vrsqrt.f32 %v2036_v0 }
 0x386   :  { %v2602_v17 = vpop.eup %2601  ;;  %v2005_v60 = vpop.xlane.xlu1 %2004 }
 0x387   :  { %v2097_v44 = vmul.f32 %v2602_v17, %v3318_v51  ;;  %v2037_v57 = vmax.f32 %v2005_v60, 1e-24 }
 0x389   :  { %2129 = vst [vmem:[#allocation8 + $0xd8] sm:$0xff] %v2097_v44  ;;  %2609 = vrsqrt.f32 %v2037_v57 }
 0x38a   :  { %v2604_v63 = vpop.eup %2603 }
 0x38b   :  { %v2098_v62 = vmul.f32 %v2604_v63, %v3323_v19 }
 0x38d   :  { %2130 = vst [vmem:[#allocation8 + $0xe0] sm:$0xff] %v2098_v62 }
 0x38e   :  { %v2606_v54 = vpop.eup %2605 }
 0x38f   :  { %v2099_v13 = vmul.f32 %v2606_v54, %v3328_v46 }
 0x391   :  { %2131 = vst [vmem:[#allocation8 + $0xe8] sm:$0xff] %v2099_v13 }
 0x392   :  { %v2608_v39 = vpop.eup %2607 }
 0x393   :  { %v2100_v9 = vmul.f32 %v2608_v39, %v3333_v61 }
 0x395   :  { %2132 = vst [vmem:[#allocation8 + $0xf0] sm:$0xff] %v2100_v9 }
 0x396   :  { %v2610_v10 = vpop.eup %2609 }
 0x397   :  { %v2101_v51 = vmul.f32 %v2610_v10, %v3338_v22 }
 0x399   :  { %2133 = vst [vmem:[#allocation8 + $0xf8] sm:$0xff] %v2101_v51 }
 0x39a   :  { %2682 = shalt.err (!%p2679_p5)
}
 0x39b   :  { %2145 = dma.vmem_to_hbm [thread:$0]  %s2140_s14, 4096, %s3385_s5, [#allocation4], %s2698_s21, %s2698_s21, %s2699_s22  }
 0x39c   :  { %2695 = dma.done.wait [#allocation4], 4096  }
 0x39d   :  { %2696 = vsyncadd [#allocation4], 4294963200 }
 0x39e   :  { %2149 = vsyncpa [#allocation3], 1 }
 0x39f   :  { %2150 = vsyncpa [#allocation6], 1 }
 0x3a0   :  { %2151 = vsyncpa [#allocation4], 1 }

</bundles_post_ra>
